<compile_context>
chip_gen: v5e
topology: v5e:2x2
jax: 0.10.0
libtpu: 0.0.40
codegen_flags: <defaults>
</compile_context>

<pallas_src>
import functools

import numpy as np
import jax
import jax.numpy as jnp
from jax import lax
from jax.experimental import pallas as pl
from jax.experimental.pallas import tpu as pltpu

EPS = 1e-5


# ---------------------------------------------------------------------------
# aux: flat-index shifts + boundary masks for a 3x3x3 conv with padding 1
# ---------------------------------------------------------------------------
def _conv3_shift_masks(D, H, W):
    L = D * H * W
    d = np.arange(D)[:, None, None]
    h = np.arange(H)[None, :, None]
    w = np.arange(W)[None, None, :]
    shifts = []
    masks = np.zeros((27, 1, L), np.float32)
    k = 0
    for dd in (-1, 0, 1):
        for dh in (-1, 0, 1):
            for dw in (-1, 0, 1):
                delta = dd * H * W + dh * W + dw
                shifts.append(int((-delta) % L))          # roll so row p holds x[p + delta]
                valid = ((d + dd >= 0) & (d + dd < D)
                         & (h + dh >= 0) & (h + dh < H)
                         & (w + dw >= 0) & (w + dw < W))
                masks[k, 0, :] = valid.reshape(L).astype(np.float32)
                k += 1
    return tuple(shifts), jnp.asarray(masks)


# ---------------------------------------------------------------------------
# 1x1x1 conv: pure channel matmul on the lane-dense layout
# ---------------------------------------------------------------------------
def _conv1x1_kernel(w_ref, b_ref, x_ref, o_ref):
    y = jnp.dot(w_ref[...], x_ref[...], preferred_element_type=jnp.float32)
    o_ref[...] = (y + b_ref[...]).astype(o_ref.dtype)


def conv1x1(x, w, b):
    """Conv3d(kernel=1): x (N,Cin,D,H,W), w (Cout,Cin), b (Cout,)."""
    N, Cin, D, H, W = x.shape
    Cout = w.shape[0]
    L = D * H * W
    xf = x.reshape(N, Cin, L)
    out = pl.pallas_call(
        _conv1x1_kernel,
        out_shape=jax.ShapeDtypeStruct((N, Cout, L), x.dtype),
        grid_spec=pltpu.PrefetchScalarGridSpec(
            num_scalar_prefetch=0,
            grid=(N,),
            in_specs=[
                pl.BlockSpec((Cout, Cin), lambda n: (0, 0)),
                pl.BlockSpec((Cout, 1), lambda n: (0, 0)),
                pl.BlockSpec((None, Cin, L), lambda n: (n, 0, 0)),
            ],
            out_specs=pl.BlockSpec((None, Cout, L), lambda n: (n, 0, 0)),
        ),
        compiler_params=pltpu.CompilerParams(dimension_semantics=("parallel",)),
    )(w, b.reshape(Cout, 1), xf)
    return out.reshape(N, Cout, D, H, W)


# ---------------------------------------------------------------------------
# fused [residual add] + Conv3d(3x3x3, pad 1) + BatchNorm(eval) + ReLU
# ---------------------------------------------------------------------------
def _conv3_bn_relu_kernel(*refs, shifts, c, has_res):
    if has_res:
        w_ref, b_ref, m_ref, x_ref, r_ref, o_ref, col_ref = refs
        x = x_ref[...] + r_ref[...]                  # fused recurrent residual add
    else:
        w_ref, b_ref, m_ref, x_ref, o_ref, col_ref = refs
        x = x_ref[...]
    # Pack the 27 shifted + boundary-masked copies of x into one (27*C, L) matrix.
    for k, s in enumerate(shifts):
        xs = pltpu.roll(x, s, 1) if s else x          # XLU lane rotation (cheap)
        col_ref[k * c:(k + 1) * c, :] = xs * m_ref[k]
    # One large MXU matmul: (C, 27*C) x (27*C, L) -> (C, L); then the folded
    # conv-bias + BN affine, then ReLU.
    y = jnp.dot(w_ref[...], col_ref[...], preferred_element_type=jnp.float32)
    y = y + b_ref[...]
    o_ref[...] = jnp.maximum(y, 0.0).astype(o_ref.dtype)


def conv3x3x3_bn_relu(x, res, w2, bias2, masks, shifts):
    """Fused Conv3d(3,3,3 / pad 1 / stride 1) + BN(eval) + ReLU on (x + res)."""
    N, C, D, H, W = x.shape
    L = D * H * W
    xf = x.reshape(N, C, L)
    act_spec = pl.BlockSpec((None, C, L), lambda n: (n, 0, 0))
    in_specs = [
        pl.BlockSpec((C, 27 * C), lambda n: (0, 0)),      # folded weights (constant)
        pl.BlockSpec((C, 1), lambda n: (0, 0)),           # folded bias (constant)
        pl.BlockSpec((27, 1, L), lambda n: (0, 0, 0)),    # boundary masks (constant)
        act_spec,                                         # activation
    ]
    args = [w2, bias2, masks, xf]
    if res is not None:
        in_specs.append(act_spec)                         # previous state x1
        args.append(res.reshape(N, C, L))
    kernel = functools.partial(_conv3_bn_relu_kernel, shifts=shifts, c=C,
                               has_res=res is not None)
    out = pl.pallas_call(
        kernel,
        out_shape=jax.ShapeDtypeStruct((N, C, L), x.dtype),
        grid_spec=pltpu.PrefetchScalarGridSpec(
            num_scalar_prefetch=0,
            grid=(N,),
            in_specs=in_specs,
            out_specs=act_spec,
            scratch_shapes=[pltpu.VMEM((27 * C, L), jnp.float32)],
        ),
        compiler_params=pltpu.CompilerParams(dimension_semantics=("parallel",)),
    )(*args)
    return out.reshape(N, C, D, H, W)


# ---------------------------------------------------------------------------
# parameter folding + full RCNNBlock forward
# ---------------------------------------------------------------------------
def fold_recurrent_params(w, b, gamma, beta, mean, var, eps=EPS):
    """Fold Conv3d bias + eval-mode BatchNorm3d into (C, 27*C) weight + (C,1) bias."""
    C_out, C_in = w.shape[0], w.shape[1]
    scale = gamma / jnp.sqrt(var + eps)                                  # (C_out,)
    w_s = w * scale[:, None, None, None, None]
    # (C_out, C_in, kd, kh, kw) -> (C_out, kd, kh, kw, C_in) -> (C_out, 27*C_in)
    w2 = jnp.transpose(w_s, (0, 2, 3, 4, 1)).reshape(C_out, 27 * C_in)
    bias2 = (scale * (b - mean) + beta).reshape(C_out, 1)
    return w2, bias2


def rcnn_block_forward(x, params):
    """Pallas forward of RCNNBlock (num_rcnn blocks, t=2, BN in eval mode)."""
    N, Cin, D, H, W = x.shape
    shifts, masks = _conv3_shift_masks(D, H, W)
    h = conv1x1(x, params["w1"], params["b1"])
    for blk in params["blocks"]:
        w2, bias2 = blk["w2"], blk["bias2"]
        # RecurrentBlock.forward with t=2:  x1 = f(h); x1 = f(h + x1); x1 = f(h + x1)
        x1 = conv3x3x3_bn_relu(h, None, w2, bias2, masks, shifts)
        x1 = conv3x3x3_bn_relu(h, x1, w2, bias2, masks, shifts)
        x1 = conv3x3x3_bn_relu(h, x1, w2, bias2, masks, shifts)
        h = x1
    return h


# ---------------------------------------------------------------------------
# pure-XLA reference (independent conv formulation) for validation
# ---------------------------------------------------------------------------
def _bn_relu_ref(z, blk):
    g = blk["gamma"][None, :, None, None, None]
    bt = blk["beta"][None, :, None, None, None]
    mu = blk["mean"][None, :, None, None, None]
    vv = blk["var"][None, :, None, None, None]
    z = g * (z - mu) / jnp.sqrt(vv + EPS) + bt
    return jnp.maximum(z, 0.0)


def reference_forward(x, raw):
    y = jnp.einsum("oi,nidhw->nodhw", raw["w1"], x,
                   precision=lax.Precision.HIGHEST)
    y = y + raw["b1"][None, :, None, None, None]
    for blk in raw["blocks"]:
        def f(z, blk=blk):
            c = lax.conv_general_dilated(
                z, blk["w"], window_strides=(1, 1, 1),
                padding=((1, 1), (1, 1), (1, 1)),
                dimension_numbers=("NCDHW", "OIDHW", "NCDHW"),
                precision=lax.Precision.HIGHEST)
            c = c + blk["b"][None, :, None, None, None]
            return _bn_relu_ref(c, blk)
        x1 = f(y)
        x1 = f(y + x1)
        x1 = f(y + x1)
        y = x1
    return y


if __name__ == "__main__":
    key = jax.random.PRNGKey(0)
    ks = jax.random.split(key, 16)

    # Small NCDHW shapes consistent with RCNNBlock's forward.
    N, C_IN, C_OUT = 2, 4, 16
    D = H = W = 8
    NUM_RCNN = 2

    x = jax.random.normal(ks[0], (N, C_IN, D, H, W), jnp.float32)

    # conv_1x1 parameters (kernel size 1 stored as a (C_out, C_in) matrix).
    w1 = jax.random.normal(ks[1], (C_OUT, C_IN), jnp.float32) / np.sqrt(C_IN)
    b1 = 0.1 * jax.random.normal(ks[2], (C_OUT,), jnp.float32)

    raw = {"w1": w1, "b1": b1, "blocks": []}
    params = {"w1": w1, "b1": b1, "blocks": []}
    kidx = 3
    for _ in range(NUM_RCNN):
        w = jax.random.normal(ks[kidx], (C_OUT, C_OUT, 3, 3, 3),
                              jnp.float32) / np.sqrt(27 * C_OUT)
        b = 0.1 * jax.random.normal(ks[kidx + 1], (C_OUT,), jnp.float32)
        gamma = 1.0 + 0.1 * jax.random.normal(ks[kidx + 2], (C_OUT,), jnp.float32)
        beta = 0.1 * jax.random.normal(ks[kidx + 3], (C_OUT,), jnp.float32)
        mean = 0.1 * jax.random.normal(ks[kidx + 4], (C_OUT,), jnp.float32)
        var = 0.5 + jax.random.uniform(ks[kidx + 5], (C_OUT,), jnp.float32)
        kidx += 6
        raw["blocks"].append(dict(w=w, b=b, gamma=gamma, beta=beta,
                                  mean=mean, var=var))
        w2, bias2 = fold_recurrent_params(w, b, gamma, beta, mean, var)
        params["blocks"].append(dict(w2=w2, bias2=bias2))

    y = jax.jit(rcnn_block_forward)(x, params)
    y = jax.block_until_ready(y)
    assert y.shape == (N, C_OUT, D, H, W), y.shape

    y_ref = jax.jit(reference_forward)(x, raw)
    y_ref = jax.block_until_ready(y_ref)
    assert jnp.allclose(y, y_ref, atol=2e-3, rtol=2e-3), "mismatch vs reference"

    print("KERNEL_OK")
</pallas_src>

<mosaic_0001>
module attributes {stable_mosaic.version = 11 : i64} {
  func.func @_conv1x1_kernel(%arg0: i32, %arg1: memref<16x4xf32, #tpu.memory_space<vmem>>, %arg2: memref<16x1xf32, #tpu.memory_space<vmem>>, %arg3: memref<1x4x512xf32, #tpu.memory_space<vmem>>, %arg4: memref<1x16x512xf32, #tpu.memory_space<vmem>>) attributes {dimension_semantics = [#tpu.dimension_semantics<parallel>], iteration_bounds = array<i64: 2>, scalar_prefetch = 0 : i64, scratch_operands = 0 : i64, tpu.core_type = #tpu.core_type<tc>, window_params = [{pipeline_mode = #tpu.pipeline_mode<synchronous>, transform_indices = @transform_0, window_bounds = array<i64: 16, 4>}, {pipeline_mode = #tpu.pipeline_mode<synchronous>, transform_indices = @transform_1, window_bounds = array<i64: 16, 1>}, {transform_indices = @transform_2, window_bounds = array<i64: 1, 4, 512>}, {transform_indices = @transform_3, window_bounds = array<i64: 1, 16, 512>}]} {
    %c0 = arith.constant 0 : index
    %c0_0 = arith.constant 0 : index
    %0 = vector.load %arg1[%c0, %c0_0] : memref<16x4xf32, #tpu.memory_space<vmem>>, vector<16x4xf32>
    %c0_1 = arith.constant 0 : index
    %c0_2 = arith.constant 0 : index
    %c0_3 = arith.constant 0 : index
    %1 = vector.load %arg3[%c0_1, %c0_2, %c0_3] : memref<1x4x512xf32, #tpu.memory_space<vmem>>, vector<1x4x512xf32>
    %2 = vector.shape_cast %1 : vector<1x4x512xf32> to vector<4x512xf32>
    %cst = arith.constant dense<0.000000e+00> : vector<16x512xf32>
    %3 = tpu.matmul %0, %2, %cst {dimension_numbers = #tpu.dot_dimension_numbers<[1], [0], [0], [1], [0, 0, 1, 1], [], []>} : vector<16x4xf32>, vector<4x512xf32>, vector<16x512xf32> -> vector<16x512xf32>
    %c0_4 = arith.constant 0 : index
    %c0_5 = arith.constant 0 : index
    %4 = vector.load %arg2[%c0_4, %c0_5] : memref<16x1xf32, #tpu.memory_space<vmem>>, vector<16x1xf32>
    %5 = vector.broadcast %4 : vector<16x1xf32> to vector<16x512xf32>
    %6 = arith.addf %3, %5 : vector<16x512xf32>
    %c0_6 = arith.constant 0 : index
    %c0_7 = arith.constant 0 : index
    %c0_8 = arith.constant 0 : index
    %7 = vector.load %arg4[%c0_6, %c0_7, %c0_8] : memref<1x16x512xf32, #tpu.memory_space<vmem>>, vector<1x16x512xf32>
    %8 = vector.shape_cast %7 : vector<1x16x512xf32> to vector<16x512xf32>
    %9 = vector.shape_cast %6 : vector<16x512xf32> to vector<1x16x512xf32>
    tpu.vector_store %arg4[%c0_6, %c0_7, %c0_8], %9 {strides = array<i32>} : memref<1x16x512xf32, #tpu.memory_space<vmem>>, vector<1x16x512xf32>,
    return
  }
  func.func @transform_0(%arg0: i32) -> (i32, i32) {
    %c0_i32 = arith.constant 0 : i32
    %c0_i32_0 = arith.constant 0 : i32
    %c0_i32_1 = arith.constant 0 : i32
    return %c0_i32, %c0_i32_0 : i32, i32
  }
  func.func @transform_1(%arg0: i32) -> (i32, i32) {
    %c0_i32 = arith.constant 0 : i32
    %c0_i32_0 = arith.constant 0 : i32
    %c0_i32_1 = arith.constant 0 : i32
    return %c0_i32, %c0_i32_0 : i32, i32
  }
  func.func @transform_2(%arg0: i32) -> (i32, i32, i32) {
    %c0_i32 = arith.constant 0 : i32
    %c0_i32_0 = arith.constant 0 : i32
    %c0_i32_1 = arith.constant 0 : i32
    return %arg0, %c0_i32, %c0_i32_0 : i32, i32, i32
  }
  func.func @transform_3(%arg0: i32) -> (i32, i32, i32) {
    %c0_i32 = arith.constant 0 : i32
    %c0_i32_0 = arith.constant 0 : i32
    %c0_i32_1 = arith.constant 0 : i32
    return %arg0, %c0_i32, %c0_i32_0 : i32, i32, i32
  }
}

module attributes {stable_mosaic.version = 11 : i64} {
  func.func @_conv3_bn_relu_kernel(%arg0: i32, %arg1: memref<16x432xf32, #tpu.memory_space<vmem>>, %arg2: memref<16x1xf32, #tpu.memory_space<vmem>>, %arg3: memref<27x1x512xf32, #tpu.memory_space<vmem>>, %arg4: memref<1x16x512xf32, #tpu.memory_space<vmem>>, %arg5: memref<1x16x512xf32, #tpu.memory_space<vmem>>, %arg6: memref<1x16x512xf32, #tpu.memory_space<vmem>>, %arg7: memref<432x512xf32, #tpu.memory_space<vmem>>) attributes {dimension_semantics = [#tpu.dimension_semantics<parallel>], iteration_bounds = array<i64: 2>, scalar_prefetch = 0 : i64, scratch_operands = 1 : i64, tpu.core_type = #tpu.core_type<tc>, window_params = [{pipeline_mode = #tpu.pipeline_mode<synchronous>, transform_indices = @transform_0, window_bounds = array<i64: 16, 432>}, {pipeline_mode = #tpu.pipeline_mode<synchronous>, transform_indices = @transform_1, window_bounds = array<i64: 16, 1>}, {pipeline_mode = #tpu.pipeline_mode<synchronous>, transform_indices = @transform_2, window_bounds = array<i64: 27, 1, 512>}, {transform_indices = @transform_3, window_bounds = array<i64: 1, 16, 512>}, {transform_indices = @transform_4, window_bounds = array<i64: 1, 16, 512>}, {transform_indices = @transform_5, window_bounds = array<i64: 1, 16, 512>}]} {
    %c0 = arith.constant 0 : index
    %c0_0 = arith.constant 0 : index
    %c0_1 = arith.constant 0 : index
    %0 = vector.load %arg4[%c0, %c0_0, %c0_1] : memref<1x16x512xf32, #tpu.memory_space<vmem>>, vector<1x16x512xf32>
    %1 = vector.shape_cast %0 : vector<1x16x512xf32> to vector<16x512xf32>
    %c0_2 = arith.constant 0 : index
    %c0_3 = arith.constant 0 : index
    %c0_4 = arith.constant 0 : index
    %2 = vector.load %arg5[%c0_2, %c0_3, %c0_4] : memref<1x16x512xf32, #tpu.memory_space<vmem>>, vector<1x16x512xf32>
    %3 = vector.shape_cast %2 : vector<1x16x512xf32> to vector<16x512xf32>
    %4 = arith.addf %1, %3 : vector<16x512xf32>
    %c73_i32 = arith.constant 73 : i32
    %5 = tpu.dynamic_rotate %4 by %c73_i32 dim 1 : vector<16x512xf32>, i32 -> vector<16x512xf32>
    %c0_5 = arith.constant 0 : index
    %c0_6 = arith.constant 0 : index
    %c0_7 = arith.constant 0 : index
    %6 = vector.load %arg3[%c0_5, %c0_6, %c0_7] : memref<27x1x512xf32, #tpu.memory_space<vmem>>, vector<1x1x512xf32>
    %7 = vector.shape_cast %6 : vector<1x1x512xf32> to vector<1x512xf32>
    %8 = vector.broadcast %7 : vector<1x512xf32> to vector<16x512xf32>
    %9 = arith.mulf %5, %8 : vector<16x512xf32>
    %c0_8 = arith.constant 0 : index
    %c0_9 = arith.constant 0 : index
    %10 = vector.load %arg7[%c0_8, %c0_9] : memref<432x512xf32, #tpu.memory_space<vmem>>, vector<16x512xf32>
    tpu.vector_store %arg7[%c0_8, %c0_9], %9 {strides = array<i32>} : memref<432x512xf32, #tpu.memory_space<vmem>>, vector<16x512xf32>,
    %c72_i32 = arith.constant 72 : i32
    %11 = tpu.dynamic_rotate %4 by %c72_i32 dim 1 : vector<16x512xf32>, i32 -> vector<16x512xf32>
    %c1 = arith.constant 1 : index
    %c0_10 = arith.constant 0 : index
    %c0_11 = arith.constant 0 : index
    %12 = vector.load %arg3[%c1, %c0_10, %c0_11] : memref<27x1x512xf32, #tpu.memory_space<vmem>>, vector<1x1x512xf32>
    %13 = vector.shape_cast %12 : vector<1x1x512xf32> to vector<1x512xf32>
    %14 = vector.broadcast %13 : vector<1x512xf32> to vector<16x512xf32>
    %15 = arith.mulf %11, %14 : vector<16x512xf32>
    %c16 = arith.constant 16 : index
    %c0_12 = arith.constant 0 : index
    %16 = vector.load %arg7[%c16, %c0_12] : memref<432x512xf32, #tpu.memory_space<vmem>>, vector<16x512xf32>
    tpu.vector_store %arg7[%c16, %c0_12], %15 {strides = array<i32>} : memref<432x512xf32, #tpu.memory_space<vmem>>, vector<16x512xf32>,
    %c71_i32 = arith.constant 71 : i32
    %17 = tpu.dynamic_rotate %4 by %c71_i32 dim 1 : vector<16x512xf32>, i32 -> vector<16x512xf32>
    %c2 = arith.constant 2 : index
    %c0_13 = arith.constant 0 : index
    %c0_14 = arith.constant 0 : index
    %18 = vector.load %arg3[%c2, %c0_13, %c0_14] : memref<27x1x512xf32, #tpu.memory_space<vmem>>, vector<1x1x512xf32>
    %19 = vector.shape_cast %18 : vector<1x1x512xf32> to vector<1x512xf32>
    %20 = vector.broadcast %19 : vector<1x512xf32> to vector<16x512xf32>
    %21 = arith.mulf %17, %20 : vector<16x512xf32>
    %c32 = arith.constant 32 : index
    %c0_15 = arith.constant 0 : index
    %22 = vector.load %arg7[%c32, %c0_15] : memref<432x512xf32, #tpu.memory_space<vmem>>, vector<16x512xf32>
    tpu.vector_store %arg7[%c32, %c0_15], %21 {strides = array<i32>} : memref<432x512xf32, #tpu.memory_space<vmem>>, vector<16x512xf32>,
    %c65_i32 = arith.constant 65 : i32
    %23 = tpu.dynamic_rotate %4 by %c65_i32 dim 1 : vector<16x512xf32>, i32 -> vector<16x512xf32>
    %c3 = arith.constant 3 : index
    %c0_16 = arith.constant 0 : index
    %c0_17 = arith.constant 0 : index
    %24 = vector.load %arg3[%c3, %c0_16, %c0_17] : memref<27x1x512xf32, #tpu.memory_space<vmem>>, vector<1x1x512xf32>
    %25 = vector.shape_cast %24 : vector<1x1x512xf32> to vector<1x512xf32>
    %26 = vector.broadcast %25 : vector<1x512xf32> to vector<16x512xf32>
    %27 = arith.mulf %23, %26 : vector<16x512xf32>
    %c48 = arith.constant 48 : index
    %c0_18 = arith.constant 0 : index
    %28 = vector.load %arg7[%c48, %c0_18] : memref<432x512xf32, #tpu.memory_space<vmem>>, vector<16x512xf32>
    tpu.vector_store %arg7[%c48, %c0_18], %27 {strides = array<i32>} : memref<432x512xf32, #tpu.memory_space<vmem>>, vector<16x512xf32>,
    %c64_i32 = arith.constant 64 : i32
    %29 = tpu.dynamic_rotate %4 by %c64_i32 dim 1 : vector<16x512xf32>, i32 -> vector<16x512xf32>
    %c4 = arith.constant 4 : index
    %c0_19 = arith.constant 0 : index
    %c0_20 = arith.constant 0 : index
    %30 = vector.load %arg3[%c4, %c0_19, %c0_20] : memref<27x1x512xf32, #tpu.memory_space<vmem>>, vector<1x1x512xf32>
    %31 = vector.shape_cast %30 : vector<1x1x512xf32> to vector<1x512xf32>
    %32 = vector.broadcast %31 : vector<1x512xf32> to vector<16x512xf32>
    %33 = arith.mulf %29, %32 : vector<16x512xf32>
    %c64 = arith.constant 64 : index
    %c0_21 = arith.constant 0 : index
    %34 = vector.load %arg7[%c64, %c0_21] : memref<432x512xf32, #tpu.memory_space<vmem>>, vector<16x512xf32>
    tpu.vector_store %arg7[%c64, %c0_21], %33 {strides = array<i32>} : memref<432x512xf32, #tpu.memory_space<vmem>>, vector<16x512xf32>,
    %c63_i32 = arith.constant 63 : i32
    %35 = tpu.dynamic_rotate %4 by %c63_i32 dim 1 : vector<16x512xf32>, i32 -> vector<16x512xf32>
    %c5 = arith.constant 5 : index
    %c0_22 = arith.constant 0 : index
    %c0_23 = arith.constant 0 : index
    %36 = vector.load %arg3[%c5, %c0_22, %c0_23] : memref<27x1x512xf32, #tpu.memory_space<vmem>>, vector<1x1x512xf32>
    %37 = vector.shape_cast %36 : vector<1x1x512xf32> to vector<1x512xf32>
    %38 = vector.broadcast %37 : vector<1x512xf32> to vector<16x512xf32>
    %39 = arith.mulf %35, %38 : vector<16x512xf32>
    %c80 = arith.constant 80 : index
    %c0_24 = arith.constant 0 : index
    %40 = vector.load %arg7[%c80, %c0_24] : memref<432x512xf32, #tpu.memory_space<vmem>>, vector<16x512xf32>
    tpu.vector_store %arg7[%c80, %c0_24], %39 {strides = array<i32>} : memref<432x512xf32, #tpu.memory_space<vmem>>, vector<16x512xf32>,
    %c57_i32 = arith.constant 57 : i32
    %41 = tpu.dynamic_rotate %4 by %c57_i32 dim 1 : vector<16x512xf32>, i32 -> vector<16x512xf32>
    %c6 = arith.constant 6 : index
    %c0_25 = arith.constant 0 : index
    %c0_26 = arith.constant 0 : index
    %42 = vector.load %arg3[%c6, %c0_25, %c0_26] : memref<27x1x512xf32, #tpu.memory_space<vmem>>, vector<1x1x512xf32>
    %43 = vector.shape_cast %42 : vector<1x1x512xf32> to vector<1x512xf32>
    %44 = vector.broadcast %43 : vector<1x512xf32> to vector<16x512xf32>
    %45 = arith.mulf %41, %44 : vector<16x512xf32>
    %c96 = arith.constant 96 : index
    %c0_27 = arith.constant 0 : index
    %46 = vector.load %arg7[%c96, %c0_27] : memref<432x512xf32, #tpu.memory_space<vmem>>, vector<16x512xf32>
    tpu.vector_store %arg7[%c96, %c0_27], %45 {strides = array<i32>} : memref<432x512xf32, #tpu.memory_space<vmem>>, vector<16x512xf32>,
    %c56_i32 = arith.constant 56 : i32
    %47 = tpu.dynamic_rotate %4 by %c56_i32 dim 1 : vector<16x512xf32>, i32 -> vector<16x512xf32>
    %c7 = arith.constant 7 : index
    %c0_28 = arith.constant 0 : index
    %c0_29 = arith.constant 0 : index
    %48 = vector.load %arg3[%c7, %c0_28, %c0_29] : memref<27x1x512xf32, #tpu.memory_space<vmem>>, vector<1x1x512xf32>
    %49 = vector.shape_cast %48 : vector<1x1x512xf32> to vector<1x512xf32>
    %50 = vector.broadcast %49 : vector<1x512xf32> to vector<16x512xf32>
    %51 = arith.mulf %47, %50 : vector<16x512xf32>
    %c112 = arith.constant 112 : index
    %c0_30 = arith.constant 0 : index
    %52 = vector.load %arg7[%c112, %c0_30] : memref<432x512xf32, #tpu.memory_space<vmem>>, vector<16x512xf32>
    tpu.vector_store %arg7[%c112, %c0_30], %51 {strides = array<i32>} : memref<432x512xf32, #tpu.memory_space<vmem>>, vector<16x512xf32>,
    %c55_i32 = arith.constant 55 : i32
    %53 = tpu.dynamic_rotate %4 by %c55_i32 dim 1 : vector<16x512xf32>, i32 -> vector<16x512xf32>
    %c8 = arith.constant 8 : index
    %c0_31 = arith.constant 0 : index
    %c0_32 = arith.constant 0 : index
    %54 = vector.load %arg3[%c8, %c0_31, %c0_32] : memref<27x1x512xf32, #tpu.memory_space<vmem>>, vector<1x1x512xf32>
    %55 = vector.shape_cast %54 : vector<1x1x512xf32> to vector<1x512xf32>
    %56 = vector.broadcast %55 : vector<1x512xf32> to vector<16x512xf32>
    %57 = arith.mulf %53, %56 : vector<16x512xf32>
    %c128 = arith.constant 128 : index
    %c0_33 = arith.constant 0 : index
    %58 = vector.load %arg7[%c128, %c0_33] : memref<432x512xf32, #tpu.memory_space<vmem>>, vector<16x512xf32>
    tpu.vector_store %arg7[%c128, %c0_33], %57 {strides = array<i32>} : memref<432x512xf32, #tpu.memory_space<vmem>>, vector<16x512xf32>,
    %c9_i32 = arith.constant 9 : i32
    %59 = tpu.dynamic_rotate %4 by %c9_i32 dim 1 : vector<16x512xf32>, i32 -> vector<16x512xf32>
    %c9 = arith.constant 9 : index
    %c0_34 = arith.constant 0 : index
    %c0_35 = arith.constant 0 : index
    %60 = vector.load %arg3[%c9, %c0_34, %c0_35] : memref<27x1x512xf32, #tpu.memory_space<vmem>>, vector<1x1x512xf32>
    %61 = vector.shape_cast %60 : vector<1x1x512xf32> to vector<1x512xf32>
    %62 = vector.broadcast %61 : vector<1x512xf32> to vector<16x512xf32>
    %63 = arith.mulf %59, %62 : vector<16x512xf32>
    %c144 = arith.constant 144 : index
    %c0_36 = arith.constant 0 : index
    %64 = vector.load %arg7[%c144, %c0_36] : memref<432x512xf32, #tpu.memory_space<vmem>>, vector<16x512xf32>
    tpu.vector_store %arg7[%c144, %c0_36], %63 {strides = array<i32>} : memref<432x512xf32, #tpu.memory_space<vmem>>, vector<16x512xf32>,
    %c8_i32 = arith.constant 8 : i32
    %65 = tpu.dynamic_rotate %4 by %c8_i32 dim 1 : vector<16x512xf32>, i32 -> vector<16x512xf32>
    %c10 = arith.constant 10 : index
    %c0_37 = arith.constant 0 : index
    %c0_38 = arith.constant 0 : index
    %66 = vector.load %arg3[%c10, %c0_37, %c0_38] : memref<27x1x512xf32, #tpu.memory_space<vmem>>, vector<1x1x512xf32>
    %67 = vector.shape_cast %66 : vector<1x1x512xf32> to vector<1x512xf32>
    %68 = vector.broadcast %67 : vector<1x512xf32> to vector<16x512xf32>
    %69 = arith.mulf %65, %68 : vector<16x512xf32>
    %c160 = arith.constant 160 : index
    %c0_39 = arith.constant 0 : index
    %70 = vector.load %arg7[%c160, %c0_39] : memref<432x512xf32, #tpu.memory_space<vmem>>, vector<16x512xf32>
    tpu.vector_store %arg7[%c160, %c0_39], %69 {strides = array<i32>} : memref<432x512xf32, #tpu.memory_space<vmem>>, vector<16x512xf32>,
    %c7_i32 = arith.constant 7 : i32
    %71 = tpu.dynamic_rotate %4 by %c7_i32 dim 1 : vector<16x512xf32>, i32 -> vector<16x512xf32>
    %c11 = arith.constant 11 : index
    %c0_40 = arith.constant 0 : index
    %c0_41 = arith.constant 0 : index
    %72 = vector.load %arg3[%c11, %c0_40, %c0_41] : memref<27x1x512xf32, #tpu.memory_space<vmem>>, vector<1x1x512xf32>
    %73 = vector.shape_cast %72 : vector<1x1x512xf32> to vector<1x512xf32>
    %74 = vector.broadcast %73 : vector<1x512xf32> to vector<16x512xf32>
    %75 = arith.mulf %71, %74 : vector<16x512xf32>
    %c176 = arith.constant 176 : index
    %c0_42 = arith.constant 0 : index
    %76 = vector.load %arg7[%c176, %c0_42] : memref<432x512xf32, #tpu.memory_space<vmem>>, vector<16x512xf32>
    tpu.vector_store %arg7[%c176, %c0_42], %75 {strides = array<i32>} : memref<432x512xf32, #tpu.memory_space<vmem>>, vector<16x512xf32>,
    %c1_i32 = arith.constant 1 : i32
    %77 = tpu.dynamic_rotate %4 by %c1_i32 dim 1 : vector<16x512xf32>, i32 -> vector<16x512xf32>
    %c12 = arith.constant 12 : index
    %c0_43 = arith.constant 0 : index
    %c0_44 = arith.constant 0 : index
    %78 = vector.load %arg3[%c12, %c0_43, %c0_44] : memref<27x1x512xf32, #tpu.memory_space<vmem>>, vector<1x1x512xf32>
    %79 = vector.shape_cast %78 : vector<1x1x512xf32> to vector<1x512xf32>
    %80 = vector.broadcast %79 : vector<1x512xf32> to vector<16x512xf32>
    %81 = arith.mulf %77, %80 : vector<16x512xf32>
    %c192 = arith.constant 192 : index
    %c0_45 = arith.constant 0 : index
    %82 = vector.load %arg7[%c192, %c0_45] : memref<432x512xf32, #tpu.memory_space<vmem>>, vector<16x512xf32>
    tpu.vector_store %arg7[%c192, %c0_45], %81 {strides = array<i32>} : memref<432x512xf32, #tpu.memory_space<vmem>>, vector<16x512xf32>,
    %c13 = arith.constant 13 : index
    %c0_46 = arith.constant 0 : index
    %c0_47 = arith.constant 0 : index
    %83 = vector.load %arg3[%c13, %c0_46, %c0_47] : memref<27x1x512xf32, #tpu.memory_space<vmem>>, vector<1x1x512xf32>
    %84 = vector.shape_cast %83 : vector<1x1x512xf32> to vector<1x512xf32>
    %85 = vector.broadcast %84 : vector<1x512xf32> to vector<16x512xf32>
    %86 = arith.mulf %4, %85 : vector<16x512xf32>
    %c208 = arith.constant 208 : index
    %c0_48 = arith.constant 0 : index
    %87 = vector.load %arg7[%c208, %c0_48] : memref<432x512xf32, #tpu.memory_space<vmem>>, vector<16x512xf32>
    tpu.vector_store %arg7[%c208, %c0_48], %86 {strides = array<i32>} : memref<432x512xf32, #tpu.memory_space<vmem>>, vector<16x512xf32>,
    %c511_i32 = arith.constant 511 : i32
    %88 = tpu.dynamic_rotate %4 by %c511_i32 dim 1 : vector<16x512xf32>, i32 -> vector<16x512xf32>
    %c14 = arith.constant 14 : index
    %c0_49 = arith.constant 0 : index
    %c0_50 = arith.constant 0 : index
    %89 = vector.load %arg3[%c14, %c0_49, %c0_50] : memref<27x1x512xf32, #tpu.memory_space<vmem>>, vector<1x1x512xf32>
    %90 = vector.shape_cast %89 : vector<1x1x512xf32> to vector<1x512xf32>
    %91 = vector.broadcast %90 : vector<1x512xf32> to vector<16x512xf32>
    %92 = arith.mulf %88, %91 : vector<16x512xf32>
    %c224 = arith.constant 224 : index
    %c0_51 = arith.constant 0 : index
    %93 = vector.load %arg7[%c224, %c0_51] : memref<432x512xf32, #tpu.memory_space<vmem>>, vector<16x512xf32>
    tpu.vector_store %arg7[%c224, %c0_51], %92 {strides = array<i32>} : memref<432x512xf32, #tpu.memory_space<vmem>>, vector<16x512xf32>,
    %c505_i32 = arith.constant 505 : i32
    %94 = tpu.dynamic_rotate %4 by %c505_i32 dim 1 : vector<16x512xf32>, i32 -> vector<16x512xf32>
    %c15 = arith.constant 15 : index
    %c0_52 = arith.constant 0 : index
    %c0_53 = arith.constant 0 : index
    %95 = vector.load %arg3[%c15, %c0_52, %c0_53] : memref<27x1x512xf32, #tpu.memory_space<vmem>>, vector<1x1x512xf32>
    %96 = vector.shape_cast %95 : vector<1x1x512xf32> to vector<1x512xf32>
    %97 = vector.broadcast %96 : vector<1x512xf32> to vector<16x512xf32>
    %98 = arith.mulf %94, %97 : vector<16x512xf32>
    %c240 = arith.constant 240 : index
    %c0_54 = arith.constant 0 : index
    %99 = vector.load %arg7[%c240, %c0_54] : memref<432x512xf32, #tpu.memory_space<vmem>>, vector<16x512xf32>
    tpu.vector_store %arg7[%c240, %c0_54], %98 {strides = array<i32>} : memref<432x512xf32, #tpu.memory_space<vmem>>, vector<16x512xf32>,
    %c504_i32 = arith.constant 504 : i32
    %100 = tpu.dynamic_rotate %4 by %c504_i32 dim 1 : vector<16x512xf32>, i32 -> vector<16x512xf32>
    %c16_55 = arith.constant 16 : index
    %c0_56 = arith.constant 0 : index
    %c0_57 = arith.constant 0 : index
    %101 = vector.load %arg3[%c16_55, %c0_56, %c0_57] : memref<27x1x512xf32, #tpu.memory_space<vmem>>, vector<1x1x512xf32>
    %102 = vector.shape_cast %101 : vector<1x1x512xf32> to vector<1x512xf32>
    %103 = vector.broadcast %102 : vector<1x512xf32> to vector<16x512xf32>
    %104 = arith.mulf %100, %103 : vector<16x512xf32>
    %c256 = arith.constant 256 : index
    %c0_58 = arith.constant 0 : index
    %105 = vector.load %arg7[%c256, %c0_58] : memref<432x512xf32, #tpu.memory_space<vmem>>, vector<16x512xf32>
    tpu.vector_store %arg7[%c256, %c0_58], %104 {strides = array<i32>} : memref<432x512xf32, #tpu.memory_space<vmem>>, vector<16x512xf32>,
    %c503_i32 = arith.constant 503 : i32
    %106 = tpu.dynamic_rotate %4 by %c503_i32 dim 1 : vector<16x512xf32>, i32 -> vector<16x512xf32>
    %c17 = arith.constant 17 : index
    %c0_59 = arith.constant 0 : index
    %c0_60 = arith.constant 0 : index
    %107 = vector.load %arg3[%c17, %c0_59, %c0_60] : memref<27x1x512xf32, #tpu.memory_space<vmem>>, vector<1x1x512xf32>
    %108 = vector.shape_cast %107 : vector<1x1x512xf32> to vector<1x512xf32>
    %109 = vector.broadcast %108 : vector<1x512xf32> to vector<16x512xf32>
    %110 = arith.mulf %106, %109 : vector<16x512xf32>
    %c272 = arith.constant 272 : index
    %c0_61 = arith.constant 0 : index
    %111 = vector.load %arg7[%c272, %c0_61] : memref<432x512xf32, #tpu.memory_space<vmem>>, vector<16x512xf32>
    tpu.vector_store %arg7[%c272, %c0_61], %110 {strides = array<i32>} : memref<432x512xf32, #tpu.memory_space<vmem>>, vector<16x512xf32>,
    %c457_i32 = arith.constant 457 : i32
    %112 = tpu.dynamic_rotate %4 by %c457_i32 dim 1 : vector<16x512xf32>, i32 -> vector<16x512xf32>
    %c18 = arith.constant 18 : index
    %c0_62 = arith.constant 0 : index
    %c0_63 = arith.constant 0 : index
    %113 = vector.load %arg3[%c18, %c0_62, %c0_63] : memref<27x1x512xf32, #tpu.memory_space<vmem>>, vector<1x1x512xf32>
    %114 = vector.shape_cast %113 : vector<1x1x512xf32> to vector<1x512xf32>
    %115 = vector.broadcast %114 : vector<1x512xf32> to vector<16x512xf32>
    %116 = arith.mulf %112, %115 : vector<16x512xf32>
    %c288 = arith.constant 288 : index
    %c0_64 = arith.constant 0 : index
    %117 = vector.load %arg7[%c288, %c0_64] : memref<432x512xf32, #tpu.memory_space<vmem>>, vector<16x512xf32>
    tpu.vector_store %arg7[%c288, %c0_64], %116 {strides = array<i32>} : memref<432x512xf32, #tpu.memory_space<vmem>>, vector<16x512xf32>,
    %c456_i32 = arith.constant 456 : i32
    %118 = tpu.dynamic_rotate %4 by %c456_i32 dim 1 : vector<16x512xf32>, i32 -> vector<16x512xf32>
    %c19 = arith.constant 19 : index
    %c0_65 = arith.constant 0 : index
    %c0_66 = arith.constant 0 : index
    %119 = vector.load %arg3[%c19, %c0_65, %c0_66] : memref<27x1x512xf32, #tpu.memory_space<vmem>>, vector<1x1x512xf32>
    %120 = vector.shape_cast %119 : vector<1x1x512xf32> to vector<1x512xf32>
    %121 = vector.broadcast %120 : vector<1x512xf32> to vector<16x512xf32>
    %122 = arith.mulf %118, %121 : vector<16x512xf32>
    %c304 = arith.constant 304 : index
    %c0_67 = arith.constant 0 : index
    %123 = vector.load %arg7[%c304, %c0_67] : memref<432x512xf32, #tpu.memory_space<vmem>>, vector<16x512xf32>
    tpu.vector_store %arg7[%c304, %c0_67], %122 {strides = array<i32>} : memref<432x512xf32, #tpu.memory_space<vmem>>, vector<16x512xf32>,
    %c455_i32 = arith.constant 455 : i32
    %124 = tpu.dynamic_rotate %4 by %c455_i32 dim 1 : vector<16x512xf32>, i32 -> vector<16x512xf32>
    %c20 = arith.constant 20 : index
    %c0_68 = arith.constant 0 : index
    %c0_69 = arith.constant 0 : index
    %125 = vector.load %arg3[%c20, %c0_68, %c0_69] : memref<27x1x512xf32, #tpu.memory_space<vmem>>, vector<1x1x512xf32>
    %126 = vector.shape_cast %125 : vector<1x1x512xf32> to vector<1x512xf32>
    %127 = vector.broadcast %126 : vector<1x512xf32> to vector<16x512xf32>
    %128 = arith.mulf %124, %127 : vector<16x512xf32>
    %c320 = arith.constant 320 : index
    %c0_70 = arith.constant 0 : index
    %129 = vector.load %arg7[%c320, %c0_70] : memref<432x512xf32, #tpu.memory_space<vmem>>, vector<16x512xf32>
    tpu.vector_store %arg7[%c320, %c0_70], %128 {strides = array<i32>} : memref<432x512xf32, #tpu.memory_space<vmem>>, vector<16x512xf32>,
    %c449_i32 = arith.constant 449 : i32
    %130 = tpu.dynamic_rotate %4 by %c449_i32 dim 1 : vector<16x512xf32>, i32 -> vector<16x512xf32>
    %c21 = arith.constant 21 : index
    %c0_71 = arith.constant 0 : index
    %c0_72 = arith.constant 0 : index
    %131 = vector.load %arg3[%c21, %c0_71, %c0_72] : memref<27x1x512xf32, #tpu.memory_space<vmem>>, vector<1x1x512xf32>
    %132 = vector.shape_cast %131 : vector<1x1x512xf32> to vector<1x512xf32>
    %133 = vector.broadcast %132 : vector<1x512xf32> to vector<16x512xf32>
    %134 = arith.mulf %130, %133 : vector<16x512xf32>
    %c336 = arith.constant 336 : index
    %c0_73 = arith.constant 0 : index
    %135 = vector.load %arg7[%c336, %c0_73] : memref<432x512xf32, #tpu.memory_space<vmem>>, vector<16x512xf32>
    tpu.vector_store %arg7[%c336, %c0_73], %134 {strides = array<i32>} : memref<432x512xf32, #tpu.memory_space<vmem>>, vector<16x512xf32>,
    %c448_i32 = arith.constant 448 : i32
    %136 = tpu.dynamic_rotate %4 by %c448_i32 dim 1 : vector<16x512xf32>, i32 -> vector<16x512xf32>
    %c22 = arith.constant 22 : index
    %c0_74 = arith.constant 0 : index
    %c0_75 = arith.constant 0 : index
    %137 = vector.load %arg3[%c22, %c0_74, %c0_75] : memref<27x1x512xf32, #tpu.memory_space<vmem>>, vector<1x1x512xf32>
    %138 = vector.shape_cast %137 : vector<1x1x512xf32> to vector<1x512xf32>
    %139 = vector.broadcast %138 : vector<1x512xf32> to vector<16x512xf32>
    %140 = arith.mulf %136, %139 : vector<16x512xf32>
    %c352 = arith.constant 352 : index
    %c0_76 = arith.constant 0 : index
    %141 = vector.load %arg7[%c352, %c0_76] : memref<432x512xf32, #tpu.memory_space<vmem>>, vector<16x512xf32>
    tpu.vector_store %arg7[%c352, %c0_76], %140 {strides = array<i32>} : memref<432x512xf32, #tpu.memory_space<vmem>>, vector<16x512xf32>,
    %c447_i32 = arith.constant 447 : i32
    %142 = tpu.dynamic_rotate %4 by %c447_i32 dim 1 : vector<16x512xf32>, i32 -> vector<16x512xf32>
    %c23 = arith.constant 23 : index
    %c0_77 = arith.constant 0 : index
    %c0_78 = arith.constant 0 : index
    %143 = vector.load %arg3[%c23, %c0_77, %c0_78] : memref<27x1x512xf32, #tpu.memory_space<vmem>>, vector<1x1x512xf32>
    %144 = vector.shape_cast %143 : vector<1x1x512xf32> to vector<1x512xf32>
    %145 = vector.broadcast %144 : vector<1x512xf32> to vector<16x512xf32>
    %146 = arith.mulf %142, %145 : vector<16x512xf32>
    %c368 = arith.constant 368 : index
    %c0_79 = arith.constant 0 : index
    %147 = vector.load %arg7[%c368, %c0_79] : memref<432x512xf32, #tpu.memory_space<vmem>>, vector<16x512xf32>
    tpu.vector_store %arg7[%c368, %c0_79], %146 {strides = array<i32>} : memref<432x512xf32, #tpu.memory_space<vmem>>, vector<16x512xf32>,
    %c441_i32 = arith.constant 441 : i32
    %148 = tpu.dynamic_rotate %4 by %c441_i32 dim 1 : vector<16x512xf32>, i32 -> vector<16x512xf32>
    %c24 = arith.constant 24 : index
    %c0_80 = arith.constant 0 : index
    %c0_81 = arith.constant 0 : index
    %149 = vector.load %arg3[%c24, %c0_80, %c0_81] : memref<27x1x512xf32, #tpu.memory_space<vmem>>, vector<1x1x512xf32>
    %150 = vector.shape_cast %149 : vector<1x1x512xf32> to vector<1x512xf32>
    %151 = vector.broadcast %150 : vector<1x512xf32> to vector<16x512xf32>
    %152 = arith.mulf %148, %151 : vector<16x512xf32>
    %c384 = arith.constant 384 : index
    %c0_82 = arith.constant 0 : index
    %153 = vector.load %arg7[%c384, %c0_82] : memref<432x512xf32, #tpu.memory_space<vmem>>, vector<16x512xf32>
    tpu.vector_store %arg7[%c384, %c0_82], %152 {strides = array<i32>} : memref<432x512xf32, #tpu.memory_space<vmem>>, vector<16x512xf32>,
    %c440_i32 = arith.constant 440 : i32
    %154 = tpu.dynamic_rotate %4 by %c440_i32 dim 1 : vector<16x512xf32>, i32 -> vector<16x512xf32>
    %c25 = arith.constant 25 : index
    %c0_83 = arith.constant 0 : index
    %c0_84 = arith.constant 0 : index
    %155 = vector.load %arg3[%c25, %c0_83, %c0_84] : memref<27x1x512xf32, #tpu.memory_space<vmem>>, vector<1x1x512xf32>
    %156 = vector.shape_cast %155 : vector<1x1x512xf32> to vector<1x512xf32>
    %157 = vector.broadcast %156 : vector<1x512xf32> to vector<16x512xf32>
    %158 = arith.mulf %154, %157 : vector<16x512xf32>
    %c400 = arith.constant 400 : index
    %c0_85 = arith.constant 0 : index
    %159 = vector.load %arg7[%c400, %c0_85] : memref<432x512xf32, #tpu.memory_space<vmem>>, vector<16x512xf32>
    tpu.vector_store %arg7[%c400, %c0_85], %158 {strides = array<i32>} : memref<432x512xf32, #tpu.memory_space<vmem>>, vector<16x512xf32>,
    %c439_i32 = arith.constant 439 : i32
    %160 = tpu.dynamic_rotate %4 by %c439_i32 dim 1 : vector<16x512xf32>, i32 -> vector<16x512xf32>
    %c26 = arith.constant 26 : index
    %c0_86 = arith.constant 0 : index
    %c0_87 = arith.constant 0 : index
    %161 = vector.load %arg3[%c26, %c0_86, %c0_87] : memref<27x1x512xf32, #tpu.memory_space<vmem>>, vector<1x1x512xf32>
    %162 = vector.shape_cast %161 : vector<1x1x512xf32> to vector<1x512xf32>
    %163 = vector.broadcast %162 : vector<1x512xf32> to vector<16x512xf32>
    %164 = arith.mulf %160, %163 : vector<16x512xf32>
    %c416 = arith.constant 416 : index
    %c0_88 = arith.constant 0 : index
    %165 = vector.load %arg7[%c416, %c0_88] : memref<432x512xf32, #tpu.memory_space<vmem>>, vector<16x512xf32>
    tpu.vector_store %arg7[%c416, %c0_88], %164 {strides = array<i32>} : memref<432x512xf32, #tpu.memory_space<vmem>>, vector<16x512xf32>,
    %c0_89 = arith.constant 0 : index
    %c0_90 = arith.constant 0 : index
    %166 = vector.load %arg1[%c0_89, %c0_90] : memref<16x432xf32, #tpu.memory_space<vmem>>, vector<16x432xf32>
    %c0_91 = arith.constant 0 : index
    %c0_92 = arith.constant 0 : index
    %167 = vector.load %arg7[%c0_91, %c0_92] : memref<432x512xf32, #tpu.memory_space<vmem>>, vector<432x512xf32>
    %cst = arith.constant dense<0.000000e+00> : vector<16x512xf32>
    %168 = tpu.matmul %166, %167, %cst {dimension_numbers = #tpu.dot_dimension_numbers<[1], [0], [0], [1], [0, 0, 1, 1], [], []>} : vector<16x432xf32>, vector<432x512xf32>, vector<16x512xf32> -> vector<16x512xf32>
    %c0_93 = arith.constant 0 : index
    %c0_94 = arith.constant 0 : index
    %169 = vector.load %arg2[%c0_93, %c0_94] : memref<16x1xf32, #tpu.memory_space<vmem>>, vector<16x1xf32>
    %170 = vector.broadcast %169 : vector<16x1xf32> to vector<16x512xf32>
    %171 = arith.addf %168, %170 : vector<16x512xf32>
    %cst_95 = arith.constant 0.000000e+00 : f32
    %172 = vector.broadcast %cst_95 : f32 to vector<16x512xf32>
    %173 = arith.maximumf %171, %172 : vector<16x512xf32>
    %c0_96 = arith.constant 0 : index
    %c0_97 = arith.constant 0 : index
    %c0_98 = arith.constant 0 : index
    %174 = vector.load %arg6[%c0_96, %c0_97, %c0_98] : memref<1x16x512xf32, #tpu.memory_space<vmem>>, vector<1x16x512xf32>
    %175 = vector.shape_cast %174 : vector<1x16x512xf32> to vector<16x512xf32>
    %176 = vector.shape_cast %173 : vector<16x512xf32> to vector<1x16x512xf32>
    tpu.vector_store %arg6[%c0_96, %c0_97, %c0_98], %176 {strides = array<i32>} : memref<1x16x512xf32, #tpu.memory_space<vmem>>, vector<1x16x512xf32>,
    return
  }
  func.func @transform_0(%arg0: i32) -> (i32, i32) {
    %c0_i32 = arith.constant 0 : i32
    %c0_i32_0 = arith.constant 0 : i32
    %c0_i32_1 = arith.constant 0 : i32
    return %c0_i32, %c0_i32_0 : i32, i32
  }
  func.func @transform_1(%arg0: i32) -> (i32, i32) {
    %c0_i32 = arith.constant 0 : i32
    %c0_i32_0 = arith.constant 0 : i32
    %c0_i32_1 = arith.constant 0 : i32
    return %c0_i32, %c0_i32_0 : i32, i32
  }
  func.func @transform_2(%arg0: i32) -> (i32, i32, i32) {
    %c0_i32 = arith.constant 0 : i32
    %c0_i32_0 = arith.constant 0 : i32
    %c0_i32_1 = arith.constant 0 : i32
    %c0_i32_2 = arith.constant 0 : i32
    return %c0_i32, %c0_i32_0, %c0_i32_1 : i32, i32, i32
  }
  func.func @transform_3(%arg0: i32) -> (i32, i32, i32) {
    %c0_i32 = arith.constant 0 : i32
    %c0_i32_0 = arith.constant 0 : i32
    %c0_i32_1 = arith.constant 0 : i32
    return %arg0, %c0_i32, %c0_i32_0 : i32, i32, i32
  }
  func.func @transform_4(%arg0: i32) -> (i32, i32, i32) {
    %c0_i32 = arith.constant 0 : i32
    %c0_i32_0 = arith.constant 0 : i32
    %c0_i32_1 = arith.constant 0 : i32
    return %arg0, %c0_i32, %c0_i32_0 : i32, i32, i32
  }
  func.func @transform_5(%arg0: i32) -> (i32, i32, i32) {
    %c0_i32 = arith.constant 0 : i32
    %c0_i32_0 = arith.constant 0 : i32
    %c0_i32_1 = arith.constant 0 : i32
    return %arg0, %c0_i32, %c0_i32_0 : i32, i32, i32
  }
}

module attributes {stable_mosaic.version = 11 : i64} {
  func.func @_conv3_bn_relu_kernel(%arg0: i32, %arg1: memref<16x432xf32, #tpu.memory_space<vmem>>, %arg2: memref<16x1xf32, #tpu.memory_space<vmem>>, %arg3: memref<27x1x512xf32, #tpu.memory_space<vmem>>, %arg4: memref<1x16x512xf32, #tpu.memory_space<vmem>>, %arg5: memref<1x16x512xf32, #tpu.memory_space<vmem>>, %arg6: memref<432x512xf32, #tpu.memory_space<vmem>>) attributes {dimension_semantics = [#tpu.dimension_semantics<parallel>], iteration_bounds = array<i64: 2>, scalar_prefetch = 0 : i64, scratch_operands = 1 : i64, tpu.core_type = #tpu.core_type<tc>, window_params = [{pipeline_mode = #tpu.pipeline_mode<synchronous>, transform_indices = @transform_0, window_bounds = array<i64: 16, 432>}, {pipeline_mode = #tpu.pipeline_mode<synchronous>, transform_indices = @transform_1, window_bounds = array<i64: 16, 1>}, {pipeline_mode = #tpu.pipeline_mode<synchronous>, transform_indices = @transform_2, window_bounds = array<i64: 27, 1, 512>}, {transform_indices = @transform_3, window_bounds = array<i64: 1, 16, 512>}, {transform_indices = @transform_4, window_bounds = array<i64: 1, 16, 512>}]} {
    %c0 = arith.constant 0 : index
    %c0_0 = arith.constant 0 : index
    %c0_1 = arith.constant 0 : index
    %0 = vector.load %arg4[%c0, %c0_0, %c0_1] : memref<1x16x512xf32, #tpu.memory_space<vmem>>, vector<1x16x512xf32>
    %1 = vector.shape_cast %0 : vector<1x16x512xf32> to vector<16x512xf32>
    %c73_i32 = arith.constant 73 : i32
    %2 = tpu.dynamic_rotate %1 by %c73_i32 dim 1 : vector<16x512xf32>, i32 -> vector<16x512xf32>
    %c0_2 = arith.constant 0 : index
    %c0_3 = arith.constant 0 : index
    %c0_4 = arith.constant 0 : index
    %3 = vector.load %arg3[%c0_2, %c0_3, %c0_4] : memref<27x1x512xf32, #tpu.memory_space<vmem>>, vector<1x1x512xf32>
    %4 = vector.shape_cast %3 : vector<1x1x512xf32> to vector<1x512xf32>
    %5 = vector.broadcast %4 : vector<1x512xf32> to vector<16x512xf32>
    %6 = arith.mulf %2, %5 : vector<16x512xf32>
    %c0_5 = arith.constant 0 : index
    %c0_6 = arith.constant 0 : index
    %7 = vector.load %arg6[%c0_5, %c0_6] : memref<432x512xf32, #tpu.memory_space<vmem>>, vector<16x512xf32>
    tpu.vector_store %arg6[%c0_5, %c0_6], %6 {strides = array<i32>} : memref<432x512xf32, #tpu.memory_space<vmem>>, vector<16x512xf32>,
    %c72_i32 = arith.constant 72 : i32
    %8 = tpu.dynamic_rotate %1 by %c72_i32 dim 1 : vector<16x512xf32>, i32 -> vector<16x512xf32>
    %c1 = arith.constant 1 : index
    %c0_7 = arith.constant 0 : index
    %c0_8 = arith.constant 0 : index
    %9 = vector.load %arg3[%c1, %c0_7, %c0_8] : memref<27x1x512xf32, #tpu.memory_space<vmem>>, vector<1x1x512xf32>
    %10 = vector.shape_cast %9 : vector<1x1x512xf32> to vector<1x512xf32>
    %11 = vector.broadcast %10 : vector<1x512xf32> to vector<16x512xf32>
    %12 = arith.mulf %8, %11 : vector<16x512xf32>
    %c16 = arith.constant 16 : index
    %c0_9 = arith.constant 0 : index
    %13 = vector.load %arg6[%c16, %c0_9] : memref<432x512xf32, #tpu.memory_space<vmem>>, vector<16x512xf32>
    tpu.vector_store %arg6[%c16, %c0_9], %12 {strides = array<i32>} : memref<432x512xf32, #tpu.memory_space<vmem>>, vector<16x512xf32>,
    %c71_i32 = arith.constant 71 : i32
    %14 = tpu.dynamic_rotate %1 by %c71_i32 dim 1 : vector<16x512xf32>, i32 -> vector<16x512xf32>
    %c2 = arith.constant 2 : index
    %c0_10 = arith.constant 0 : index
    %c0_11 = arith.constant 0 : index
    %15 = vector.load %arg3[%c2, %c0_10, %c0_11] : memref<27x1x512xf32, #tpu.memory_space<vmem>>, vector<1x1x512xf32>
    %16 = vector.shape_cast %15 : vector<1x1x512xf32> to vector<1x512xf32>
    %17 = vector.broadcast %16 : vector<1x512xf32> to vector<16x512xf32>
    %18 = arith.mulf %14, %17 : vector<16x512xf32>
    %c32 = arith.constant 32 : index
    %c0_12 = arith.constant 0 : index
    %19 = vector.load %arg6[%c32, %c0_12] : memref<432x512xf32, #tpu.memory_space<vmem>>, vector<16x512xf32>
    tpu.vector_store %arg6[%c32, %c0_12], %18 {strides = array<i32>} : memref<432x512xf32, #tpu.memory_space<vmem>>, vector<16x512xf32>,
    %c65_i32 = arith.constant 65 : i32
    %20 = tpu.dynamic_rotate %1 by %c65_i32 dim 1 : vector<16x512xf32>, i32 -> vector<16x512xf32>
    %c3 = arith.constant 3 : index
    %c0_13 = arith.constant 0 : index
    %c0_14 = arith.constant 0 : index
    %21 = vector.load %arg3[%c3, %c0_13, %c0_14] : memref<27x1x512xf32, #tpu.memory_space<vmem>>, vector<1x1x512xf32>
    %22 = vector.shape_cast %21 : vector<1x1x512xf32> to vector<1x512xf32>
    %23 = vector.broadcast %22 : vector<1x512xf32> to vector<16x512xf32>
    %24 = arith.mulf %20, %23 : vector<16x512xf32>
    %c48 = arith.constant 48 : index
    %c0_15 = arith.constant 0 : index
    %25 = vector.load %arg6[%c48, %c0_15] : memref<432x512xf32, #tpu.memory_space<vmem>>, vector<16x512xf32>
    tpu.vector_store %arg6[%c48, %c0_15], %24 {strides = array<i32>} : memref<432x512xf32, #tpu.memory_space<vmem>>, vector<16x512xf32>,
    %c64_i32 = arith.constant 64 : i32
    %26 = tpu.dynamic_rotate %1 by %c64_i32 dim 1 : vector<16x512xf32>, i32 -> vector<16x512xf32>
    %c4 = arith.constant 4 : index
    %c0_16 = arith.constant 0 : index
    %c0_17 = arith.constant 0 : index
    %27 = vector.load %arg3[%c4, %c0_16, %c0_17] : memref<27x1x512xf32, #tpu.memory_space<vmem>>, vector<1x1x512xf32>
    %28 = vector.shape_cast %27 : vector<1x1x512xf32> to vector<1x512xf32>
    %29 = vector.broadcast %28 : vector<1x512xf32> to vector<16x512xf32>
    %30 = arith.mulf %26, %29 : vector<16x512xf32>
    %c64 = arith.constant 64 : index
    %c0_18 = arith.constant 0 : index
    %31 = vector.load %arg6[%c64, %c0_18] : memref<432x512xf32, #tpu.memory_space<vmem>>, vector<16x512xf32>
    tpu.vector_store %arg6[%c64, %c0_18], %30 {strides = array<i32>} : memref<432x512xf32, #tpu.memory_space<vmem>>, vector<16x512xf32>,
    %c63_i32 = arith.constant 63 : i32
    %32 = tpu.dynamic_rotate %1 by %c63_i32 dim 1 : vector<16x512xf32>, i32 -> vector<16x512xf32>
    %c5 = arith.constant 5 : index
    %c0_19 = arith.constant 0 : index
    %c0_20 = arith.constant 0 : index
    %33 = vector.load %arg3[%c5, %c0_19, %c0_20] : memref<27x1x512xf32, #tpu.memory_space<vmem>>, vector<1x1x512xf32>
    %34 = vector.shape_cast %33 : vector<1x1x512xf32> to vector<1x512xf32>
    %35 = vector.broadcast %34 : vector<1x512xf32> to vector<16x512xf32>
    %36 = arith.mulf %32, %35 : vector<16x512xf32>
    %c80 = arith.constant 80 : index
    %c0_21 = arith.constant 0 : index
    %37 = vector.load %arg6[%c80, %c0_21] : memref<432x512xf32, #tpu.memory_space<vmem>>, vector<16x512xf32>
    tpu.vector_store %arg6[%c80, %c0_21], %36 {strides = array<i32>} : memref<432x512xf32, #tpu.memory_space<vmem>>, vector<16x512xf32>,
    %c57_i32 = arith.constant 57 : i32
    %38 = tpu.dynamic_rotate %1 by %c57_i32 dim 1 : vector<16x512xf32>, i32 -> vector<16x512xf32>
    %c6 = arith.constant 6 : index
    %c0_22 = arith.constant 0 : index
    %c0_23 = arith.constant 0 : index
    %39 = vector.load %arg3[%c6, %c0_22, %c0_23] : memref<27x1x512xf32, #tpu.memory_space<vmem>>, vector<1x1x512xf32>
    %40 = vector.shape_cast %39 : vector<1x1x512xf32> to vector<1x512xf32>
    %41 = vector.broadcast %40 : vector<1x512xf32> to vector<16x512xf32>
    %42 = arith.mulf %38, %41 : vector<16x512xf32>
    %c96 = arith.constant 96 : index
    %c0_24 = arith.constant 0 : index
    %43 = vector.load %arg6[%c96, %c0_24] : memref<432x512xf32, #tpu.memory_space<vmem>>, vector<16x512xf32>
    tpu.vector_store %arg6[%c96, %c0_24], %42 {strides = array<i32>} : memref<432x512xf32, #tpu.memory_space<vmem>>, vector<16x512xf32>,
    %c56_i32 = arith.constant 56 : i32
    %44 = tpu.dynamic_rotate %1 by %c56_i32 dim 1 : vector<16x512xf32>, i32 -> vector<16x512xf32>
    %c7 = arith.constant 7 : index
    %c0_25 = arith.constant 0 : index
    %c0_26 = arith.constant 0 : index
    %45 = vector.load %arg3[%c7, %c0_25, %c0_26] : memref<27x1x512xf32, #tpu.memory_space<vmem>>, vector<1x1x512xf32>
    %46 = vector.shape_cast %45 : vector<1x1x512xf32> to vector<1x512xf32>
    %47 = vector.broadcast %46 : vector<1x512xf32> to vector<16x512xf32>
    %48 = arith.mulf %44, %47 : vector<16x512xf32>
    %c112 = arith.constant 112 : index
    %c0_27 = arith.constant 0 : index
    %49 = vector.load %arg6[%c112, %c0_27] : memref<432x512xf32, #tpu.memory_space<vmem>>, vector<16x512xf32>
    tpu.vector_store %arg6[%c112, %c0_27], %48 {strides = array<i32>} : memref<432x512xf32, #tpu.memory_space<vmem>>, vector<16x512xf32>,
    %c55_i32 = arith.constant 55 : i32
    %50 = tpu.dynamic_rotate %1 by %c55_i32 dim 1 : vector<16x512xf32>, i32 -> vector<16x512xf32>
    %c8 = arith.constant 8 : index
    %c0_28 = arith.constant 0 : index
    %c0_29 = arith.constant 0 : index
    %51 = vector.load %arg3[%c8, %c0_28, %c0_29] : memref<27x1x512xf32, #tpu.memory_space<vmem>>, vector<1x1x512xf32>
    %52 = vector.shape_cast %51 : vector<1x1x512xf32> to vector<1x512xf32>
    %53 = vector.broadcast %52 : vector<1x512xf32> to vector<16x512xf32>
    %54 = arith.mulf %50, %53 : vector<16x512xf32>
    %c128 = arith.constant 128 : index
    %c0_30 = arith.constant 0 : index
    %55 = vector.load %arg6[%c128, %c0_30] : memref<432x512xf32, #tpu.memory_space<vmem>>, vector<16x512xf32>
    tpu.vector_store %arg6[%c128, %c0_30], %54 {strides = array<i32>} : memref<432x512xf32, #tpu.memory_space<vmem>>, vector<16x512xf32>,
    %c9_i32 = arith.constant 9 : i32
    %56 = tpu.dynamic_rotate %1 by %c9_i32 dim 1 : vector<16x512xf32>, i32 -> vector<16x512xf32>
    %c9 = arith.constant 9 : index
    %c0_31 = arith.constant 0 : index
    %c0_32 = arith.constant 0 : index
    %57 = vector.load %arg3[%c9, %c0_31, %c0_32] : memref<27x1x512xf32, #tpu.memory_space<vmem>>, vector<1x1x512xf32>
    %58 = vector.shape_cast %57 : vector<1x1x512xf32> to vector<1x512xf32>
    %59 = vector.broadcast %58 : vector<1x512xf32> to vector<16x512xf32>
    %60 = arith.mulf %56, %59 : vector<16x512xf32>
    %c144 = arith.constant 144 : index
    %c0_33 = arith.constant 0 : index
    %61 = vector.load %arg6[%c144, %c0_33] : memref<432x512xf32, #tpu.memory_space<vmem>>, vector<16x512xf32>
    tpu.vector_store %arg6[%c144, %c0_33], %60 {strides = array<i32>} : memref<432x512xf32, #tpu.memory_space<vmem>>, vector<16x512xf32>,
    %c8_i32 = arith.constant 8 : i32
    %62 = tpu.dynamic_rotate %1 by %c8_i32 dim 1 : vector<16x512xf32>, i32 -> vector<16x512xf32>
    %c10 = arith.constant 10 : index
    %c0_34 = arith.constant 0 : index
    %c0_35 = arith.constant 0 : index
    %63 = vector.load %arg3[%c10, %c0_34, %c0_35] : memref<27x1x512xf32, #tpu.memory_space<vmem>>, vector<1x1x512xf32>
    %64 = vector.shape_cast %63 : vector<1x1x512xf32> to vector<1x512xf32>
    %65 = vector.broadcast %64 : vector<1x512xf32> to vector<16x512xf32>
    %66 = arith.mulf %62, %65 : vector<16x512xf32>
    %c160 = arith.constant 160 : index
    %c0_36 = arith.constant 0 : index
    %67 = vector.load %arg6[%c160, %c0_36] : memref<432x512xf32, #tpu.memory_space<vmem>>, vector<16x512xf32>
    tpu.vector_store %arg6[%c160, %c0_36], %66 {strides = array<i32>} : memref<432x512xf32, #tpu.memory_space<vmem>>, vector<16x512xf32>,
    %c7_i32 = arith.constant 7 : i32
    %68 = tpu.dynamic_rotate %1 by %c7_i32 dim 1 : vector<16x512xf32>, i32 -> vector<16x512xf32>
    %c11 = arith.constant 11 : index
    %c0_37 = arith.constant 0 : index
    %c0_38 = arith.constant 0 : index
    %69 = vector.load %arg3[%c11, %c0_37, %c0_38] : memref<27x1x512xf32, #tpu.memory_space<vmem>>, vector<1x1x512xf32>
    %70 = vector.shape_cast %69 : vector<1x1x512xf32> to vector<1x512xf32>
    %71 = vector.broadcast %70 : vector<1x512xf32> to vector<16x512xf32>
    %72 = arith.mulf %68, %71 : vector<16x512xf32>
    %c176 = arith.constant 176 : index
    %c0_39 = arith.constant 0 : index
    %73 = vector.load %arg6[%c176, %c0_39] : memref<432x512xf32, #tpu.memory_space<vmem>>, vector<16x512xf32>
    tpu.vector_store %arg6[%c176, %c0_39], %72 {strides = array<i32>} : memref<432x512xf32, #tpu.memory_space<vmem>>, vector<16x512xf32>,
    %c1_i32 = arith.constant 1 : i32
    %74 = tpu.dynamic_rotate %1 by %c1_i32 dim 1 : vector<16x512xf32>, i32 -> vector<16x512xf32>
    %c12 = arith.constant 12 : index
    %c0_40 = arith.constant 0 : index
    %c0_41 = arith.constant 0 : index
    %75 = vector.load %arg3[%c12, %c0_40, %c0_41] : memref<27x1x512xf32, #tpu.memory_space<vmem>>, vector<1x1x512xf32>
    %76 = vector.shape_cast %75 : vector<1x1x512xf32> to vector<1x512xf32>
    %77 = vector.broadcast %76 : vector<1x512xf32> to vector<16x512xf32>
    %78 = arith.mulf %74, %77 : vector<16x512xf32>
    %c192 = arith.constant 192 : index
    %c0_42 = arith.constant 0 : index
    %79 = vector.load %arg6[%c192, %c0_42] : memref<432x512xf32, #tpu.memory_space<vmem>>, vector<16x512xf32>
    tpu.vector_store %arg6[%c192, %c0_42], %78 {strides = array<i32>} : memref<432x512xf32, #tpu.memory_space<vmem>>, vector<16x512xf32>,
    %c13 = arith.constant 13 : index
    %c0_43 = arith.constant 0 : index
    %c0_44 = arith.constant 0 : index
    %80 = vector.load %arg3[%c13, %c0_43, %c0_44] : memref<27x1x512xf32, #tpu.memory_space<vmem>>, vector<1x1x512xf32>
    %81 = vector.shape_cast %80 : vector<1x1x512xf32> to vector<1x512xf32>
    %82 = vector.broadcast %81 : vector<1x512xf32> to vector<16x512xf32>
    %83 = arith.mulf %1, %82 : vector<16x512xf32>
    %c208 = arith.constant 208 : index
    %c0_45 = arith.constant 0 : index
    %84 = vector.load %arg6[%c208, %c0_45] : memref<432x512xf32, #tpu.memory_space<vmem>>, vector<16x512xf32>
    tpu.vector_store %arg6[%c208, %c0_45], %83 {strides = array<i32>} : memref<432x512xf32, #tpu.memory_space<vmem>>, vector<16x512xf32>,
    %c511_i32 = arith.constant 511 : i32
    %85 = tpu.dynamic_rotate %1 by %c511_i32 dim 1 : vector<16x512xf32>, i32 -> vector<16x512xf32>
    %c14 = arith.constant 14 : index
    %c0_46 = arith.constant 0 : index
    %c0_47 = arith.constant 0 : index
    %86 = vector.load %arg3[%c14, %c0_46, %c0_47] : memref<27x1x512xf32, #tpu.memory_space<vmem>>, vector<1x1x512xf32>
    %87 = vector.shape_cast %86 : vector<1x1x512xf32> to vector<1x512xf32>
    %88 = vector.broadcast %87 : vector<1x512xf32> to vector<16x512xf32>
    %89 = arith.mulf %85, %88 : vector<16x512xf32>
    %c224 = arith.constant 224 : index
    %c0_48 = arith.constant 0 : index
    %90 = vector.load %arg6[%c224, %c0_48] : memref<432x512xf32, #tpu.memory_space<vmem>>, vector<16x512xf32>
    tpu.vector_store %arg6[%c224, %c0_48], %89 {strides = array<i32>} : memref<432x512xf32, #tpu.memory_space<vmem>>, vector<16x512xf32>,
    %c505_i32 = arith.constant 505 : i32
    %91 = tpu.dynamic_rotate %1 by %c505_i32 dim 1 : vector<16x512xf32>, i32 -> vector<16x512xf32>
    %c15 = arith.constant 15 : index
    %c0_49 = arith.constant 0 : index
    %c0_50 = arith.constant 0 : index
    %92 = vector.load %arg3[%c15, %c0_49, %c0_50] : memref<27x1x512xf32, #tpu.memory_space<vmem>>, vector<1x1x512xf32>
    %93 = vector.shape_cast %92 : vector<1x1x512xf32> to vector<1x512xf32>
    %94 = vector.broadcast %93 : vector<1x512xf32> to vector<16x512xf32>
    %95 = arith.mulf %91, %94 : vector<16x512xf32>
    %c240 = arith.constant 240 : index
    %c0_51 = arith.constant 0 : index
    %96 = vector.load %arg6[%c240, %c0_51] : memref<432x512xf32, #tpu.memory_space<vmem>>, vector<16x512xf32>
    tpu.vector_store %arg6[%c240, %c0_51], %95 {strides = array<i32>} : memref<432x512xf32, #tpu.memory_space<vmem>>, vector<16x512xf32>,
    %c504_i32 = arith.constant 504 : i32
    %97 = tpu.dynamic_rotate %1 by %c504_i32 dim 1 : vector<16x512xf32>, i32 -> vector<16x512xf32>
    %c16_52 = arith.constant 16 : index
    %c0_53 = arith.constant 0 : index
    %c0_54 = arith.constant 0 : index
    %98 = vector.load %arg3[%c16_52, %c0_53, %c0_54] : memref<27x1x512xf32, #tpu.memory_space<vmem>>, vector<1x1x512xf32>
    %99 = vector.shape_cast %98 : vector<1x1x512xf32> to vector<1x512xf32>
    %100 = vector.broadcast %99 : vector<1x512xf32> to vector<16x512xf32>
    %101 = arith.mulf %97, %100 : vector<16x512xf32>
    %c256 = arith.constant 256 : index
    %c0_55 = arith.constant 0 : index
    %102 = vector.load %arg6[%c256, %c0_55] : memref<432x512xf32, #tpu.memory_space<vmem>>, vector<16x512xf32>
    tpu.vector_store %arg6[%c256, %c0_55], %101 {strides = array<i32>} : memref<432x512xf32, #tpu.memory_space<vmem>>, vector<16x512xf32>,
    %c503_i32 = arith.constant 503 : i32
    %103 = tpu.dynamic_rotate %1 by %c503_i32 dim 1 : vector<16x512xf32>, i32 -> vector<16x512xf32>
    %c17 = arith.constant 17 : index
    %c0_56 = arith.constant 0 : index
    %c0_57 = arith.constant 0 : index
    %104 = vector.load %arg3[%c17, %c0_56, %c0_57] : memref<27x1x512xf32, #tpu.memory_space<vmem>>, vector<1x1x512xf32>
    %105 = vector.shape_cast %104 : vector<1x1x512xf32> to vector<1x512xf32>
    %106 = vector.broadcast %105 : vector<1x512xf32> to vector<16x512xf32>
    %107 = arith.mulf %103, %106 : vector<16x512xf32>
    %c272 = arith.constant 272 : index
    %c0_58 = arith.constant 0 : index
    %108 = vector.load %arg6[%c272, %c0_58] : memref<432x512xf32, #tpu.memory_space<vmem>>, vector<16x512xf32>
    tpu.vector_store %arg6[%c272, %c0_58], %107 {strides = array<i32>} : memref<432x512xf32, #tpu.memory_space<vmem>>, vector<16x512xf32>,
    %c457_i32 = arith.constant 457 : i32
    %109 = tpu.dynamic_rotate %1 by %c457_i32 dim 1 : vector<16x512xf32>, i32 -> vector<16x512xf32>
    %c18 = arith.constant 18 : index
    %c0_59 = arith.constant 0 : index
    %c0_60 = arith.constant 0 : index
    %110 = vector.load %arg3[%c18, %c0_59, %c0_60] : memref<27x1x512xf32, #tpu.memory_space<vmem>>, vector<1x1x512xf32>
    %111 = vector.shape_cast %110 : vector<1x1x512xf32> to vector<1x512xf32>
    %112 = vector.broadcast %111 : vector<1x512xf32> to vector<16x512xf32>
    %113 = arith.mulf %109, %112 : vector<16x512xf32>
    %c288 = arith.constant 288 : index
    %c0_61 = arith.constant 0 : index
    %114 = vector.load %arg6[%c288, %c0_61] : memref<432x512xf32, #tpu.memory_space<vmem>>, vector<16x512xf32>
    tpu.vector_store %arg6[%c288, %c0_61], %113 {strides = array<i32>} : memref<432x512xf32, #tpu.memory_space<vmem>>, vector<16x512xf32>,
    %c456_i32 = arith.constant 456 : i32
    %115 = tpu.dynamic_rotate %1 by %c456_i32 dim 1 : vector<16x512xf32>, i32 -> vector<16x512xf32>
    %c19 = arith.constant 19 : index
    %c0_62 = arith.constant 0 : index
    %c0_63 = arith.constant 0 : index
    %116 = vector.load %arg3[%c19, %c0_62, %c0_63] : memref<27x1x512xf32, #tpu.memory_space<vmem>>, vector<1x1x512xf32>
    %117 = vector.shape_cast %116 : vector<1x1x512xf32> to vector<1x512xf32>
    %118 = vector.broadcast %117 : vector<1x512xf32> to vector<16x512xf32>
    %119 = arith.mulf %115, %118 : vector<16x512xf32>
    %c304 = arith.constant 304 : index
    %c0_64 = arith.constant 0 : index
    %120 = vector.load %arg6[%c304, %c0_64] : memref<432x512xf32, #tpu.memory_space<vmem>>, vector<16x512xf32>
    tpu.vector_store %arg6[%c304, %c0_64], %119 {strides = array<i32>} : memref<432x512xf32, #tpu.memory_space<vmem>>, vector<16x512xf32>,
    %c455_i32 = arith.constant 455 : i32
    %121 = tpu.dynamic_rotate %1 by %c455_i32 dim 1 : vector<16x512xf32>, i32 -> vector<16x512xf32>
    %c20 = arith.constant 20 : index
    %c0_65 = arith.constant 0 : index
    %c0_66 = arith.constant 0 : index
    %122 = vector.load %arg3[%c20, %c0_65, %c0_66] : memref<27x1x512xf32, #tpu.memory_space<vmem>>, vector<1x1x512xf32>
    %123 = vector.shape_cast %122 : vector<1x1x512xf32> to vector<1x512xf32>
    %124 = vector.broadcast %123 : vector<1x512xf32> to vector<16x512xf32>
    %125 = arith.mulf %121, %124 : vector<16x512xf32>
    %c320 = arith.constant 320 : index
    %c0_67 = arith.constant 0 : index
    %126 = vector.load %arg6[%c320, %c0_67] : memref<432x512xf32, #tpu.memory_space<vmem>>, vector<16x512xf32>
    tpu.vector_store %arg6[%c320, %c0_67], %125 {strides = array<i32>} : memref<432x512xf32, #tpu.memory_space<vmem>>, vector<16x512xf32>,
    %c449_i32 = arith.constant 449 : i32
    %127 = tpu.dynamic_rotate %1 by %c449_i32 dim 1 : vector<16x512xf32>, i32 -> vector<16x512xf32>
    %c21 = arith.constant 21 : index
    %c0_68 = arith.constant 0 : index
    %c0_69 = arith.constant 0 : index
    %128 = vector.load %arg3[%c21, %c0_68, %c0_69] : memref<27x1x512xf32, #tpu.memory_space<vmem>>, vector<1x1x512xf32>
    %129 = vector.shape_cast %128 : vector<1x1x512xf32> to vector<1x512xf32>
    %130 = vector.broadcast %129 : vector<1x512xf32> to vector<16x512xf32>
    %131 = arith.mulf %127, %130 : vector<16x512xf32>
    %c336 = arith.constant 336 : index
    %c0_70 = arith.constant 0 : index
    %132 = vector.load %arg6[%c336, %c0_70] : memref<432x512xf32, #tpu.memory_space<vmem>>, vector<16x512xf32>
    tpu.vector_store %arg6[%c336, %c0_70], %131 {strides = array<i32>} : memref<432x512xf32, #tpu.memory_space<vmem>>, vector<16x512xf32>,
    %c448_i32 = arith.constant 448 : i32
    %133 = tpu.dynamic_rotate %1 by %c448_i32 dim 1 : vector<16x512xf32>, i32 -> vector<16x512xf32>
    %c22 = arith.constant 22 : index
    %c0_71 = arith.constant 0 : index
    %c0_72 = arith.constant 0 : index
    %134 = vector.load %arg3[%c22, %c0_71, %c0_72] : memref<27x1x512xf32, #tpu.memory_space<vmem>>, vector<1x1x512xf32>
    %135 = vector.shape_cast %134 : vector<1x1x512xf32> to vector<1x512xf32>
    %136 = vector.broadcast %135 : vector<1x512xf32> to vector<16x512xf32>
    %137 = arith.mulf %133, %136 : vector<16x512xf32>
    %c352 = arith.constant 352 : index
    %c0_73 = arith.constant 0 : index
    %138 = vector.load %arg6[%c352, %c0_73] : memref<432x512xf32, #tpu.memory_space<vmem>>, vector<16x512xf32>
    tpu.vector_store %arg6[%c352, %c0_73], %137 {strides = array<i32>} : memref<432x512xf32, #tpu.memory_space<vmem>>, vector<16x512xf32>,
    %c447_i32 = arith.constant 447 : i32
    %139 = tpu.dynamic_rotate %1 by %c447_i32 dim 1 : vector<16x512xf32>, i32 -> vector<16x512xf32>
    %c23 = arith.constant 23 : index
    %c0_74 = arith.constant 0 : index
    %c0_75 = arith.constant 0 : index
    %140 = vector.load %arg3[%c23, %c0_74, %c0_75] : memref<27x1x512xf32, #tpu.memory_space<vmem>>, vector<1x1x512xf32>
    %141 = vector.shape_cast %140 : vector<1x1x512xf32> to vector<1x512xf32>
    %142 = vector.broadcast %141 : vector<1x512xf32> to vector<16x512xf32>
    %143 = arith.mulf %139, %142 : vector<16x512xf32>
    %c368 = arith.constant 368 : index
    %c0_76 = arith.constant 0 : index
    %144 = vector.load %arg6[%c368, %c0_76] : memref<432x512xf32, #tpu.memory_space<vmem>>, vector<16x512xf32>
    tpu.vector_store %arg6[%c368, %c0_76], %143 {strides = array<i32>} : memref<432x512xf32, #tpu.memory_space<vmem>>, vector<16x512xf32>,
    %c441_i32 = arith.constant 441 : i32
    %145 = tpu.dynamic_rotate %1 by %c441_i32 dim 1 : vector<16x512xf32>, i32 -> vector<16x512xf32>
    %c24 = arith.constant 24 : index
    %c0_77 = arith.constant 0 : index
    %c0_78 = arith.constant 0 : index
    %146 = vector.load %arg3[%c24, %c0_77, %c0_78] : memref<27x1x512xf32, #tpu.memory_space<vmem>>, vector<1x1x512xf32>
    %147 = vector.shape_cast %146 : vector<1x1x512xf32> to vector<1x512xf32>
    %148 = vector.broadcast %147 : vector<1x512xf32> to vector<16x512xf32>
    %149 = arith.mulf %145, %148 : vector<16x512xf32>
    %c384 = arith.constant 384 : index
    %c0_79 = arith.constant 0 : index
    %150 = vector.load %arg6[%c384, %c0_79] : memref<432x512xf32, #tpu.memory_space<vmem>>, vector<16x512xf32>
    tpu.vector_store %arg6[%c384, %c0_79], %149 {strides = array<i32>} : memref<432x512xf32, #tpu.memory_space<vmem>>, vector<16x512xf32>,
    %c440_i32 = arith.constant 440 : i32
    %151 = tpu.dynamic_rotate %1 by %c440_i32 dim 1 : vector<16x512xf32>, i32 -> vector<16x512xf32>
    %c25 = arith.constant 25 : index
    %c0_80 = arith.constant 0 : index
    %c0_81 = arith.constant 0 : index
    %152 = vector.load %arg3[%c25, %c0_80, %c0_81] : memref<27x1x512xf32, #tpu.memory_space<vmem>>, vector<1x1x512xf32>
    %153 = vector.shape_cast %152 : vector<1x1x512xf32> to vector<1x512xf32>
    %154 = vector.broadcast %153 : vector<1x512xf32> to vector<16x512xf32>
    %155 = arith.mulf %151, %154 : vector<16x512xf32>
    %c400 = arith.constant 400 : index
    %c0_82 = arith.constant 0 : index
    %156 = vector.load %arg6[%c400, %c0_82] : memref<432x512xf32, #tpu.memory_space<vmem>>, vector<16x512xf32>
    tpu.vector_store %arg6[%c400, %c0_82], %155 {strides = array<i32>} : memref<432x512xf32, #tpu.memory_space<vmem>>, vector<16x512xf32>,
    %c439_i32 = arith.constant 439 : i32
    %157 = tpu.dynamic_rotate %1 by %c439_i32 dim 1 : vector<16x512xf32>, i32 -> vector<16x512xf32>
    %c26 = arith.constant 26 : index
    %c0_83 = arith.constant 0 : index
    %c0_84 = arith.constant 0 : index
    %158 = vector.load %arg3[%c26, %c0_83, %c0_84] : memref<27x1x512xf32, #tpu.memory_space<vmem>>, vector<1x1x512xf32>
    %159 = vector.shape_cast %158 : vector<1x1x512xf32> to vector<1x512xf32>
    %160 = vector.broadcast %159 : vector<1x512xf32> to vector<16x512xf32>
    %161 = arith.mulf %157, %160 : vector<16x512xf32>
    %c416 = arith.constant 416 : index
    %c0_85 = arith.constant 0 : index
    %162 = vector.load %arg6[%c416, %c0_85] : memref<432x512xf32, #tpu.memory_space<vmem>>, vector<16x512xf32>
    tpu.vector_store %arg6[%c416, %c0_85], %161 {strides = array<i32>} : memref<432x512xf32, #tpu.memory_space<vmem>>, vector<16x512xf32>,
    %c0_86 = arith.constant 0 : index
    %c0_87 = arith.constant 0 : index
    %163 = vector.load %arg1[%c0_86, %c0_87] : memref<16x432xf32, #tpu.memory_space<vmem>>, vector<16x432xf32>
    %c0_88 = arith.constant 0 : index
    %c0_89 = arith.constant 0 : index
    %164 = vector.load %arg6[%c0_88, %c0_89] : memref<432x512xf32, #tpu.memory_space<vmem>>, vector<432x512xf32>
    %cst = arith.constant dense<0.000000e+00> : vector<16x512xf32>
    %165 = tpu.matmul %163, %164, %cst {dimension_numbers = #tpu.dot_dimension_numbers<[1], [0], [0], [1], [0, 0, 1, 1], [], []>} : vector<16x432xf32>, vector<432x512xf32>, vector<16x512xf32> -> vector<16x512xf32>
    %c0_90 = arith.constant 0 : index
    %c0_91 = arith.constant 0 : index
    %166 = vector.load %arg2[%c0_90, %c0_91] : memref<16x1xf32, #tpu.memory_space<vmem>>, vector<16x1xf32>
    %167 = vector.broadcast %166 : vector<16x1xf32> to vector<16x512xf32>
    %168 = arith.addf %165, %167 : vector<16x512xf32>
    %cst_92 = arith.constant 0.000000e+00 : f32
    %169 = vector.broadcast %cst_92 : f32 to vector<16x512xf32>
    %170 = arith.maximumf %168, %169 : vector<16x512xf32>
    %c0_93 = arith.constant 0 : index
    %c0_94 = arith.constant 0 : index
    %c0_95 = arith.constant 0 : index
    %171 = vector.load %arg5[%c0_93, %c0_94, %c0_95] : memref<1x16x512xf32, #tpu.memory_space<vmem>>, vector<1x16x512xf32>
    %172 = vector.shape_cast %171 : vector<1x16x512xf32> to vector<16x512xf32>
    %173 = vector.shape_cast %170 : vector<16x512xf32> to vector<1x16x512xf32>
    tpu.vector_store %arg5[%c0_93, %c0_94, %c0_95], %173 {strides = array<i32>} : memref<1x16x512xf32, #tpu.memory_space<vmem>>, vector<1x16x512xf32>,
    return
  }
  func.func @transform_0(%arg0: i32) -> (i32, i32) {
    %c0_i32 = arith.constant 0 : i32
    %c0_i32_0 = arith.constant 0 : i32
    %c0_i32_1 = arith.constant 0 : i32
    return %c0_i32, %c0_i32_0 : i32, i32
  }
  func.func @transform_1(%arg0: i32) -> (i32, i32) {
    %c0_i32 = arith.constant 0 : i32
    %c0_i32_0 = arith.constant 0 : i32
    %c0_i32_1 = arith.constant 0 : i32
    return %c0_i32, %c0_i32_0 : i32, i32
  }
  func.func @transform_2(%arg0: i32) -> (i32, i32, i32) {
    %c0_i32 = arith.constant 0 : i32
    %c0_i32_0 = arith.constant 0 : i32
    %c0_i32_1 = arith.constant 0 : i32
    %c0_i32_2 = arith.constant 0 : i32
    return %c0_i32, %c0_i32_0, %c0_i32_1 : i32, i32, i32
  }
  func.func @transform_3(%arg0: i32) -> (i32, i32, i32) {
    %c0_i32 = arith.constant 0 : i32
    %c0_i32_0 = arith.constant 0 : i32
    %c0_i32_1 = arith.constant 0 : i32
    return %arg0, %c0_i32, %c0_i32_0 : i32, i32, i32
  }
  func.func @transform_4(%arg0: i32) -> (i32, i32, i32) {
    %c0_i32 = arith.constant 0 : i32
    %c0_i32_0 = arith.constant 0 : i32
    %c0_i32_1 = arith.constant 0 : i32
    return %arg0, %c0_i32, %c0_i32_0 : i32, i32, i32
  }
}

</mosaic_0001>

<bundles_post_ra>
// kernel: rcnn_block_forward.7
= control target key start
LH: loop header
LB: loop body
LE: loop exit
PB: predicated region body
PF: predicated region fallthrough
CT: control target
= control target key end

     0   :  { %s431_s12 = smov 0   ;;  %s472_s0 = inlined_call_operand.vmem [shape: f32[16,4], index: 0, kind: input, shape index: {}]   ;;  %s473_s1 = inlined_call_operand.vmem [shape: f32[16,1], index: 1, kind: input, shape index: {}]   ;;  %s474_s2 = inlined_call_operand.vmem [shape: f32[2,4,512], index: 2, kind: input, shape index: {}]   ;;  %s475_s3 = inlined_call_operand.vmem [shape: f32[2,16,512], index: 3, kind: output, shape index: {}]  }
   0x1 LB: > { %s367_s13 = sadd.s32 4294967295, %s408_s12   ;;  %p371_p0 = scmp.ge.s32.totalorder %s408_s12, 1  ;;  %s408_s12 = sphi %s431_s12, %s13_s12  }
   0x2   : > { %p137_p1 = scmp.lt.s32.totalorder %s408_s12, 3 }
   0x4   : > { %p138_p2 = pnand %p371_p0, %p137_p1 }
   0x5   : > { %p161_p3 = scmp.lt.s32.totalorder (!%p138_p2), %s367_s13, 1 }
   0x6   : > { %141 = sbr.rel (%p138_p2) target bundleno = 170 (0xaa), region = 32 }
   0xb   : > { %v410_v0 = vmov 0   ;;  %v175_v1 = vld [vmem:[%s473_s1] sm:$0xff]  ;;  %s477_s13 = smov (!%p161_p3, %s367_s13), 1  ;;  %v176_v4 = vld [vmem:[%s473_s1 + $0x8] sm:$0xff]  ;;  %vm203_vm0 = vcmask 1043456   ;;  %vm196_vm1 = vcmask 31744  }
   0xc   : > { %401 = vset.pattern.permute.xlu0 %v410_v0  ;;  %s390_s16 = sshll.u32 %s477_s13, 4  ;;  %v171_v5 = vld [vmem:[%s472_s0] sm:$0xff]  ;;  %v172_v10 = vld [vmem:[%s472_s0 + $0x8] sm:$0xff]  ;;  %s391_s26 = sshll.u32 %s477_s13, 6 }
   0xd   : > { %179 = vperm.xlu0 %401, %v175_v1   ;;  %s165_s19 = scalar_lea.vmem %s474_s2, %s390_s16  ;;  %s170_s29 = scalar_lea.vmem %s475_s3, %s391_s26 }
   0xe   : > { %v173_v2 = vld [vmem:[%s165_s19] sm:$0xff]  ;;  %v174_v3 = vld [vmem:[%s165_s19 + $0x8] sm:$0xff] }
   0xf   : > { %189 = vst [vmem:[#allocation1] ss:$2 sm:$0xff] %v173_v2 }
  0x10   : > { %191 = vst [vmem:[#allocation1 + $0x10] ss:$2 sm:$0xff] %v174_v3 }
  0x15   : > { %184 = vperm.xlu0 %401, %v176_v4  }
  0x16   : > { %v192_v6 = vld.sshfl [vmem:[#allocation1] sm:$0xff pattern:$0x75316420]  ;;  %v193_v7 = vld.sshfl [vmem:[#allocation1 + $0x8] sm:$0xff pattern:$0x75316420] }
  0x17   : > { %376 = vmatpush.msk.msra.mxu0 %vm203_vm0, %v192_v6  ;;  %379 = vmatpush.msk.msra.mxu1 %vm203_vm0, %v193_v7  ;;  %v194_v8 = vld.sshfl [vmem:[#allocation1 + $0x10] sm:$0xff pattern:$0x75316420]  ;;  %v195_v9 = vld.sshfl [vmem:[#allocation1 + $0x18] sm:$0xff pattern:$0x75316420] }
  0x18   : > { %382 = vmatpush.msk.msra.mxu2 %vm203_vm0, %v194_v8  ;;  %385 = vmatpush.msk.msra.mxu3 %vm203_vm0, %v195_v9 }
  0x19   : > { %377 = vmatmul.msk.f32.vlgmr.msra.gmra.mxu0 %vm196_vm1, %v171_v5  ;;  %380 = vmatmul.msk.f32.vlgmr.msra.gmra.mxu1 %vm196_vm1, %v171_v5 }
  0x1a   : > { %383 = vmatmul.msk.f32.vlgmr.msra.gmra.mxu2 %vm196_vm1, %v171_v5  ;;  %386 = vmatmul.msk.f32.vlgmr.msra.gmra.mxu3 %vm196_vm1, %v171_v5 }
  0x21   : > { %378 = vmatmul.msk.f32.gmra.mxu0 %vm196_vm1, %v172_v10  ;;  %381 = vmatmul.msk.f32.gmra.mxu1 %vm196_vm1, %v172_v10 }
  0x22   : > { %384 = vmatmul.msk.f32.gmra.mxu2 %vm196_vm1, %v172_v10  ;;  %387 = vmatmul.msk.f32.gmra.mxu3 %vm196_vm1, %v172_v10 }
  0x7f   : > { %v180_v11 = vpop.permute.xlu0 %179 }
  0x87   : > { %v185_v16 = vpop.permute.xlu0 %184 }
  0x96   : > { %v229_v12 = vpop.f32.mrf.mxu0  ;;  %v252_v13 = vpop.f32.mrf.mxu1 }
  0x97   : > { %v230_v14 = vadd.f32 %v229_v12, %v180_v11  ;;  %v253_v15 = vadd.f32 %v252_v13, %v180_v11 }
  0x99   : > { %304 = vst [vmem:[%s170_s29] sm:$0xff] %v230_v14 }
  0x9a   : > { %305 = vst [vmem:[%s170_s29 + $0x8] sm:$0xff] %v253_v15 }
  0x9d   : > { %v275_v17 = vpop.f32.mrf.mxu2  ;;  %v298_v18 = vpop.f32.mrf.mxu3 }
  0x9e   : > { %v276_v19 = vadd.f32 %v275_v17, %v180_v11  ;;  %v299_v20 = vadd.f32 %v298_v18, %v180_v11  ;;  %v232_v21 = vpop.f32.mrf.mxu0  ;;  %v255_v22 = vpop.f32.mrf.mxu1 }
  0x9f   : > { %v233_v23 = vadd.f32 %v232_v21, %v185_v16  ;;  %v256_v24 = vadd.f32 %v255_v22, %v185_v16 }
  0xa0   : > { %306 = vst [vmem:[%s170_s29 + $0x10] sm:$0xff] %v276_v19 }
  0xa1   : > { %307 = vst [vmem:[%s170_s29 + $0x18] sm:$0xff] %v299_v20 }
  0xa2   : > { %308 = vst [vmem:[%s170_s29 + $0x20] sm:$0xff] %v233_v23 }
  0xa3   : > { %309 = vst [vmem:[%s170_s29 + $0x28] sm:$0xff] %v256_v24 }
  0xa5   : > { %v278_v25 = vpop.f32.mrf.mxu2  ;;  %v301_v26 = vpop.f32.mrf.mxu3 }
  0xa6   : > { %v279_v27 = vadd.f32 %v278_v25, %v185_v16  ;;  %v302_v28 = vadd.f32 %v301_v26, %v185_v16 }
  0xa8   : > { %310 = vst [vmem:[%s170_s29 + $0x30] sm:$0xff] %v279_v27 }
  0xa9   : > { %311 = vst [vmem:[%s170_s29 + $0x38] sm:$0xff] %v302_v28 }
  0xaa PF: > { %s13_s12 = sadd.s32 1, %s408_s12  }
  0xab   : > { %p10_p4 = scmp.ge.s32.totalorder %s13_s12, 4  }
  0xad   :  { %12 = sbr.rel (!%p10_p4) target bundleno = 1 (0x1), region = 63 }

// kernel: rcnn_block_forward.9
= control target key start
LH: loop header
LB: loop body
LE: loop exit
PB: predicated region body
PF: predicated region fallthrough
CT: control target
= control target key end

     0   :  { %s2258_s18 = smov 0   ;;  %s3978_s0 = inlined_call_operand.vmem [shape: f32[16,432], index: 0, kind: input, shape index: {}]   ;;  %s3979_s1 = inlined_call_operand.vmem [shape: f32[16,1], index: 1, kind: input, shape index: {}]   ;;  %s3980_s2 = inlined_call_operand.vmem [shape: f32[27,1,512], index: 2, kind: input, shape index: {}]   ;;  %s3981_s3 = inlined_call_operand.vmem [shape: f32[2,16,512], index: 3, kind: input, shape index: {}]   ;;  %s3982_s4 = inlined_call_operand.vmem [shape: f32[2,16,512], index: 4, kind: input, shape index: {}]   ;;  %s3983_s5 = inlined_call_operand.vmem [shape: f32[2,16,512], index: 5, kind: output, shape index: {}]  }
   0x1 LB: > { %s2118_s19 = sadd.s32 4294967295, %s2208_s18   ;;  %p2122_p0 = scmp.ge.s32.totalorder %s2208_s18, 1  ;;  %s2208_s18 = sphi %s2258_s18, %s15_s18  }
   0x2   : > { %p197_p1 = scmp.lt.s32.totalorder %s2208_s18, 3 }
   0x4   : > { %p198_p2 = pnand %p2122_p0, %p197_p1 }
   0x6   : > { %201 = sbr.rel (%p198_p2) target bundleno = 673 (0x2a1), region = 40 }
   0xb   : > { %p230_p3 = scmp.lt.s32.totalorder %s2118_s19, 1  ;;  %s2210_s27 = smov 73   ;;  %v285_v26 = vlaneseq  ;;  %v2340_v29 = vld [vmem:[%s3980_s2] sm:$0xf]  ;;  %v2349_v31 = vld [vmem:[%s3980_s2 + $0x48] sm:$0xf] }
   0xc   : > { %s2211_s28 = smov 72   ;;  %s2212_s29 = smov 71   ;;  %v300_v30 = vperm.slane %v2340_v29, 2  ;;  %v1185_v33 = vperm.slane %v2349_v31, 1  ;;  %v2365_v39 = vld [vmem:[%s3980_s2 + $0x4c] sm:$0xf] }
   0xd   : > { %s4264_s19 = smov (!%p230_p3, %s2118_s19), 1  ;;  %s2213_s30 = smov 65   ;;  %v2334_v28 = vand.u32 127, %v285_v26  ;;  %v1214_v41 = vperm.slane %v2365_v39, 3  ;;  %v301_v51 = vperm.slane %v2340_v29, 3  ;;  %v1186_v52 = vperm.slane %v2349_v31, 2 }
   0xe   : > { %s2266_s20 = sshll.u32 %s4264_s19, 6  ;;  %s2214_s6 = smov 64   ;;  %v1187_v53 = vperm.slane %v2349_v31, 3  ;;  %vm1660_vm13 = vcmask 392192  }
   0xf   : > { %s234_s23 = scalar_lea.vmem %s3981_s3, %s2266_s20  ;;  %s239_s26 = scalar_lea.vmem %s3982_s4, %s2266_s20  ;;  %vm287_vm0 = vcmp.lt.s32.totalorder %v2334_v28, 73  ;;  %vm338_vm1 = vcmp.lt.s32.totalorder %v2334_v28, 72  ;;  %vm390_vm2 = vcmp.lt.s32.totalorder %v2334_v28, 71  ;;  %vm494_vm3 = vcmp.lt.s32.totalorder %v2334_v28, 64 }
  0x10   : > { %v247_v0 = vld [vmem:[%s234_s23 + $0x10] sm:$0xff]  ;;  %v246_v2 = vld [vmem:[%s234_s23 + $0x8] sm:$0xff]  ;;  %v245_v5 = vld [vmem:[%s234_s23] sm:$0xff]  ;;  %s2215_s7 = smov 63   ;;  %s2216_s14 = smov 57   ;;  %vm442_vm4 = vcmp.lt.s32.totalorder %v2334_v28, 65 }
  0x11   : > { %v255_v1 = vld [vmem:[%s239_s26 + $0x10] sm:$0xff]  ;;  %v254_v4 = vld [vmem:[%s239_s26 + $0x8] sm:$0xff]  ;;  %v253_v6 = vld [vmem:[%s239_s26] sm:$0xff]  ;;  %s2217_s15 = smov 121   ;;  %s2218_s22 = smov 127   ;;  %vm546_vm5 = vcmp.lt.s32.totalorder %v2334_v28, 63 }
  0x12   : > { %v2276_v3 = vadd.f32 %v255_v1, %v247_v0  ;;  %v2278_v7 = vadd.f32 %v254_v4, %v246_v2  ;;  %v2280_v8 = vadd.f32 %v253_v6, %v245_v5  ;;  %v251_v9 = vld [vmem:[%s234_s23 + $0x30] sm:$0xff]  ;;  %v250_v11 = vld [vmem:[%s234_s23 + $0x28] sm:$0xff]  ;;  %v249_v13 = vld [vmem:[%s234_s23 + $0x20] sm:$0xff]  ;;  %s2222_s9 = smov 7   ;;  %s2223_s16 = smov 8   ;;  %vm598_vm6 = vcmp.lt.s32.totalorder %v2334_v28, 57 }
  0x13   : > { %v259_v10 = vld [vmem:[%s239_s26 + $0x30] sm:$0xff]  ;;  %v258_v12 = vld [vmem:[%s239_s26 + $0x28] sm:$0xff]  ;;  %v257_v14 = vld [vmem:[%s239_s26 + $0x20] sm:$0xff]  ;;  %s2224_s21 = smov 119   ;;  %s2225_s24 = smov 9   ;;  %vm1041_vm7 = vcmp.lt.s32.totalorder %v2334_v28, 121 }
  0x14   : > { %277 = vrot.lane.b32.xlu2 %v2276_v3, %s2210_s27  ;;  %273 = vrot.lane.b32.xlu1 %v2278_v7, %s2210_s27  ;;  %v2285_v15 = vadd.f32 %v259_v10, %v251_v9  ;;  %v2287_v16 = vadd.f32 %v258_v12, %v250_v11  ;;  %v2289_v17 = vadd.f32 %v257_v14, %v249_v13  ;;  %v252_v18 = vld [vmem:[%s234_s23 + $0x38] sm:$0xff]  ;;  %v2450_v11 = vld [vmem:[%s3980_s2 + $0x50] sm:$0xf]  ;;  %s2226_s25 = smov 120   ;;  %vm650_vm8 = vcmp.lt.s32.totalorder %v2334_v28, 56  ;;  %s3962_s19 = scalar_lea.vmem %s3983_s5, %s2266_s20 }
  0x15   : > { %269 = vrot.lane.b32.xlu0 %v2280_v8, %s2210_s27  ;;  %v260_v19 = vld [vmem:[%s239_s26 + $0x38] sm:$0xff]  ;;  %v2457_v12 = vld [vmem:[%s3980_s2 + $0x4] sm:$0xf]  ;;  %v1241_v13 = vperm.slane %v2450_v11, 3  ;;  %vm989_vm9 = vcmp.lt.s32.totalorder %v2334_v28, 127  ;;  %vm702_vm10 = vcmp.lt.s32.totalorder %v2334_v28, 55 }
  0x16   : > { %v248_v20 = vld [vmem:[%s234_s23 + $0x18] sm:$0xff]  ;;  %v2294_v22 = vadd.f32 %v260_v19, %v252_v18  ;;  %v352_v14 = vperm.slane %v2457_v12, 2  ;;  %v353_v18 = vperm.slane %v2457_v12, 3  ;;  %v1213_v19 = vperm.slane %v2365_v39, 2  ;;  %s2219_s23 = smov 56  }
  0x17   : > { %v256_v21 = vld [vmem:[%s239_s26 + $0x18] sm:$0xff]  ;;  %vm910_vm11 = vcmp.lt.s32.totalorder %v2334_v28, 1  ;;  %vm858_vm12 = vcmp.lt.s32.totalorder %v2334_v28, 7  ;;  %vm806_vm14 = vcmp.lt.s32.totalorder %v2334_v28, 8  ;;  %vm1145_vm15 = vcmp.lt.s32.totalorder %v2334_v28, 119 }
  0x18   : > { %4037 = vst [vmem:[#allocation3_spill] sm:$0xff] %v2294_v22  ;;  %v2296_v23 = vadd.f32 %v256_v21, %v248_v20  ;;  %v1212_v21 = vperm.slane %v2365_v39, 1 }
  0x1a   : > { %4038 = vst [vmem:[#allocation4_spill] sm:$0xff] %v2296_v23 }
  0x1c   : > { %279 = vrot.lane.b32.xlu2 %v2285_v15, %s2210_s27  ;;  %275 = vrot.lane.b32.xlu1 %v2287_v16, %s2210_s27 }
  0x1d   : > { %271 = vrot.lane.b32.xlu0 %v2289_v17, %s2210_s27 }
  0x24   : > { %322 = vrot.lane.b32.xlu2 %v2280_v8, %s2211_s28  ;;  %283 = vrot.lane.b32.xlu1 %v2294_v22, %s2210_s27 }
  0x25   : > { %281 = vrot.lane.b32.xlu0 %v2296_v23, %s2210_s27 }
  0x2c   : > { %328 = vrot.lane.b32.xlu2 %v2287_v16, %s2211_s28  ;;  %326 = vrot.lane.b32.xlu1 %v2278_v7, %s2211_s28 }
  0x2d   : > { %324 = vrot.lane.b32.xlu0 %v2289_v17, %s2211_s28 }
  0x34   : > { %334 = vrot.lane.b32.xlu2 %v2296_v23, %s2211_s28  ;;  %332 = vrot.lane.b32.xlu1 %v2285_v15, %s2211_s28 }
  0x35   : > { %330 = vrot.lane.b32.xlu0 %v2276_v3, %s2211_s28 }
  0x3c   : > { %376 = vrot.lane.b32.xlu2 %v2289_v17, %s2212_s29  ;;  %374 = vrot.lane.b32.xlu1 %v2280_v8, %s2212_s29 }
  0x3d   : > { %336 = vrot.lane.b32.xlu0 %v2294_v22, %s2211_s28  ;;  %s2220_s28 = smov 1  }
  0x44   : > { %382 = vrot.lane.b32.xlu2 %v2276_v3, %s2212_s29  ;;  %380 = vrot.lane.b32.xlu1 %v2287_v16, %s2212_s29 }
  0x45   : > { %378 = vrot.lane.b32.xlu0 %v2278_v7, %s2212_s29 }
  0x4c   : > { %388 = vrot.lane.b32.xlu2 %v2294_v22, %s2212_s29  ;;  %386 = vrot.lane.b32.xlu1 %v2296_v23, %s2212_s29 }
  0x4d   : > { %384 = vrot.lane.b32.xlu0 %v2285_v15, %s2212_s29 }
  0x54   : > { %430 = vrot.lane.b32.xlu2 %v2278_v7, %s2213_s30  ;;  %428 = vrot.lane.b32.xlu1 %v2289_v17, %s2213_s30 }
  0x55   : > { %426 = vrot.lane.b32.xlu0 %v2280_v8, %s2213_s30 }
  0x5c   : > { %436 = vrot.lane.b32.xlu2 %v2285_v15, %s2213_s30  ;;  %434 = vrot.lane.b32.xlu1 %v2276_v3, %s2213_s30 }
  0x5d   : > { %432 = vrot.lane.b32.xlu0 %v2287_v16, %s2213_s30 }
  0x64   : > { %478 = vrot.lane.b32.xlu2 %v2280_v8, %s2214_s6  ;;  %440 = vrot.lane.b32.xlu1 %v2294_v22, %s2213_s30 }
  0x65   : > { %438 = vrot.lane.b32.xlu0 %v2296_v23, %s2213_s30 }
  0x6c   : > { %484 = vrot.lane.b32.xlu2 %v2287_v16, %s2214_s6  ;;  %482 = vrot.lane.b32.xlu1 %v2278_v7, %s2214_s6 }
  0x6d   : > { %480 = vrot.lane.b32.xlu0 %v2289_v17, %s2214_s6 }
  0x6e   : > { %v278_v24 = vpop.permute.xlu2 %277 }
  0x74   : > { %490 = vrot.lane.b32.xlu2 %v2296_v23, %s2214_s6  ;;  %488 = vrot.lane.b32.xlu1 %v2285_v15, %s2214_s6 }
  0x75   : > { %486 = vrot.lane.b32.xlu0 %v2276_v3, %s2214_s6 }
  0x76   : > { %v280_v25 = vpop.permute.xlu2 %279 }
  0x7c   : > { %532 = vrot.lane.b32.xlu2 %v2289_v17, %s2215_s7  ;;  %530 = vrot.lane.b32.xlu1 %v2280_v8, %s2215_s7 }
  0x7d   : > { %492 = vrot.lane.b32.xlu0 %v2294_v22, %s2214_s6  ;;  %s2221_s6 = smov 55  }
  0x7e   : > { %v323_v27 = vpop.permute.xlu2 %322 }
  0x84   : > { %538 = vrot.lane.b32.xlu2 %v2276_v3, %s2215_s7  ;;  %536 = vrot.lane.b32.xlu1 %v2287_v16, %s2215_s7 }
  0x85   : > { %534 = vrot.lane.b32.xlu0 %v2278_v7, %s2215_s7 }
  0x86   : > { %v2351_v32 = vpop.permute.xlu2 %328  ;;  %v274_v34 = vpop.permute.xlu1 %273 }
  0x87   : > { %v270_v35 = vpop.permute.xlu0 %269  ;;  %v290_v36 = vsel %vm287_vm0, %v274_v34, %v278_v24 }
  0x88   : > { %v2358_v37 = vsel %vm287_vm0, %v270_v35, %v274_v34  ;;  %v2360_v38 = vmul.f32 %v300_v30, %v290_v36  ;;  %v2367_v40 = vmul.f32 %v1185_v33, %v290_v36 }
  0x8a   : > { %4039 = vst [vmem:[#allocation5_spill] sm:$0xff] %v2360_v38 }
  0x8b   : > { %4040 = vst [vmem:[#allocation6_spill] sm:$0xff] %v2367_v40 }
  0x8c   : > { %544 = vrot.lane.b32.xlu2 %v2294_v22, %s2215_s7  ;;  %542 = vrot.lane.b32.xlu1 %v2296_v23, %s2215_s7 }
  0x8d   : > { %540 = vrot.lane.b32.xlu0 %v2285_v15, %s2215_s7 }
  0x8e   : > { %v335_v42 = vpop.permute.xlu2 %334  ;;  %v276_v43 = vpop.permute.xlu1 %275 }
  0x8f   : > { %v2376_v44 = vsel %vm338_vm1, %v335_v42, %v323_v27  ;;  %v272_v45 = vpop.permute.xlu0 %271  ;;  %v291_v46 = vsel %vm287_vm0, %v276_v43, %v280_v25 }
  0x90   : > { %v2383_v47 = vmul.f32 %v1214_v41, %v2376_v44  ;;  %v2387_v48 = vsel %vm287_vm0, %v272_v45, %v276_v43  ;;  %v2389_v49 = vmul.f32 %v300_v30, %v291_v46  ;;  %v2391_v50 = vmul.f32 %v1185_v33, %v291_v46 }
  0x92   : > { %4041 = vst [vmem:[#allocation7_spill] sm:$0xff] %v2383_v47 }
  0x93   : > { %4042 = vst [vmem:[#allocation8_spill] sm:$0xff] %v2389_v49 }
  0x94   : > { %4043 = vst [vmem:[#allocation9_spill] sm:$0xff] %v2391_v50  ;;  %586 = vrot.lane.b32.xlu2 %v2278_v7, %s2216_s14  ;;  %584 = vrot.lane.b32.xlu1 %v2289_v17, %s2216_s14 }
  0x95   : > { %582 = vrot.lane.b32.xlu0 %v2280_v8, %s2216_s14 }
  0x96   : > { %v2402_v54 = vpop.permute.xlu2 %376  ;;  %v284_v55 = vpop.permute.xlu1 %283 }
  0x97   : > { %v282_v56 = vpop.permute.xlu0 %281  ;;  %v289_v57 = vsel %vm287_vm0, %v280_v25, %v284_v55  ;;  %v2408_v58 = vsel %vm287_vm0, %v284_v55, %v272_v45 }
  0x98   : > { %v288_v59 = vsel %vm287_vm0, %v278_v24, %v282_v56  ;;  %v2414_v60 = vsel %vm287_vm0, %v282_v56, %v270_v35  ;;  %v2416_v61 = vmul.f32 %v301_v51, %v289_v57  ;;  %v2418_v62 = vmul.f32 %v1186_v52, %v289_v57 }
  0x99   : > { %4044 = vst [vmem:[#allocation10_spill] sm:$0xff] %v2414_v60  ;;  %v2421_v63 = vmul.f32 %v1187_v53, %v2408_v58  ;;  %v2423_v0 = vmul.f32 %v301_v51, %v288_v59  ;;  %v2425_v1 = vmul.f32 %v1186_v52, %v288_v59  ;;  %v2428_v2 = vmul.f32 %v1187_v53, %v2414_v60 }
  0x9a   : > { %4045 = vst [vmem:[#allocation11_spill] sm:$0xff] %v2416_v61  ;;  %vm754_vm0 = vcmp.lt.s32.totalorder %v2334_v28, 9 }
  0x9b   : > { %4046 = vst [vmem:[#allocation12_spill] sm:$0xff] %v2418_v62 }
  0x9c   : > { %4047 = vst [vmem:[#allocation13_spill] sm:$0xff] %v2421_v63  ;;  %1027 = vrot.lane.b32.xlu2 %v2289_v17, %s2217_s15  ;;  %590 = vrot.lane.b32.xlu1 %v2276_v3, %s2216_s14 }
  0x9d   : > { %4048 = vst [vmem:[#allocation14_spill] sm:$0xff] %v2423_v0  ;;  %588 = vrot.lane.b32.xlu0 %v2287_v16, %s2216_s14 }
  0x9e   : > { %4049 = vst [vmem:[#allocation15_spill] sm:$0xff] %v2425_v1  ;;  %v2436_v4 = vpop.permute.xlu2 %382  ;;  %v327_v5 = vpop.permute.xlu1 %326 }
  0x9f   : > { %4050 = vst [vmem:[#allocation16_spill] sm:$0xff] %v2428_v2  ;;  %v325_v6 = vpop.permute.xlu0 %324  ;;  %v2440_v9 = vsel %vm338_vm1, %v323_v27, %v327_v5 }
  0xa0   : > { %v2445_v10 = vsel %vm338_vm1, %v325_v6, %v2351_v32 }
  0xa4   : > { %1029 = vrot.lane.b32.xlu2 %v2278_v7, %s2217_s15  ;;  %1025 = vrot.lane.b32.xlu1 %v2280_v8, %s2217_s15 }
  0xa5   : > { %1031 = vrot.lane.b32.xlu0 %v2287_v16, %s2217_s15 }
  0xa6   : > { %v389_v20 = vpop.permute.xlu2 %388  ;;  %v333_v24 = vpop.permute.xlu1 %332 }
  0xa7   : > { %v2472_v25 = vsel %vm390_vm2, %v389_v20, %v2402_v54  ;;  %v331_v26 = vpop.permute.xlu0 %330  ;;  %v342_v27 = vsel %vm338_vm1, %v2351_v32, %v333_v24 }
  0xa8   : > { %v2478_v30 = vmul.f32 %v1241_v13, %v2472_v25  ;;  %v339_v33 = vsel %vm338_vm1, %v331_v26, %v335_v42  ;;  %v341_v34 = vsel %vm338_vm1, %v327_v5, %v331_v26  ;;  %v2484_v35 = vmul.f32 %v352_v14, %v342_v27  ;;  %v2524_v5 = vld [vmem:[%s3980_s2 + $0x8] sm:$0xf] }
  0xa9   : > { %v2486_v36 = vmul.f32 %v352_v14, %v341_v34  ;;  %v2488_v43 = vmul.f32 %v353_v18, %v339_v33  ;;  %v2490_v45 = vmul.f32 %v1213_v19, %v339_v33  ;;  %v2492_v46 = vmul.f32 %v1212_v21, %v342_v27 }
  0xaa   : > { %4051 = vst [vmem:[#allocation17_spill] sm:$0xff] %v2478_v30  ;;  %v2494_v32 = vmul.f32 %v1212_v21, %v341_v34  ;;  %v1240_v34 = vperm.slane %v2450_v11, 2 }
  0xab   : > { %4052 = vst [vmem:[#allocation18_spill] sm:$0xff] %v2484_v35 }
  0xac   : > { %4053 = vst [vmem:[#allocation19_spill] sm:$0xff] %v2486_v36  ;;  %975 = vrot.lane.b32.xlu2 %v2289_v17, %s2218_s22  ;;  %648 = vrot.lane.b32.xlu1 %v2294_v22, %s2219_s23 }
  0xad   : > { %4054 = vst [vmem:[#allocation20_spill] sm:$0xff] %v2488_v43  ;;  %636 = vrot.lane.b32.xlu0 %v2289_v17, %s2219_s23 }
  0xae   : > { %4055 = vst [vmem:[#allocation21_spill] sm:$0xff] %v2490_v45  ;;  %v2502_v42 = vpop.permute.xlu2 %430  ;;  %v375_v51 = vpop.permute.xlu1 %374 }
  0xaf   : > { %4056 = vst [vmem:[#allocation22_spill] sm:$0xff] %v2492_v46  ;;  %v337_v52 = vpop.permute.xlu0 %336 }
  0xb0   : > { %4057 = vst [vmem:[#allocation23_spill] sm:$0xff] %v2494_v32  ;;  %v340_v53 = vsel %vm338_vm1, %v333_v24, %v337_v52  ;;  %v2508_v55 = vsel %vm338_vm1, %v337_v52, %v325_v6  ;;  %v404_v6 = vperm.slane %v2524_v5, 2  ;;  %vm1093_vm1 = vcmp.lt.s32.totalorder %v2334_v28, 120 }
  0xb1   : > { %v2510_v56 = vmul.f32 %v353_v18, %v340_v53  ;;  %v2512_v57 = vmul.f32 %v1213_v19, %v340_v53  ;;  %v2517_v59 = vmul.f32 %v1214_v41, %v2508_v55  ;;  %v1239_v41 = vperm.slane %v2450_v11, 1 }
  0xb3   : > { %4058 = vst [vmem:[#allocation24_spill] sm:$0xff] %v2510_v56 }
  0xb4   : > { %4059 = vst [vmem:[#allocation25_spill] sm:$0xff] %v2512_v57  ;;  %646 = vrot.lane.b32.xlu2 %v2296_v23, %s2219_s23  ;;  %634 = vrot.lane.b32.xlu1 %v2280_v8, %s2219_s23 }
  0xb5   : > { %4060 = vst [vmem:[#allocation26_spill] sm:$0xff] %v2517_v59  ;;  %979 = vrot.lane.b32.xlu0 %v2287_v16, %s2218_s22 }
  0xb6   : > { %v2531_v14 = vpop.permute.xlu2 %436  ;;  %v381_v18 = vpop.permute.xlu1 %380 }
  0xb7   : > { %v379_v19 = vpop.permute.xlu0 %378  ;;  %v2537_v21 = vsel %vm390_vm2, %v2402_v54, %v381_v18  ;;  %v405_v54 = vperm.slane %v2524_v5, 3 }
  0xb8   : > { %v393_v24 = vsel %vm390_vm2, %v379_v19, %v2436_v4  ;;  %v2544_v26 = vsel %vm390_vm2, %v375_v51, %v379_v19 }
  0xb9   : > { %v2546_v27 = vmul.f32 %v404_v6, %v393_v24  ;;  %v2548_v33 = vmul.f32 %v1239_v41, %v393_v24 }
  0xbb   : > { %4061 = vst [vmem:[#allocation27_spill] sm:$0xff] %v2546_v27 }
  0xbc   : > { %4062 = vst [vmem:[#allocation28_spill] sm:$0xff] %v2548_v33  ;;  %596 = vrot.lane.b32.xlu2 %v2294_v22, %s2216_s14  ;;  %977 = vrot.lane.b32.xlu1 %v2278_v7, %s2218_s22 }
  0xbd   : > { %973 = vrot.lane.b32.xlu0 %v2280_v8, %s2218_s22 }
  0xbe   : > { %v2558_v52 = vpop.permute.xlu2 %478  ;;  %v387_v53 = vpop.permute.xlu1 %386 }
  0xbf   : > { %v385_v19 = vpop.permute.xlu0 %384  ;;  %v391_v24 = vsel %vm390_vm2, %v2436_v4, %v387_v53  ;;  %v2565_v2 = vsel %vm390_vm2, %v387_v53, %v375_v51 }
  0xc0   : > { %v392_v63 = vsel %vm390_vm2, %v385_v19, %v389_v20  ;;  %v394_v47 = vsel %vm390_vm2, %v381_v18, %v385_v19  ;;  %v2571_v59 = vmul.f32 %v405_v54, %v391_v24  ;;  %v2573_v30 = vmul.f32 %v1240_v34, %v391_v24 }
  0xc1   : > { %v2576_v1 = vmul.f32 %v1241_v13, %v2565_v2  ;;  %v2578_v62 = vmul.f32 %v404_v6, %v394_v47  ;;  %v2580_v4 = vmul.f32 %v405_v54, %v392_v63  ;;  %v2582_v45 = vmul.f32 %v1240_v34, %v392_v63  ;;  %v2608_v63 = vld [vmem:[%s3980_s2 + $0xc] sm:$0xf]  ;;  %v2620_v54 = vld [vmem:[%s3980_s2 + $0x54] sm:$0xf] }
  0xc2   : > { %4063 = vst [vmem:[#allocation29_spill] sm:$0xff] %v2571_v59  ;;  %v2584_v51 = vmul.f32 %v1239_v41, %v394_v47  ;;  %v2601_v47 = vld [vmem:[%s3980_s2 + $0x58] sm:$0xf]  ;;  %v456_v18 = vperm.slane %v2608_v63, 2  ;;  %v1266_v53 = vperm.slane %v2620_v54, 1 }
  0xc3   : > { %4064 = vst [vmem:[#allocation30_spill] sm:$0xff] %v2573_v30  ;;  %v4070_v57 = vperm.slane %v2601_v47, 3 }
  0xc4   : > { %4065 = vst [vmem:[#allocation31_spill] sm:$0xff] %v2576_v1  ;;  %638 = vrot.lane.b32.xlu2 %v2278_v7, %s2219_s23  ;;  %594 = vrot.lane.b32.xlu1 %v2296_v23, %s2216_s14 }
  0xc5   : > { %4066 = vst [vmem:[#allocation32_spill] sm:$0xff] %v2578_v62  ;;  %640 = vrot.lane.b32.xlu0 %v2287_v16, %s2219_s23 }
  0xc6   : > { %4067 = vst [vmem:[#allocation33_spill] sm:$0xff] %v2580_v4  ;;  %v2592_v20 = vpop.permute.xlu2 %484  ;;  %v2594_v13 = vpop.permute.xlu1 %428 }
  0xc7   : > { %4068 = vst [vmem:[#allocation34_spill] sm:$0xff] %v2582_v45  ;;  %v2596_v6 = vpop.permute.xlu0 %426 }
  0xc8   : > { %4069 = vst [vmem:[#allocation35_spill] sm:$0xff] %v2584_v51 }
  0xcc   : > { %896 = vrot.lane.b32.xlu2 %v2289_v17, %s2220_s28  ;;  %692 = vrot.lane.b32.xlu1 %v2287_v16, %s2221_s6 }
  0xcd   : > { %688 = vrot.lane.b32.xlu0 %v2289_v17, %s2221_s6 }
  0xce   : > { %v491_v34 = vpop.permute.xlu2 %490  ;;  %v435_v19 = vpop.permute.xlu1 %434 }
  0xcf   : > { %v2627_v24 = vsel %vm494_vm3, %v491_v34, %v2558_v52  ;;  %v2629_v41 = vpop.permute.xlu0 %432  ;;  %v445_v1 = vsel %vm442_vm4, %v2502_v42, %v435_v19 }
  0xd0   : > { %v2637_v30 = vmul.f32 %v4070_v57, %v2627_v24  ;;  %v446_v45 = vsel %vm442_vm4, %v2629_v41, %v2531_v14  ;;  %v2643_v0 = vmul.f32 %v456_v18, %v445_v1  ;;  %v2649_v56 = vmul.f32 %v1266_v53, %v445_v1 }
  0xd1   : > { %v2645_v61 = vmul.f32 %v456_v18, %v446_v45  ;;  %v2647_v43 = vmul.f32 %v1266_v53, %v446_v45  ;;  %v457_v57 = vperm.slane %v2608_v63, 3  ;;  %v1268_v18 = vperm.slane %v2620_v54, 3 }
  0xd2   : > { %4071 = vst [vmem:[#allocation36_spill] sm:$0xff] %v2637_v30  ;;  %v1267_v30 = vperm.slane %v2620_v54, 2 }
  0xd3   : > { %4072 = vst [vmem:[#allocation37_spill] sm:$0xff] %v2643_v0 }
  0xd4   : > { %4073 = vst [vmem:[#allocation38_spill] sm:$0xff] %v2645_v61  ;;  %690 = vrot.lane.b32.xlu2 %v2278_v7, %s2221_s6  ;;  %686 = vrot.lane.b32.xlu1 %v2280_v8, %s2221_s6 }
  0xd5   : > { %4074 = vst [vmem:[#allocation39_spill] sm:$0xff] %v2647_v43  ;;  %908 = vrot.lane.b32.xlu0 %v2294_v22, %s2220_s28 }
  0xd6   : > { %4075 = vst [vmem:[#allocation40_spill] sm:$0xff] %v2649_v56  ;;  %v2660_v59 = vpop.permute.xlu2 %532  ;;  %v441_v45 = vpop.permute.xlu1 %440 }
  0xd7   : > { %v439_v1 = vpop.permute.xlu0 %438  ;;  %v444_v53 = vsel %vm442_vm4, %v2531_v14, %v441_v45  ;;  %v2668_v4 = vsel %vm442_vm4, %v441_v45, %v2594_v13 }
  0xd8   : > { %v443_v40 = vsel %vm442_vm4, %v435_v19, %v439_v1  ;;  %v2675_v50 = vsel %vm442_vm4, %v439_v1, %v2596_v6  ;;  %v2677_v32 = vmul.f32 %v457_v57, %v444_v53  ;;  %v2679_v38 = vmul.f32 %v1267_v30, %v444_v53 }
  0xd9   : > { %v2682_v46 = vmul.f32 %v1268_v18, %v2668_v4  ;;  %v2684_v14 = vmul.f32 %v457_v57, %v443_v40  ;;  %v2686_v49 = vmul.f32 %v1267_v30, %v443_v40  ;;  %v2689_v45 = vmul.f32 %v1268_v18, %v2675_v50  ;;  %v2702_v40 = vld [vmem:[%s3980_s2 + $0x5c] sm:$0xf]  ;;  %v2709_v30 = vld [vmem:[%s3980_s2 + $0x10] sm:$0xf] }
  0xda   : > { %4076 = vst [vmem:[#allocation41_spill] sm:$0xff] %v2677_v32  ;;  %v508_v53 = vperm.slane %v2709_v30, 2  ;;  %v1293_v32 = vperm.slane %v2601_v47, 1  ;;  %v4082_v36 = vperm.slane %v2702_v40, 3 }
  0xdb   : > { %4077 = vst [vmem:[#allocation42_spill] sm:$0xff] %v2679_v38 }
  0xdc   : > { %4078 = vst [vmem:[#allocation43_spill] sm:$0xff] %v2682_v46  ;;  %844 = vrot.lane.b32.xlu2 %v2289_v17, %s2222_s9  ;;  %906 = vrot.lane.b32.xlu1 %v2296_v23, %s2220_s28  ;;  %v1294_v46 = vperm.slane %v2601_v47, 2 }
  0xdd   : > { %4079 = vst [vmem:[#allocation44_spill] sm:$0xff] %v2684_v14  ;;  %894 = vrot.lane.b32.xlu0 %v2280_v8, %s2220_s28 }
  0xde   : > { %4080 = vst [vmem:[#allocation45_spill] sm:$0xff] %v2686_v49  ;;  %v2697_v19 = vpop.permute.xlu2 %538  ;;  %v483_v1 = vpop.permute.xlu1 %482 }
  0xdf   : > { %4081 = vst [vmem:[#allocation46_spill] sm:$0xff] %v2689_v45  ;;  %v481_v57 = vpop.permute.xlu0 %480  ;;  %v509_v45 = vperm.slane %v2709_v30, 3 }
  0xe4   : > { %854 = vrot.lane.b32.xlu2 %v2296_v23, %s2222_s9  ;;  %842 = vrot.lane.b32.xlu1 %v2280_v8, %s2222_s9 }
  0xe5   : > { %856 = vrot.lane.b32.xlu0 %v2294_v22, %s2222_s9 }
  0xe6   : > { %v2720_v49 = vpop.permute.xlu2 %544  ;;  %v489_v38 = vpop.permute.xlu1 %488 }
  0xe7   : > { %v2726_v18 = vsel %vm546_vm5, %v2720_v49, %v2660_v59  ;;  %v487_v14 = vpop.permute.xlu0 %486  ;;  %v498_v33 = vsel %vm494_vm3, %v2592_v20, %v489_v38 }
  0xe8   : > { %v2735_v51 = vmul.f32 %v4082_v36, %v2726_v18  ;;  %v495_v35 = vsel %vm494_vm3, %v487_v14, %v491_v34  ;;  %v497_v56 = vsel %vm494_vm3, %v483_v1, %v487_v14  ;;  %v2741_v27 = vmul.f32 %v508_v53, %v498_v33 }
  0xe9   : > { %v2743_v43 = vmul.f32 %v508_v53, %v497_v56  ;;  %v2745_v62 = vmul.f32 %v509_v45, %v495_v35  ;;  %v2747_v0 = vmul.f32 %v1294_v46, %v495_v35  ;;  %v2749_v61 = vmul.f32 %v1293_v32, %v498_v33 }
  0xea   : > { %4083 = vst [vmem:[#allocation47_spill] sm:$0xff] %v2735_v51  ;;  %v2751_v60 = vmul.f32 %v1293_v32, %v497_v56  ;;  %v4092_v53 = vperm.slane %v2601_v47, 3 }
  0xeb   : > { %4084 = vst [vmem:[#allocation48_spill] sm:$0xff] %v2741_v27  ;;  %v2813_v27 = vsel %vm494_vm3, %v481_v57, %v2592_v20 }
  0xec   : > { %4085 = vst [vmem:[#allocation49_spill] sm:$0xff] %v2743_v43  ;;  %1035 = vrot.lane.b32.xlu2 %v2285_v15, %s2217_s15  ;;  %804 = vrot.lane.b32.xlu1 %v2294_v22, %s2223_s16 }
  0xed   : > { %4086 = vst [vmem:[#allocation50_spill] sm:$0xff] %v2745_v62  ;;  %792 = vrot.lane.b32.xlu0 %v2289_v17, %s2223_s16 }
  0xee   : > { %4087 = vst [vmem:[#allocation51_spill] sm:$0xff] %v2747_v0  ;;  %v2759_v36 = vpop.permute.xlu2 %586  ;;  %v531_v34 = vpop.permute.xlu1 %530 }
  0xef   : > { %4088 = vst [vmem:[#allocation52_spill] sm:$0xff] %v2749_v61  ;;  %v493_v14 = vpop.permute.xlu0 %492  ;;  %v1292_v61 = vperm.slane %v2601_v47, 0  ;;  %v2836_v47 = vsel %vm442_vm4, %v2596_v6, %v2502_v42 }
  0xf0   : > { %4089 = vst [vmem:[#allocation53_spill] sm:$0xff] %v2751_v60  ;;  %v496_v35 = vsel %vm494_vm3, %v489_v38, %v493_v14  ;;  %v2765_v32 = vsel %vm494_vm3, %v493_v14, %v481_v57  ;;  %v2781_v38 = vld [vmem:[%s3980_s2 + $0x14] sm:$0xf] }
  0xf1   : > { %v2767_v56 = vmul.f32 %v509_v45, %v496_v35  ;;  %v2769_v33 = vmul.f32 %v1294_v46, %v496_v35  ;;  %v2774_v51 = vmul.f32 %v4092_v53, %v2765_v32  ;;  %v560_v46 = vperm.slane %v2781_v38, 2 }
  0xf2   : > { %v1319_v45 = vperm.slane %v2702_v40, 0  ;;  %v1320_v35 = vperm.slane %v2702_v40, 1 }
  0xf3   : > { %4090 = vst [vmem:[#allocation54_spill] sm:$0xff] %v2767_v56 }
  0xf4   : > { %4091 = vst [vmem:[#allocation55_spill] sm:$0xff] %v2769_v33  ;;  %790 = vrot.lane.b32.xlu2 %v2280_v8, %s2223_s16  ;;  %1135 = vrot.lane.b32.xlu1 %v2287_v16, %s2224_s21 }
  0xf5   : > { %4093 = vst [vmem:[#allocation56_spill] sm:$0xff] %v2774_v51  ;;  %1131 = vrot.lane.b32.xlu0 %v2289_v17, %s2224_s21 }
  0xf6   : > { %v2789_v14 = vpop.permute.xlu2 %1027  ;;  %v537_v53 = vpop.permute.xlu1 %536 }
  0xf7   : > { %4094 = vst [vmem:[#allocation57_spill] sm:$0xff] %v2789_v14  ;;  %v535_v51 = vpop.permute.xlu0 %534  ;;  %v2798_v33 = vsel %vm546_vm5, %v2660_v59, %v537_v53  ;;  %v2818_v59 = vsel %vm494_vm3, %v2558_v52, %v483_v1  ;;  %v1304_v52 = vmul.f32 %v1292_v61, %v2813_v27  ;;  %v2842_v1 = vsel %vm442_vm4, %v2594_v13, %v2629_v41 }
  0xf8   : > { %v549_v0 = vsel %vm546_vm5, %v535_v51, %v2697_v19  ;;  %v2802_v62 = vsel %vm546_vm5, %v531_v34, %v535_v51  ;;  %v1331_v60 = vmul.f32 %v1319_v45, %v2798_v33  ;;  %4097 = vst [vmem:[#allocation60_spill] sm:$0xff] %v2818_v59 }
  0xf9   : > { %v2804_v56 = vmul.f32 %v560_v46, %v549_v0  ;;  %v2808_v43 = vmul.f32 %v1320_v35, %v549_v0  ;;  %v1327_v51 = vmul.f32 %v1319_v45, %v2802_v62  ;;  %v561_v0 = vperm.slane %v2781_v38, 3 }
  0xfa   : > { %1713 = vmatpush.msra.mxu2 %v1331_v60  ;;  %v1321_v60 = vperm.slane %v2702_v40, 2 }
  0xfb   : > { %4095 = vst [vmem:[#allocation58_spill] sm:$0xff] %v2804_v56 }
  0xfc   : > { %4096 = vst [vmem:[#allocation59_spill] sm:$0xff] %v2808_v43  ;;  %1129 = vrot.lane.b32.xlu2 %v2280_v8, %s2224_s21  ;;  %1033 = vrot.lane.b32.xlu1 %v2276_v3, %s2217_s15  ;;  %v1265_v43 = vperm.slane %v2620_v54, 0  ;;  %v4100_v54 = vperm.slane %v2702_v40, 3 }
  0xfd   : > { %802 = vrot.lane.b32.xlu0 %v2296_v23, %s2223_s16  ;;  %1714 = vmatpush.msra.mxu2 %v1327_v51  ;;  %v1300_v51 = vmul.f32 %v1292_v61, %v2818_v59 }
  0xfe   : > { %v2829_v20 = vpop.permute.xlu2 %1029  ;;  %v543_v57 = vpop.permute.xlu1 %542  ;;  %v1273_v40 = vmul.f32 %v1265_v43, %v2836_v47 }
  0xff   : > { %v541_v45 = vpop.permute.xlu0 %540  ;;  %v547_v56 = vsel %vm546_vm5, %v2697_v19, %v543_v57  ;;  %v2851_v42 = vsel %vm546_vm5, %v543_v57, %v531_v34  ;;  %1715 = vmatpush.msra.mxu2 %v1304_v52 }
 0x100   : > { %v548_v13 = vsel %vm546_vm5, %v541_v45, %v2720_v49  ;;  %v550_v6 = vsel %vm546_vm5, %v537_v53, %v541_v45  ;;  %v2858_v41 = vmul.f32 %v561_v0, %v547_v56  ;;  %v2860_v61 = vmul.f32 %v1321_v60, %v547_v56 }
 0x101   : > { %v2865_v19 = vmul.f32 %v4100_v54, %v2851_v42  ;;  %v2867_v59 = vmul.f32 %v560_v46, %v550_v6  ;;  %v2869_v34 = vmul.f32 %v561_v0, %v548_v13  ;;  %v2871_v52 = vmul.f32 %v1321_v60, %v548_v13  ;;  %1716 = vmatpush.msra.mxu2 %v1300_v51  ;;  %v2907_v51 = vld [vmem:[%s3980_s2 + $0x18] sm:$0xf] }
 0x102   : > { %4098 = vst [vmem:[#allocation61_spill] sm:$0xff] %v2858_v41  ;;  %v1277_v49 = vmul.f32 %v1265_v43, %v2842_v1  ;;  %v1238_v53 = vperm.slane %v2450_v11, 0  ;;  %v2875_v57 = vmul.f32 %v1320_v35, %v550_v6  ;;  %v1211_v46 = vperm.slane %v2365_v39, 0  ;;  %v2913_v6 = vld [vmem:[%s3980_s2 + $0x60] sm:$0xf] }
 0x103   : > { %4099 = vst [vmem:[#allocation62_spill] sm:$0xff] %v2860_v61  ;;  %v1184_v13 = vperm.slane %v2349_v31, 0  ;;  %v3987_v54 = vperm.slane %v2907_v51, 2 }
 0x104   : > { %4101 = vst [vmem:[#allocation63_spill] sm:$0xff] %v2865_v19  ;;  %1717 = vmatpush.msra.mxu2 %v1277_v49  ;;  %740 = vrot.lane.b32.xlu2 %v2289_v17, %s2225_s24  ;;  %v1250_v11 = vmul.f32 %v1238_v53, %v2537_v21  ;;  %v1246_v60 = vmul.f32 %v1238_v53, %v2544_v26  ;;  %v3986_v49 = vperm.slane %v2913_v6, 1  ;;  %v2944_v19 = vld [vmem:[%s3980_s2 + $0x3c] sm:$0xf] }
 0x105   : > { %4102 = vst [vmem:[#allocation64_spill] sm:$0xff] %v2867_v59  ;;  %644 = vrot.lane.b32.xlu1 %v2285_v15, %s2219_s23  ;;  %1133 = vrot.lane.b32.xlu0 %v2278_v7, %s2224_s21  ;;  %v1223_v45 = vmul.f32 %v1211_v46, %v2445_v10  ;;  %v1219_v39 = vmul.f32 %v1211_v46, %v2440_v9 }
 0x106   : > { %4103 = vst [vmem:[#allocation65_spill] sm:$0xff] %v2869_v34  ;;  %1718 = vmatpush.msra.mxu2 %v1273_v40  ;;  %v2885_v56 = vpop.permute.xlu2 %975  ;;  %v2889_v35 = vpop.permute.xlu1 %584  ;;  %v1196_v31 = vmul.f32 %v1184_v13, %v2387_v48 }
 0x107   : > { %4104 = vst [vmem:[#allocation66_spill] sm:$0xff] %v2871_v52  ;;  %v2891_v0 = vpop.permute.xlu0 %582 }
 0x108   : > { %4105 = vst [vmem:[#allocation67_spill] sm:$0xff] %v2875_v57  ;;  %1719 = vmatpush.msra.mxu2 %v1250_v11  ;;  %v2897_v43 = vsel %vm598_vm6, %v2891_v0, %v2759_v36  ;;  %v610_v57 = vperm.slane %v2907_v51, 0 }
 0x109   : > { %4106 = vst [vmem:[#allocation68_spill] sm:$0xff] %v2885_v56 }
 0x10a   : > { %1720 = vmatpush.msra.mxu2 %v1246_v60  ;;  %v1192_v60 = vmul.f32 %v1184_v13, %v2358_v37  ;;  %v1053_v13 = vperm.slane %v2944_v19, 0 }
 0x10c   : > { %1721 = vmatpush.msra.mxu2 %v1223_v45  ;;  %1079 = vrot.lane.b32.xlu2 %v2289_v17, %s2226_s25 }
 0x10d   : > { %983 = vrot.lane.b32.xlu1 %v2285_v15, %s2218_s22  ;;  %752 = vrot.lane.b32.xlu0 %v2294_v22, %s2225_s24 }
 0x10e   : > { %1722 = vmatpush.msra.mxu2 %v1219_v39  ;;  %v2921_v53 = vpop.permute.xlu2 %646  ;;  %v2924_v40 = vpop.permute.xlu1 %590 }
 0x10f   : > { %4107 = vst [vmem:[#allocation69_spill] sm:$0xff] %v2921_v53  ;;  %v2926_v11 = vpop.permute.xlu0 %588  ;;  %v601_v46 = vsel %vm598_vm6, %v2759_v36, %v2924_v40  ;;  %v3988_v36 = vperm.slane %v2913_v6, 3 }
 0x110   : > { %1723 = vmatpush.msra.mxu2 %v1196_v31  ;;  %v2935_v45 = vmul.f32 %v3987_v54, %v601_v46  ;;  %v2939_v39 = vmul.f32 %v3986_v49, %v601_v46 }
 0x112   : > { %4108 = vst [vmem:[#allocation70_spill] sm:$0xff] %v2935_v45  ;;  %1724 = vmatpush.msra.mxu2 %v1192_v60 }
 0x113   : > { %4109 = vst [vmem:[#allocation71_spill] sm:$0xff] %v2939_v39  ;;  %v2980_v39 = vld [vmem:[%s3980_s2 + $0x1c] sm:$0xf] }
 0x114   : > { %738 = vrot.lane.b32.xlu2 %v2280_v8, %s2225_s24 }
 0x115   : > { %642 = vrot.lane.b32.xlu1 %v2276_v3, %s2219_s23  ;;  %1083 = vrot.lane.b32.xlu0 %v2287_v16, %s2226_s25 }
 0x116   : > { %v2955_v31 = vpop.permute.xlu2 %596  ;;  %v2957_v46 = vpop.permute.xlu1 %1025 }
 0x117   : > { %4110 = vst [vmem:[#allocation72_spill] sm:$0xff] %v2955_v31  ;;  %v606_v60 = vsel %vm598_vm6, %v2955_v31, %v2889_v35  ;;  %v2963_v49 = vpop.permute.xlu0 %1031  ;;  %v1046_v54 = vsel %vm1041_vm7, %v2957_v46, %v2829_v20 }
 0x118   : > { %4111 = vst [vmem:[#allocation73_spill] sm:$0xff] %v2957_v46  ;;  %v2971_v61 = vmul.f32 %v3988_v36, %v606_v60  ;;  %v1047_v52 = vsel %vm1041_vm7, %v2789_v14, %v2963_v49  ;;  %v1061_v34 = vmul.f32 %v1053_v13, %v1046_v54  ;;  %v3006_v46 = vld [vmem:[%s3980_s2 + $0x38] sm:$0xf] }
 0x119   : > { %v1065_v41 = vmul.f32 %v1053_v13, %v1047_v52  ;;  %v662_v52 = vperm.slane %v2980_v39, 0  ;;  %4115 = vst [vmem:[#allocation77_spill] sm:$0xff] %v3006_v46 }
 0x11a   : > { %4112 = vst [vmem:[#allocation74_spill] sm:$0xff] %v2971_v61 }
 0x11b   : > { %1690 = vmatpush.msra.mxu1 %v1065_v41 }
 0x11c   : > { %1077 = vrot.lane.b32.xlu2 %v2280_v8, %s2226_s25 }
 0x11d   : > { %981 = vrot.lane.b32.xlu1 %v2276_v3, %s2218_s22  ;;  %750 = vrot.lane.b32.xlu0 %v2296_v23, %s2225_s24 }
 0x11e   : > { %1691 = vmatpush.msra.mxu1 %v1061_v34  ;;  %v2990_v54 = vpop.permute.xlu2 %638  ;;  %v2992_v13 = vpop.permute.xlu1 %648  ;;  %v1001_v34 = vperm.slane %v3006_v46, 0  ;;  %v3037_v46 = vld [vmem:[%s3980_s2 + $0x34] sm:$0xf] }
 0x11f   : > { %4113 = vst [vmem:[#allocation75_spill] sm:$0xff] %v2992_v13  ;;  %v2994_v36 = vpop.permute.xlu0 %636 }
 0x120   : > { %v3000_v41 = vsel %vm650_vm8, %v2992_v13, %v2994_v36  ;;  %4118 = vst [vmem:[#allocation80_spill] sm:$0xff] %v3037_v46 }
 0x121   : > { %4114 = vst [vmem:[#allocation76_spill] sm:$0xff] %v3000_v41  ;;  %v674_v61 = vmul.f32 %v662_v52, %v3000_v41 }
 0x123   : > { %1667 = vmatpush.msra.mxu0 %v674_v61 }
 0x124   : > { %700 = vrot.lane.b32.xlu2 %v2294_v22, %s2221_s6 }
 0x125   : > { %592 = vrot.lane.b32.xlu1 %v2285_v15, %s2216_s14  ;;  %1081 = vrot.lane.b32.xlu0 %v2278_v7, %s2226_s25 }
 0x126   : > { %v3016_v41 = vpop.permute.xlu2 %896  ;;  %v3018_v14 = vpop.permute.xlu1 %634 }
 0x127   : > { %v3020_v31 = vpop.permute.xlu0 %979  ;;  %v3026_v61 = vsel %vm650_vm8, %v2921_v53, %v3018_v14  ;;  %v622_v53 = vmul.f32 %v610_v57, %v606_v60 }
 0x128   : > { %4116 = vst [vmem:[#allocation78_spill] sm:$0xff] %v3020_v31  ;;  %v995_v13 = vsel %vm989_vm9, %v2885_v56, %v3020_v31  ;;  %v670_v59 = vmul.f32 %v662_v52, %v3026_v61  ;;  %v4006_v31 = vperm.slane %v2913_v6, 2 }
 0x129   : > { %4117 = vst [vmem:[#allocation79_spill] sm:$0xff] %v3026_v61  ;;  %v1013_v45 = vmul.f32 %v1001_v34, %v995_v13 }
 0x12a   : > { %1668 = vmatpush.msra.mxu0 %v670_v59  ;;  %v949_v59 = vperm.slane %v3037_v46, 0  ;;  %v4007_v46 = vperm.slane %v2907_v51, 3 }
 0x12b   : > { %1692 = vmatpush.msra.mxu1 %v1013_v45 }
 0x12c   : > { %1037 = vrot.lane.b32.xlu2 %v2296_v23, %s2217_s15  ;;  %1669 = vmatpush.msra.mxu0 %v622_v53  ;;  %v961_v56 = vmul.f32 %v949_v59, %v2289_v17  ;;  %v957_v53 = vmul.f32 %v949_v59, %v2280_v8  ;;  %v558_v59 = vperm.slane %v2781_v38, 0 }
 0x12d   : > { %698 = vrot.lane.b32.xlu1 %v2296_v23, %s2221_s6  ;;  %1039 = vrot.lane.b32.xlu0 %v2294_v22, %s2217_s15 }
 0x12e   : > { %v3045_v52 = vpop.permute.xlu2 %690  ;;  %v3048_v45 = vpop.permute.xlu1 %977 }
 0x12f   : > { %4119 = vst [vmem:[#allocation81_spill] sm:$0xff] %v3045_v52  ;;  %v3050_v13 = vpop.permute.xlu0 %973 }
 0x130   : > { %4120 = vst [vmem:[#allocation82_spill] sm:$0xff] %v3048_v45  ;;  %v994_v60 = vsel %vm989_vm9, %v3050_v13, %v3048_v45  ;;  %v4124_v45 = vperm.slane %v2913_v6, 3 }
 0x131   : > { %4121 = vst [vmem:[#allocation83_spill] sm:$0xff] %v3050_v13  ;;  %v1009_v61 = vmul.f32 %v1001_v34, %v994_v60 }
 0x133   : > { %1693 = vmatpush.msra.mxu1 %v1009_v61 }
 0x134   : > { %987 = vrot.lane.b32.xlu2 %v2294_v22, %s2218_s22 }
 0x135   : > { %900 = vrot.lane.b32.xlu1 %v2287_v16, %s2220_s28  ;;  %696 = vrot.lane.b32.xlu0 %v2285_v15, %s2221_s6 }
 0x136   : > { %v3066_v13 = vpop.permute.xlu2 %844  ;;  %1694 = vmatpush.msra.mxu1 %v961_v56  ;;  %v595_v17 = vpop.permute.xlu1 %594 }
 0x137   : > { %v3068_v34 = vpop.permute.xlu0 %640  ;;  %v599_v8 = vsel %vm598_vm6, %v2924_v40, %v595_v17  ;;  %v605_v61 = vsel %vm598_vm6, %v595_v17, %v2891_v0  ;;  %v3092_v0 = vld [vmem:[%s3980_s2 + $0x68] sm:$0xf]  ;;  %v566_v17 = vmul.f32 %v558_v59, %v2851_v42 }
 0x138   : > { %1695 = vmatpush.msra.mxu1 %v957_v53  ;;  %v3079_v60 = vmul.f32 %v4007_v46, %v599_v8  ;;  %v3083_v56 = vmul.f32 %v4006_v31, %v599_v8  ;;  %v3087_v22 = vmul.f32 %v4124_v45, %v605_v61  ;;  %v618_v40 = vmul.f32 %v610_v57, %v605_v61 }
 0x139   : > { %4126 = vst [vmem:[#allocation87_spill] sm:$0xff] %v3092_v0  ;;  %v570_v53 = vmul.f32 %v558_v59, %v2726_v18  ;;  %v1400_v57 = vperm.slane %v3092_v0, 0  ;;  %v506_v8 = vperm.slane %v2709_v30, 0  ;;  %v3124_v59 = vld [vmem:[%s3980_s2 + $0x30] sm:$0xf] }
 0x13a   : > { %4122 = vst [vmem:[#allocation84_spill] sm:$0xff] %v3079_v60  ;;  %1670 = vmatpush.msra.mxu0 %v618_v40  ;;  %v655_v60 = vsel %vm650_vm8, %v3018_v14, %v2990_v54 }
 0x13b   : > { %4123 = vst [vmem:[#allocation85_spill] sm:$0xff] %v3083_v56  ;;  %v518_v40 = vmul.f32 %v506_v8, %v2765_v32  ;;  %v514_v42 = vmul.f32 %v506_v8, %v2627_v24  ;;  %v922_v24 = vperm.slane %v3124_v59, 0 }
 0x13c   : > { %4125 = vst [vmem:[#allocation86_spill] sm:$0xff] %v3087_v22  ;;  %985 = vrot.lane.b32.xlu2 %v2296_v23, %s2218_s22  ;;  %1671 = vmatpush.msra.mxu0 %v570_v53  ;;  %v454_v53 = vperm.slane %v2608_v63, 0 }
 0x13d   : > { %898 = vrot.lane.b32.xlu1 %v2278_v7, %s2220_s28  ;;  %694 = vrot.lane.b32.xlu0 %v2276_v3, %s2221_s6 }
 0x13e   : > { %v3103_v45 = vpop.permute.xlu2 %854  ;;  %v3107_v61 = vpop.permute.xlu1 %692  ;;  %1672 = vmatpush.msra.mxu0 %v566_v17  ;;  %v466_v32 = vmul.f32 %v454_v53, %v2668_v4  ;;  %v402_v17 = vperm.slane %v2524_v5, 0  ;;  %v462_v8 = vmul.f32 %v454_v53, %v2675_v50  ;;  %v3157_v50 = vld [vmem:[%s3980_s2 + $0x64] sm:$0xf]  ;;  %v656_v53 = vsel %vm650_vm8, %v2994_v36, %v3068_v34 }
 0x13f   : > { %4127 = vst [vmem:[#allocation88_spill] sm:$0xff] %v3103_v45  ;;  %v3109_v18 = vpop.permute.xlu0 %688  ;;  %v604_v36 = vsel %vm598_vm6, %v2889_v35, %v2926_v11 }
 0x140   : > { %v3116_v31 = vsel %vm702_vm10, %v3109_v18, %v3107_v61  ;;  %1673 = vmatpush.msra.mxu0 %v518_v40  ;;  %v414_v22 = vmul.f32 %v402_v17, %v2472_v25  ;;  %4130 = vst [vmem:[#allocation91_spill] sm:$0xff] %v3157_v50  ;;  %v1373_v25 = vperm.slane %v3157_v50, 0 }
 0x141   : > { %4128 = vst [vmem:[#allocation89_spill] sm:$0xff] %v3116_v31  ;;  %v1412_v46 = vmul.f32 %v1400_v57, %v3116_v31  ;;  %v410_v31 = vmul.f32 %v402_v17, %v2565_v2  ;;  %v1054_v17 = vperm.slane %v2944_v19, 1 }
 0x142   : > { %1674 = vmatpush.msra.mxu0 %v514_v42  ;;  %v1385_v2 = vmul.f32 %v1373_v25, %v656_v53 }
 0x143   : > { %1746 = vmatpush.msra.mxu3 %v1412_v46 }
 0x144   : > { %796 = vrot.lane.b32.xlu2 %v2287_v16, %s2223_s16  ;;  %1675 = vmatpush.msra.mxu0 %v466_v32 }
 0x145   : > { %846 = vrot.lane.b32.xlu1 %v2278_v7, %s2222_s9  ;;  %848 = vrot.lane.b32.xlu0 %v2287_v16, %s2222_s9 }
 0x146   : > { %v3136_v46 = vpop.permute.xlu2 %1035  ;;  %v3139_v40 = vpop.permute.xlu1 %686  ;;  %1676 = vmatpush.msra.mxu0 %v462_v8 }
 0x147   : > { %v3141_v4 = vpop.permute.xlu0 %908  ;;  %v3147_v42 = vsel %vm702_vm10, %v3139_v40, %v3045_v52  ;;  %v298_v52 = vperm.slane %v2340_v29, 0 }
 0x148   : > { %4129 = vst [vmem:[#allocation90_spill] sm:$0xff] %v3141_v4  ;;  %v918_v32 = vsel %vm910_vm11, %v3141_v4, %v3016_v41  ;;  %v1408_v8 = vmul.f32 %v1400_v57, %v3147_v42  ;;  %1677 = vmatpush.msra.mxu0 %v414_v22  ;;  %v350_v4 = vperm.slane %v2457_v12, 0 }
 0x149   : > { %v934_v56 = vmul.f32 %v922_v24, %v918_v32  ;;  %v310_v35 = vmul.f32 %v298_v52, %v2408_v58  ;;  %v1045_v32 = vsel %vm1041_vm7, %v2963_v49, %v3136_v46  ;;  %v4132_v58 = vld [vmem:[#allocation10_spill] sm:$0xff]  ;;  %v3207_v49 = vld [vmem:[%s3980_s2 + $0x2c] sm:$0xf] }
 0x14a   : > { %1747 = vmatpush.msra.mxu3 %v1408_v8  ;;  %1678 = vmatpush.msra.mxu0 %v410_v31  ;;  %v362_v22 = vmul.f32 %v350_v4, %v2508_v55  ;;  %v358_v14 = vmul.f32 %v350_v4, %v2376_v44  ;;  %v1381_v31 = vmul.f32 %v1373_v25, %v655_v60  ;;  %v1346_v55 = vperm.slane %v2913_v6, 0 }
 0x14b   : > { %1696 = vmatpush.msra.mxu1 %v934_v56  ;;  %v663_v25 = vperm.slane %v2980_v39, 1 }
 0x14c   : > { %794 = vrot.lane.b32.xlu2 %v2278_v7, %s2223_s16  ;;  %1679 = vmatpush.msra.mxu0 %v362_v22  ;;  %v1358_v4 = vmul.f32 %v1346_v55, %v604_v36  ;;  %v306_v22 = vmul.f32 %v298_v52, %v4132_v58  ;;  %v611_v52 = vperm.slane %v2907_v51, 1 }
 0x14d   : > { %1139 = vrot.lane.b32.xlu1 %v2285_v15, %s2224_s21  ;;  %904 = vrot.lane.b32.xlu0 %v2285_v15, %s2220_s28 }
 0x14e   : > { %1748 = vmatpush.msra.mxu3 %v1385_v2  ;;  %v3183_v29 = vpop.permute.xlu2 %790  ;;  %v3187_v56 = vpop.permute.xlu1 %906  ;;  %1680 = vmatpush.msra.mxu0 %v358_v14  ;;  %v1354_v2 = vmul.f32 %v1346_v55, %v2897_v43  ;;  %v675_v14 = vmul.f32 %v663_v25, %v656_v53  ;;  %v870_v55 = vperm.slane %v3207_v49, 0 }
 0x14f   : > { %4131 = vst [vmem:[#allocation92_spill] sm:$0xff] %v3187_v56  ;;  %v3189_v57 = vpop.permute.xlu0 %894 }
 0x150   : > { %1749 = vmatpush.msra.mxu3 %v1381_v31  ;;  %v917_v44 = vsel %vm910_vm11, %v3187_v56, %v3189_v57  ;;  %1681 = vmatpush.msra.mxu0 %v310_v35  ;;  %v1066_v31 = vmul.f32 %v1054_v17, %v1045_v32  ;;  %v623_v32 = vmul.f32 %v611_v52, %v604_v36  ;;  %v3239_v36 = vld [vmem:[%s3980_s2 + $0x28] sm:$0xf] }
 0x151   : > { %v930_v8 = vmul.f32 %v922_v24, %v917_v44  ;;  %v671_v24 = vmul.f32 %v663_v25, %v655_v60  ;;  %v559_v44 = vperm.slane %v2781_v38, 1  ;;  %v619_v25 = vmul.f32 %v611_v52, %v2897_v43 }
 0x152   : > { %1750 = vmatpush.msra.mxu3 %v1358_v4  ;;  %1682 = vmatpush.msra.mxu0 %v306_v22 }
 0x153   : > { %1697 = vmatpush.msra.mxu1 %v930_v8  ;;  %v571_v38 = vmul.f32 %v559_v44, %v2798_v33  ;;  %v567_v43 = vmul.f32 %v559_v44, %v2802_v62 }
 0x154   : > { %1751 = vmatpush.msra.mxu3 %v1354_v2  ;;  %1782 = vmatpush.msrb.mxu0 %v1066_v31  ;;  %v507_v2 = vperm.slane %v2709_v30, 1  ;;  %v818_v31 = vperm.slane %v3239_v36, 0 }
 0x155   : > { %1137 = vrot.lane.b32.xlu1 %v2276_v3, %s2224_s21  ;;  %744 = vrot.lane.b32.xlu2 %v2287_v16, %s2225_s24 }
 0x156   : > { %1759 = vmatpush.msrb.mxu3 %v675_v14  ;;  %v3218_v53 = vpop.permute.xlu2 %1129  ;;  %902 = vrot.lane.b32.xlu0 %v2276_v3, %s2220_s28  ;;  %v3222_v35 = vpop.permute.xlu1 %842  ;;  %v3246_v14 = vld [vmem:[%s3978_s0 + $0x18] sm:$0xff]  ;;  %v519_v62 = vmul.f32 %v507_v2, %v2813_v27 }
 0x157   : > { %4133 = vst [vmem:[#allocation10_spill] sm:$0xff] %v3218_v53  ;;  %v3224_v60 = vpop.permute.xlu0 %856  ;;  %v865_v4 = vsel %vm858_vm12, %v3103_v45, %v3222_v35  ;;  %2155 = vmatmul.msk.f32.vlgmr.msra.gmra.mxu3 %vm1660_vm13, %v3246_v14 }
 0x158   : > { %1760 = vmatpush.msrb.mxu3 %v671_v24  ;;  %4134 = vst [vmem:[#allocation93_spill] sm:$0xff] %v3224_v60  ;;  %v866_v8 = vsel %vm858_vm12, %v3224_v60, %v3066_v13  ;;  %v878_v22 = vmul.f32 %v870_v55, %v865_v4  ;;  %v455_v4 = vperm.slane %v2608_v63, 1 }
 0x159   : > { %v882_v58 = vmul.f32 %v870_v55, %v866_v8  ;;  %v4136_v55 = vld [vmem:[#allocation60_spill] sm:$0xff]  ;;  %v3275_v8 = vld [vmem:[%s3980_s2 + $0x44] sm:$0xf] }
 0x15a   : > { %1761 = vmatpush.msrb.mxu3 %v623_v32  ;;  %v515_v32 = vmul.f32 %v507_v2, %v4136_v55  ;;  %v467_v27 = vmul.f32 %v455_v4, %v2842_v1 }
 0x15b   : > { %1698 = vmatpush.msra.mxu1 %v882_v58  ;;  %v463_v58 = vmul.f32 %v455_v4, %v2836_v47 }
 0x15c   : > { %1762 = vmatpush.msrb.mxu3 %v619_v25  ;;  %v403_v25 = vperm.slane %v2524_v5, 1 }
 0x15d   : > { %1699 = vmatpush.msra.mxu1 %v878_v22  ;;  %1087 = vrot.lane.b32.xlu1 %v2285_v15, %s2226_s25  ;;  %v1157_v22 = vperm.slane %v3275_v8, 0 }
 0x15e   : > { %1763 = vmatpush.msrb.mxu3 %v571_v38  ;;  %742 = vrot.lane.b32.xlu2 %v2278_v7, %s2225_s24  ;;  %v3257_v30 = vpop.permute.xlu2 %740  ;;  %v3261_v33 = vpop.permute.xlu1 %804  ;;  %v415_v47 = vmul.f32 %v403_v25, %v2537_v21  ;;  %v351_v38 = vperm.slane %v2457_v12, 1  ;;  %v2197_v12 = vld [vmem:[%s3980_s2] sm:$0xf] }
 0x15f   : > { %852 = vrot.lane.b32.xlu0 %v2285_v15, %s2222_s9  ;;  %4135 = vst [vmem:[#allocation94_spill] sm:$0xff] %v3261_v33  ;;  %v3263_v24 = vpop.permute.xlu0 %792  ;;  %v299_v21 = vperm.slane %v2197_v12, 1 }
 0x160   : > { %1764 = vmatpush.msrb.mxu3 %v567_v43  ;;  %v814_v52 = vsel %vm806_vm14, %v3261_v33, %v3263_v24  ;;  %v411_v43 = vmul.f32 %v403_v25, %v2544_v26  ;;  %v359_v55 = vmul.f32 %v351_v38, %v2440_v9 }
 0x161   : > { %v830_v44 = vmul.f32 %v818_v31, %v814_v52  ;;  %v363_v52 = vmul.f32 %v351_v38, %v2445_v10 }
 0x162   : > { %1765 = vmatpush.msrb.mxu3 %v519_v62 }
 0x163   : > { %1700 = vmatpush.msra.mxu1 %v830_v44 }
 0x164   : > { %1766 = vmatpush.msrb.mxu3 %v515_v32  ;;  %v311_v32 = vmul.f32 %v299_v21, %v2387_v48  ;;  %v664_v48 = vperm.slane %v2980_v39, 2 }
 0x165   : > { %1085 = vrot.lane.b32.xlu1 %v2276_v3, %s2226_s25 }
 0x166   : > { %1767 = vmatpush.msrb.mxu3 %v467_v27  ;;  %800 = vrot.lane.b32.xlu2 %v2285_v15, %s2223_s16  ;;  %v3286_v63 = vpop.permute.xlu2 %1079  ;;  %v3290_v5 = vpop.permute.xlu1 %1135  ;;  %v307_v27 = vmul.f32 %v299_v21, %v2358_v37 }
 0x167   : > { %4137 = vst [vmem:[#allocation60_spill] sm:$0xff] %v3286_v63  ;;  %850 = vrot.lane.b32.xlu0 %v2276_v3, %s2222_s9  ;;  %v3292_v1 = vpop.permute.xlu0 %1131 }
 0x168   : > { %1768 = vmatpush.msrb.mxu3 %v463_v58  ;;  %4138 = vst [vmem:[#allocation95_spill] sm:$0xff] %v3292_v1  ;;  %v1151_v2 = vsel %vm1145_vm15, %v3292_v1, %v3290_v5 }
 0x169   : > { %v1169_v62 = vmul.f32 %v1157_v22, %v1151_v2 }
 0x16a   : > { %1769 = vmatpush.msrb.mxu3 %v415_v47 }
 0x16b   : > { %1725 = vmatpush.msra.mxu2 %v1169_v62  ;;  %v3357_v62 = vld [vmem:[%s3980_s2 + $0x24] sm:$0xf] }
 0x16c   : > { %1770 = vmatpush.msrb.mxu3 %v411_v43 }
 0x16d   : > { %748 = vrot.lane.b32.xlu1 %v2285_v15, %s2225_s24 }
 0x16e   : > { %1771 = vmatpush.msrb.mxu3 %v363_v52  ;;  %746 = vrot.lane.b32.xlu2 %v2276_v3, %s2225_s24  ;;  %v3310_v26 = vpop.permute.xlu2 %738  ;;  %v3314_v10 = vpop.permute.xlu1 %1033  ;;  %v4142_v52 = vld [vmem:[#allocation77_spill] sm:$0xff] }
 0x16f   : > { %798 = vrot.lane.b32.xlu0 %v2276_v3, %s2223_s16  ;;  %v3316_v9 = vpop.permute.xlu0 %802  ;;  %v1044_v44 = vsel %vm1041_vm7, %v2829_v20, %v3314_v10  ;;  %v4140_v20 = vld [vmem:[#allocation3_spill] sm:$0xff] }
 0x170   : > { %1772 = vmatpush.msrb.mxu3 %v359_v55  ;;  %4139 = vst [vmem:[#allocation96_spill] sm:$0xff] %v3316_v9  ;;  %v813_v4 = vsel %vm806_vm14, %v3316_v9, %v3183_v29  ;;  %v1062_v58 = vmul.f32 %v1054_v17, %v1044_v44  ;;  %v1002_v55 = vperm.slane %v4142_v52, 1 }
 0x171   : > { %v826_v25 = vmul.f32 %v818_v31, %v813_v4 }
 0x172   : > { %1773 = vmatpush.msrb.mxu3 %v311_v32  ;;  %1783 = vmatpush.msrb.mxu0 %v1062_v58  ;;  %v4145_v32 = vld [vmem:[#allocation78_spill] sm:$0xff]  ;;  %v3381_v58 = vld [vmem:[%s3980_s2 + $0x40] sm:$0xf] }
 0x173   : > { %1701 = vmatpush.msra.mxu1 %v826_v25 }
 0x174   : > { %1774 = vmatpush.msrb.mxu3 %v307_v27 }
 0x175   : > { %1141 = vrot.lane.b32.xlu1 %v2296_v23, %s2224_s21 }
 0x176   : > { %1091 = vrot.lane.b32.xlu2 %v4140_v20, %s2226_s25  ;;  %v3335_v47 = vpop.permute.xlu2 %1077 }
 0x177   : > { %4141 = vst [vmem:[#allocation97_spill] sm:$0xff] %v3335_v47  ;;  %1143 = vrot.lane.b32.xlu0 %v4140_v20, %s2224_s21  ;;  %v3339_v37 = vpop.permute.xlu1 %644  ;;  %v3341_v31 = vpop.permute.xlu0 %1133 }
 0x178   : > { %v3347_v17 = vsel %vm650_vm8, %v3068_v34, %v3339_v37  ;;  %v1150_v38 = vsel %vm1145_vm15, %v3218_v53, %v3341_v31  ;;  %v766_v34 = vperm.slane %v3357_v62, 0  ;;  %v4146_v53 = vld [vmem:[#allocation80_spill] sm:$0xff] }
 0x179   : > { %v676_v2 = vmul.f32 %v664_v48, %v3347_v17  ;;  %v1165_v43 = vmul.f32 %v1157_v22, %v1150_v38  ;;  %v950_v1 = vperm.slane %v4146_v53, 1 }
 0x17b   : > { %1726 = vmatpush.msra.mxu2 %v1165_v43  ;;  %1851 = vmatpush.msra.mxu3 %v676_v2  ;;  %v1105_v2 = vperm.slane %v3381_v58, 0 }
 0x17e   : > { %v3362_v12 = vpop.permute.xlu2 %700 }
 0x17f   : > { %4143 = vst [vmem:[#allocation77_spill] sm:$0xff] %v3362_v12  ;;  %1089 = vrot.lane.b32.xlu0 %v2296_v23, %s2226_s25  ;;  %v3366_v21 = vpop.permute.xlu1 %983  ;;  %v3368_v22 = vpop.permute.xlu0 %752  ;;  %v962_v23 = vmul.f32 %v950_v1, %v2287_v16  ;;  %v4151_v16 = vperm.slane %v2907_v51, 2 }
 0x180   : > { %4144 = vst [vmem:[#allocation98_spill] sm:$0xff] %v3368_v22  ;;  %v993_v44 = vsel %vm989_vm9, %v4145_v32, %v3366_v21  ;;  %v762_v4 = vsel %vm754_vm0, %v3368_v22, %v3257_v30  ;;  %v3406_v22 = vld [vmem:[%s3978_s0 + $0x38] sm:$0xff] }
 0x181   : > { %v778_v27 = vmul.f32 %v766_v34, %v762_v4  ;;  %v1014_v25 = vmul.f32 %v1002_v55, %v993_v44  ;;  %2156 = vmatmul.msk.f32.gmra.mxu3 %vm1660_vm13, %v3406_v22 }
 0x183   : > { %1702 = vmatpush.msra.mxu1 %v778_v27  ;;  %1784 = vmatpush.msrb.mxu0 %v1014_v25 }
 0x186   : > { %v3383_v38 = vpop.permute.xlu2 %1037 }
 0x187   : > { %v3387_v43 = vpop.permute.xlu1 %642  ;;  %v3389_v32 = vpop.permute.xlu0 %1083 }
 0x188   : > { %v3395_v44 = vsel %vm650_vm8, %v2990_v54, %v3387_v43  ;;  %v1099_v27 = vsel %vm1093_vm1, %v3286_v63, %v3389_v32  ;;  %v3413_v54 = vld [vmem:[%s3980_s2 + $0x20] sm:$0xf]  ;;  %v4149_v63 = vld [vmem:[#allocation82_spill] sm:$0xff] }
 0x189   : > { %v672_v4 = vmul.f32 %v664_v48, %v3395_v44  ;;  %v1117_v25 = vmul.f32 %v1105_v2, %v1099_v27  ;;  %v714_v27 = vperm.slane %v3413_v54, 0 }
 0x18b   : > { %1852 = vmatpush.msra.mxu3 %v672_v4  ;;  %1727 = vmatpush.msra.mxu2 %v1117_v25  ;;  %v3426_v25 = vsel %vm702_vm10, %v3362_v12, %v3109_v18  ;;  %v958_v18 = vmul.f32 %v950_v1, %v2278_v7 }
 0x18c   : > { %4148 = vst [vmem:[#allocation80_spill] sm:$0xff] %v3426_v25  ;;  %v726_v20 = vmul.f32 %v714_v27, %v3426_v25  ;;  %v4162_v25 = vld [vmem:[#allocation38_spill] sm:$0xff] }
 0x18e   : > { %v3408_v9 = vpop.permute.xlu2 %987 }
 0x18f   : > { %v3417_v48 = vpop.permute.xlu1 %981  ;;  %v3419_v4 = vpop.permute.xlu0 %750 }
 0x190   : > { %4147 = vst [vmem:[#allocation78_spill] sm:$0xff] %v3419_v4  ;;  %v992_v33 = vsel %vm989_vm9, %v4149_v63, %v3417_v48  ;;  %v761_v45 = vsel %vm754_vm0, %v3419_v4, %v3310_v26  ;;  %v3444_v63 = vld [vmem:[%s3978_s0] sm:$0xff] }
 0x191   : > { %v774_v60 = vmul.f32 %v766_v34, %v761_v45  ;;  %v1010_v56 = vmul.f32 %v1002_v55, %v992_v33  ;;  %1775 = vmatmul.f32.vlgmr.msrb.gmra.mxu3 %v3444_v63  ;;  %1683 = vmatmul.f32.vlgmr.msra.gmra.mxu0 %v3444_v63  ;;  %v3468_v33 = vld [vmem:[%s3978_s0 + $0x10] sm:$0xff] }
 0x192   : > { %4152 = vst [vmem:[#allocation99_spill] sm:$0xff] %v3468_v33 }
 0x193   : > { %1703 = vmatpush.msra.mxu1 %v774_v60  ;;  %1785 = vmatpush.msrb.mxu0 %v1010_v56 }
 0x195   : > { %1704 = vmatpush.msra.mxu1 %v726_v20  ;;  %1786 = vmatpush.msrb.mxu0 %v962_v23  ;;  %v4155_v20 = vld [vmem:[#allocation64_spill] sm:$0xff] }
 0x196   : > { %v3439_v12 = vpop.permute.xlu2 %985 }
 0x197   : > { %v3446_v4 = vpop.permute.xlu1 %592  ;;  %v3448_v45 = vpop.permute.xlu0 %1081  ;;  %1787 = vmatpush.msrb.mxu0 %v958_v18  ;;  %v4157_v18 = vld [vmem:[#allocation58_spill] sm:$0xff] }
 0x198   : > { %4150 = vst [vmem:[#allocation82_spill] sm:$0xff] %v3448_v45  ;;  %v3455_v7 = vsel %vm598_vm6, %v2926_v11, %v3446_v4  ;;  %v1098_v56 = vsel %vm1093_vm1, %v3335_v47, %v3448_v45  ;;  %v4153_v11 = vld [vmem:[#allocation70_spill] sm:$0xff]  ;;  %v4178_v45 = vld [vmem:[#allocation28_spill] sm:$0xff] }
 0x199   : > { %v624_v23 = vmul.f32 %v4151_v16, %v3455_v7  ;;  %v1113_v60 = vmul.f32 %v1105_v2, %v1098_v56  ;;  %v4159_v56 = vld [vmem:[#allocation67_spill] sm:$0xff] }
 0x19b   : > { %1853 = vmatpush.msra.mxu3 %v624_v23  ;;  %1728 = vmatpush.msra.mxu2 %v1113_v60  ;;  %v4158_v23 = vld [vmem:[#allocation48_spill] sm:$0xff]  ;;  %v4160_v60 = vld [vmem:[#allocation49_spill] sm:$0xff] }
 0x19c   : > { %1729 = vmatmul.f32.vlgmr.msra.gmra.mxu2 %v3468_v33  ;;  %v4168_v33 = vld [vmem:[#allocation32_spill] sm:$0xff] }
 0x19d   : > { %1854 = vmatpush.msra.mxu3 %v4153_v11  ;;  %v923_v11 = vperm.slane %v3124_v59, 1 }
 0x19e   : > { %v3483_v2 = vpop.permute.xlu2 %796 }
 0x19f   : > { %v3472_v1 = vpop.permute.xlu1 %698  ;;  %1855 = vmatpush.msra.mxu3 %v4155_v20  ;;  %v3475_v34 = vpop.permute.xlu0 %1039  ;;  %v4161_v20 = vld [vmem:[#allocation59_spill] sm:$0xff] }
 0x1a0   : > { %4154 = vst [vmem:[#allocation70_spill] sm:$0xff] %v3472_v1  ;;  %v3481_v55 = vsel %vm702_vm10, %v3472_v1, %v3139_v40  ;;  %v1401_v40 = vperm.slane %v3092_v0, 1  ;;  %v4177_v1 = vld [vmem:[#allocation19_spill] sm:$0xff]  ;;  %v4179_v0 = vld [vmem:[#allocation69_spill] sm:$0xff] }
 0x1a1   : > { %4156 = vst [vmem:[#allocation64_spill] sm:$0xff] %v3481_v55  ;;  %1856 = vmatpush.msra.mxu3 %v4157_v18  ;;  %v722_v16 = vmul.f32 %v714_v27, %v3481_v55 }
 0x1a3   : > { %1705 = vmatpush.msra.mxu1 %v722_v16  ;;  %1857 = vmatpush.msra.mxu3 %v4158_v23  ;;  %v4165_v23 = vld [vmem:[#allocation52_spill] sm:$0xff] }
 0x1a5   : > { %1805 = vmatpush.msrb.mxu1 %v4159_v56  ;;  %1858 = vmatpush.msra.mxu3 %v4160_v60  ;;  %v4166_v56 = vld [vmem:[#allocation37_spill] sm:$0xff] }
 0x1a7   : > { %1806 = vmatpush.msrb.mxu1 %v4161_v20  ;;  %v3493_v47 = vpop.permute.xlu1 %900  ;;  %1859 = vmatpush.msra.mxu3 %v4162_v25  ;;  %v3496_v18 = vpop.permute.xlu0 %696  ;;  %v4167_v25 = vld [vmem:[#allocation53_spill] sm:$0xff] }
 0x1a8   : > { %4163 = vst [vmem:[#allocation58_spill] sm:$0xff] %v3496_v18  ;;  %v916_v27 = vsel %vm910_vm11, %v3016_v41, %v3493_v47  ;;  %v3506_v16 = vsel %vm702_vm10, %v3107_v61, %v3496_v18  ;;  %v3510_v20 = vpop.permute.xlu2 %794  ;;  %v3518_v41 = vld [vmem:[%s3978_s0 + $0x8] sm:$0xff]  ;;  %v4169_v61 = vld [vmem:[#allocation39_spill] sm:$0xff] }
 0x1a9   : > { %4164 = vst [vmem:[#allocation48_spill] sm:$0xff] %v3506_v16  ;;  %1807 = vmatpush.msrb.mxu1 %v4165_v23  ;;  %1860 = vmatpush.msra.mxu3 %v4166_v56  ;;  %v935_v60 = vmul.f32 %v923_v11, %v916_v27  ;;  %v1413_v55 = vmul.f32 %v1401_v40, %v3506_v16  ;;  %v4170_v23 = vld [vmem:[#allocation27_spill] sm:$0xff]  ;;  %v4171_v27 = vld [vmem:[#allocation40_spill] sm:$0xff]  ;;  %v1374_v16 = vperm.slane %v3157_v50, 1 }
 0x1aa   : > { %1706 = vmatmul.f32.vlgmr.msra.gmra.mxu1 %v3518_v41 }
 0x1ab   : > { %1808 = vmatpush.msrb.mxu1 %v4167_v25  ;;  %1788 = vmatpush.msrb.mxu0 %v935_v60  ;;  %v4172_v25 = vld [vmem:[#allocation18_spill] sm:$0xff] }
 0x1ac   : > { %1861 = vmatpush.msra.mxu3 %v4168_v33  ;;  %1838 = vmatpush.msrb.mxu2 %v1413_v55  ;;  %v665_v33 = vperm.slane %v2980_v39, 3 }
 0x1ad   : > { %1809 = vmatpush.msrb.mxu1 %v4169_v61  ;;  %v4174_v61 = vld [vmem:[#allocation81_spill] sm:$0xff] }
 0x1ae   : > { %1862 = vmatpush.msra.mxu3 %v4170_v23 }
 0x1af   : > { %1810 = vmatpush.msrb.mxu1 %v4171_v27  ;;  %v3524_v56 = vpop.permute.xlu1 %898  ;;  %v3527_v60 = vpop.permute.xlu0 %694  ;;  %v4175_v27 = vld [vmem:[#allocation35_spill] sm:$0xff] }
 0x1b0   : > { %1863 = vmatpush.msra.mxu3 %v4172_v25  ;;  %4173 = vst [vmem:[#allocation67_spill] sm:$0xff] %v3527_v60  ;;  %v915_v55 = vsel %vm910_vm11, %v3189_v57, %v3524_v56  ;;  %v3538_v23 = vsel %vm702_vm10, %v4174_v61, %v3527_v60  ;;  %v4176_v25 = vld [vmem:[#allocation75_spill] sm:$0xff]  ;;  %v3555_v61 = vsel %vm650_vm8, %v3387_v43, %v4179_v0  ;;  %v4181_v60 = vld [vmem:[#allocation72_spill] sm:$0xff]  ;;  %v4183_v0 = vld [vmem:[#allocation5_spill] sm:$0xff]  ;;  %v871_v43 = vperm.slane %v3207_v49, 1 }
 0x1b1   : > { %1811 = vmatpush.msrb.mxu1 %v4175_v27  ;;  %v3546_v39 = vsel %vm650_vm8, %v3339_v37, %v4176_v25  ;;  %v931_v57 = vmul.f32 %v923_v11, %v915_v55  ;;  %v1409_v18 = vmul.f32 %v1401_v40, %v3538_v23  ;;  %v4180_v27 = vld [vmem:[#allocation8_spill] sm:$0xff]  ;;  %v3563_v37 = vsel %vm598_vm6, %v3446_v4, %v4181_v60  ;;  %v4182_v11 = vld [vmem:[#allocation22_spill] sm:$0xff]  ;;  %v1648_v4 = vld [vmem:[%s3979_s1] sm:$0xff] }
 0x1b2   : > { %1864 = vmatpush.msra.mxu3 %v4177_v1  ;;  %v677_v50 = vmul.f32 %v665_v33, %v3546_v39  ;;  %v1386_v1 = vmul.f32 %v1374_v16, %v3347_v17  ;;  %v673_v40 = vmul.f32 %v665_v33, %v3555_v61  ;;  %v1382_v55 = vmul.f32 %v1374_v16, %v3395_v44  ;;  %v4185_v60 = vld [vmem:[#allocation23_spill] sm:$0xff] }
 0x1b3   : > { %1812 = vmatpush.msrb.mxu1 %v4178_v45  ;;  %v3565_v45 = vpop.permute.xlu2 %744  ;;  %1789 = vmatpush.msrb.mxu0 %v931_v57  ;;  %v4186_v33 = vperm.slane %v2913_v6, 1  ;;  %v1043_v44 = vsel %vm1041_vm7, %v3136_v46, %v3475_v34  ;;  %v1042_v46 = vsel %vm1041_vm7, %v3314_v10, %v3383_v38  ;;  %v4189_v10 = vld [vmem:[#allocation71_spill] sm:$0xff] }
 0x1b4   : > { %1865 = vmatpush.msra.mxu3 %v4180_v27  ;;  %1839 = vmatpush.msrb.mxu2 %v1409_v18  ;;  %v4184_v18 = vperm.slane %v2907_v51, 3  ;;  %v2227_v27 = vmov 0  }
 0x1b5   : > { %1813 = vmatpush.msrb.mxu1 %v4182_v11  ;;  %2194 = vset.pattern.permute.xlu1 %v2227_v27 }
 0x1b6   : > { %1866 = vmatpush.msra.mxu3 %v4183_v0  ;;  %1840 = vmatpush.msrb.mxu2 %v1386_v1  ;;  %v625_v17 = vmul.f32 %v4184_v18, %v3563_v37  ;;  %v4187_v1 = vld [vmem:[#allocation9_spill] sm:$0xff]  ;;  %v819_v0 = vperm.slane %v3239_v36, 1  ;;  %v4190_v18 = vld [vmem:[#allocation84_spill] sm:$0xff] }
 0x1b7   : > { %1814 = vmatpush.msrb.mxu1 %v4185_v60  ;;  %v3580_v25 = vpop.permute.xlu1 %846  ;;  %v3582_v57 = vpop.permute.xlu0 %848  ;;  %1652 = vperm.xlu1 %2194, %v1648_v4   ;;  %v991_v4 = vsel %vm989_vm9, %v3366_v21, %v3408_v9  ;;  %v990_v21 = vsel %vm989_vm9, %v3417_v48, %v3439_v12  ;;  %v760_v48 = vsel %vm754_vm0, %v3257_v30, %v3565_v45 }
 0x1b8   : > { %1943 = vmatpush.msrb.mxu3 %v677_v50  ;;  %v1359_v50 = vmul.f32 %v4186_v33, %v3455_v7  ;;  %v863_v51 = vsel %vm858_vm12, %v3222_v35, %v3580_v25  ;;  %1841 = vmatpush.msrb.mxu2 %v1382_v55  ;;  %v864_v16 = vsel %vm858_vm12, %v3066_v13, %v3582_v57  ;;  %v1055_v7 = vperm.slane %v2944_v19, 2  ;;  %v4191_v33 = vld [vmem:[#allocation65_spill] sm:$0xff] }
 0x1b9   : > { %1815 = vmatpush.msrb.mxu1 %v4187_v1  ;;  %v883_v11 = vmul.f32 %v871_v43, %v864_v16  ;;  %v812_v35 = vsel %vm806_vm14, %v3263_v24, %v3483_v2  ;;  %v1003_v19 = vperm.slane %v4142_v52, 2  ;;  %v879_v55 = vmul.f32 %v871_v43, %v863_v51  ;;  %2195 = vset.pattern.permute.xlu2 %v2227_v27  ;;  %v4192_v1 = vld [vmem:[#allocation61_spill] sm:$0xff] }
 0x1ba   : > { %1944 = vmatpush.msrb.mxu3 %v673_v40  ;;  %1842 = vmatpush.msrb.mxu2 %v1359_v50  ;;  %v1067_v13 = vmul.f32 %v1055_v7, %v1043_v44  ;;  %v4188_v40 = vld [vmem:[#allocation6_spill] sm:$0xff]  ;;  %v1063_v60 = vmul.f32 %v1055_v7, %v1042_v46  ;;  %v811_v24 = vsel %vm806_vm14, %v3183_v29, %v3510_v20  ;;  %v951_v43 = vperm.slane %v4146_v53, 2  ;;  %v3636_v29 = vld [vmem:[%s3978_s0 + $0x30] sm:$0xff] }
 0x1bb   : > { %1816 = vmatpush.msrb.mxu1 %v4188_v40  ;;  %1790 = vmatpush.msrb.mxu0 %v883_v11  ;;  %v831_v52 = vmul.f32 %v819_v0, %v812_v35  ;;  %v767_v50 = vperm.slane %v3357_v62, 1  ;;  %v1158_v44 = vperm.slane %v3275_v8, 1  ;;  %v1015_v53 = vmul.f32 %v1003_v19, %v991_v4 }
 0x1bc   : > { %1945 = vmatpush.msrb.mxu3 %v625_v17  ;;  %1843 = vmatpush.msrb.mxu2 %v4189_v10  ;;  %v3628_v17 = vpop.permute.xlu2 %742  ;;  %v827_v11 = vmul.f32 %v819_v0, %v811_v24  ;;  %v1011_v46 = vmul.f32 %v1003_v19, %v990_v21  ;;  %v963_v35 = vmul.f32 %v951_v43, %v2285_v15  ;;  %v715_v19 = vperm.slane %v3413_v54, 1  ;;  %v3671_v15 = vld [vmem:[%s3978_s0 + $0x28] sm:$0xff] }
 0x1bd   : > { %1791 = vmatpush.msrb.mxu0 %v879_v55  ;;  %1732 = vmatmul.f32.gmra.mxu2 %v3636_v29  ;;  %v759_v30 = vsel %vm754_vm0, %v3310_v26, %v3628_v17  ;;  %v779_v0 = vmul.f32 %v767_v50, %v760_v48  ;;  %v924_v55 = vperm.slane %v3124_v59, 2  ;;  %v959_v26 = vmul.f32 %v951_v43, %v2276_v3  ;;  %v4195_v3 = vld [vmem:[#allocation89_spill] sm:$0xff]  ;;  %v4198_v48 = vld [vmem:[#allocation66_spill] sm:$0xff] }
 0x1be   : > { %1946 = vmatpush.msrb.mxu3 %v4190_v18  ;;  %1874 = vmatpush.msra.mxu2 %v1067_v13  ;;  %v3661_v13 = vld [vmem:[%s3978_s0 + $0x20] sm:$0xff]  ;;  %v775_v10 = vmul.f32 %v767_v50, %v759_v30  ;;  %v4194_v18 = vld [vmem:[#allocation50_spill] sm:$0xff]  ;;  %v4197_v50 = vld [vmem:[#allocation44_spill] sm:$0xff] }
 0x1bf   : > { %v3643_v51 = vpop.permute.xlu1 %1139  ;;  %1792 = vmatpush.msrb.mxu0 %v831_v52  ;;  %v3645_v16 = vpop.permute.xlu0 %904  ;;  %1709 = vmatmul.f32.gmra.mxu1 %v3671_v15  ;;  %v4196_v52 = vld [vmem:[#allocation41_spill] sm:$0xff]  ;;  %v4202_v30 = vld [vmem:[#allocation55_spill] sm:$0xff] }
 0x1c0   : > { %1947 = vmatpush.msrb.mxu3 %v4191_v33  ;;  %1875 = vmatpush.msra.mxu2 %v1063_v60  ;;  %v1149_v7 = vsel %vm1145_vm15, %v3290_v5, %v3643_v51  ;;  %v4193_v5 = vld [vmem:[#allocation54_spill] sm:$0xff]  ;;  %v914_v4 = vsel %vm910_vm11, %v3493_v47, %v3645_v16  ;;  %v727_v60 = vmul.f32 %v715_v19, %v4195_v3 }
 0x1c1   : > { %1793 = vmatpush.msrb.mxu0 %v827_v11  ;;  %v1170_v40 = vmul.f32 %v1158_v44, %v1149_v7  ;;  %v936_v24 = vmul.f32 %v924_v55, %v914_v4  ;;  %v723_v47 = vmul.f32 %v715_v19, %v3147_v42  ;;  %v4199_v7 = vld [vmem:[#allocation33_spill] sm:$0xff]  ;;  %1778 = vmatmul.f32.gmra.mxu3 %v3661_v13  ;;  %v4206_v4 = vld [vmem:[#allocation42_spill] sm:$0xff] }
 0x1c2   : > { %1948 = vmatpush.msrb.mxu3 %v4192_v1  ;;  %1876 = vmatpush.msra.mxu2 %v1015_v53  ;;  %v4201_v11 = vld [vmem:[#allocation29_spill] sm:$0xff] }
 0x1c3   : > { %1686 = vmatmul.f32.gmra.mxu0 %v3661_v13  ;;  %1817 = vmatpush.msrb.mxu1 %v1170_v40  ;;  %v4204_v40 = vld [vmem:[#allocation51_spill] sm:$0xff] }
 0x1c4   : > { %1949 = vmatpush.msrb.mxu3 %v4193_v5  ;;  %1877 = vmatpush.msra.mxu2 %v1011_v46  ;;  %v872_v46 = vperm.slane %v3207_v49, 2 }
 0x1c5   : > { %1794 = vmatpush.msrb.mxu0 %v779_v0  ;;  %2157 = vmatmul.msk.f32.vlgmr.msrb.gmra.mxu2 %vm1660_vm13, %v3246_v14 }
 0x1c6   : > { %1878 = vmatpush.msra.mxu2 %v963_v35  ;;  %1950 = vmatpush.msrb.mxu3 %v4194_v18  ;;  %v4203_v35 = vld [vmem:[#allocation24_spill] sm:$0xff]  ;;  %v4209_v18 = vld [vmem:[#allocation87_spill] sm:$0xff] }
 0x1c7   : > { %1795 = vmatpush.msrb.mxu0 %v775_v10  ;;  %v3681_v43 = vpop.permute.xlu1 %1137  ;;  %2196 = vset.pattern.permute.xlu0 %v2227_v27  ;;  %v4208_v10 = vld [vmem:[#allocation45_spill] sm:$0xff]  ;;  %v1402_v3 = vperm.slane %v4209_v18, 2  ;;  %v4221_v18 = vld [vmem:[#allocation99_spill] sm:$0xff] }
 0x1c8   : > { %1879 = vmatpush.msra.mxu2 %v959_v26  ;;  %1951 = vmatpush.msrb.mxu3 %v4196_v52  ;;  %v1148_v21 = vsel %vm1145_vm15, %v3341_v31, %v3681_v43  ;;  %v3690_v33 = vpop.permute.xlu0 %902  ;;  %v4200_v31 = vld [vmem:[#allocation62_spill] sm:$0xff] }
 0x1c9   : > { %1796 = vmatpush.msrb.mxu0 %v727_v60  ;;  %v913_v53 = vsel %vm910_vm11, %v3524_v56, %v3690_v33  ;;  %v1166_v1 = vmul.f32 %v1158_v44, %v1148_v21  ;;  %v1106_v56 = vperm.slane %v3381_v58, 1  ;;  %1867 = vmatmul.f32.vlgmr.msra.gmra.mxu3 %v3444_v63  ;;  %v3729_v60 = vpop.permute.xlu2 %800  ;;  %v4212_v52 = vld [vmem:[#allocation58_spill] sm:$0xff] }
 0x1ca   : > { %1880 = vmatpush.msra.mxu2 %v936_v24  ;;  %1952 = vmatpush.msrb.mxu3 %v4197_v50  ;;  %v932_v42 = vmul.f32 %v924_v55, %v913_v53  ;;  %v4205_v55 = vld [vmem:[#allocation20_spill] sm:$0xff]  ;;  %v4211_v24 = vld [vmem:[#allocation77_spill] sm:$0xff]  ;;  %v4213_v21 = vld [vmem:[#allocation34_spill] sm:$0xff]  ;;  %v820_v53 = vperm.slane %v3239_v36, 2 }
 0x1cb   : > { %1797 = vmatpush.msrb.mxu0 %v723_v47  ;;  %1818 = vmatpush.msrb.mxu1 %v1166_v1  ;;  %v3737_v47 = vsel %vm702_vm10, %v4212_v52, %v4211_v24  ;;  %v4215_v1 = vld [vmem:[#allocation70_spill] sm:$0xff] }
 0x1cc   : > { %1953 = vmatpush.msrb.mxu3 %v4199_v7  ;;  %1798 = vmatmul.f32.vlgmr.msrb.gmra.mxu0 %v3518_v41 }
 0x1cd   : > { %1897 = vmatpush.msra.mxu0 %v4198_v48  ;;  %1881 = vmatpush.msra.mxu2 %v932_v42  ;;  %v4214_v42 = vld [vmem:[#allocation82_spill] sm:$0xff] }
 0x1ce   : > { %1954 = vmatpush.msrb.mxu3 %v4201_v11  ;;  %2158 = vmatmul.msk.f32.gmra.mxu2 %vm1660_vm13, %v3406_v22 }
 0x1cf   : > { %1898 = vmatpush.msra.mxu0 %v4200_v31  ;;  %v3708_v44 = vpop.permute.xlu1 %1087  ;;  %v4216_v31 = vld [vmem:[#allocation67_spill] sm:$0xff] }
 0x1d0   : > { %1955 = vmatpush.msrb.mxu3 %v4203_v35  ;;  %v1097_v5 = vsel %vm1093_vm1, %v3389_v32, %v3708_v44  ;;  %v4207_v32 = vld [vmem:[#allocation11_spill] sm:$0xff]  ;;  %v3753_v11 = vsel %vm702_vm10, %v4216_v31, %v4215_v1  ;;  %v768_v31 = vperm.slane %v3357_v62, 2 }
 0x1d1   : > { %1899 = vmatpush.msra.mxu0 %v4202_v30  ;;  %v3714_v0 = vpop.permute.xlu0 %852  ;;  %v1118_v26 = vmul.f32 %v1106_v56, %v1097_v5  ;;  %v810_v30 = vsel %vm806_vm14, %v3483_v2, %v3729_v60  ;;  %v4217_v5 = vld [vmem:[#allocation30_spill] sm:$0xff]  ;;  %v4220_v2 = vld [vmem:[#allocation21_spill] sm:$0xff]  ;;  %1870 = vmatmul.f32.gmra.mxu3 %v3661_v13 }
 0x1d2   : > { %v862_v27 = vsel %vm858_vm12, %v3582_v57, %v3714_v0  ;;  %1956 = vmatpush.msrb.mxu3 %v4205_v55  ;;  %v4210_v57 = vld [vmem:[#allocation14_spill] sm:$0xff]  ;;  %v1414_v55 = vmul.f32 %v1402_v3, %v3737_v47 }
 0x1d3   : > { %1900 = vmatpush.msra.mxu0 %v4204_v40  ;;  %v884_v19 = vmul.f32 %v872_v46, %v862_v27  ;;  %1819 = vmatpush.msrb.mxu1 %v1118_v26  ;;  %v4218_v40 = vld [vmem:[#allocation91_spill] sm:$0xff] }
 0x1d4   : > { %1957 = vmatpush.msrb.mxu3 %v4207_v32  ;;  %1801 = vmatmul.f32.gmra.mxu0 %v3671_v15  ;;  %v1410_v32 = vmul.f32 %v1402_v3, %v3753_v11  ;;  %v3776_v3 = vpop.permute.xlu2 %746 }
 0x1d5   : > { %1901 = vmatpush.msra.mxu0 %v4206_v4  ;;  %1882 = vmatpush.msra.mxu2 %v884_v19  ;;  %v1375_v19 = vperm.slane %v4218_v40, 2  ;;  %v4219_v4 = vld [vmem:[#allocation25_spill] sm:$0xff] }
 0x1d6   : > { %1958 = vmatpush.msrb.mxu3 %v4210_v57 }
 0x1d7   : > { %1902 = vmatpush.msra.mxu0 %v4208_v10  ;;  %v3740_v50 = vpop.permute.xlu1 %1085  ;;  %v832_v10 = vmul.f32 %v820_v53, %v810_v30 }
 0x1d8   : > { %v1096_v48 = vsel %vm1093_vm1, %v4214_v42, %v3740_v50 }
 0x1d9   : > { %1903 = vmatpush.msra.mxu0 %v4213_v21  ;;  %v3747_v7 = vpop.permute.xlu0 %850  ;;  %v1114_v27 = vmul.f32 %v1106_v56, %v1096_v48  ;;  %v4222_v56 = vld [vmem:[#allocation12_spill] sm:$0xff]  ;;  %v4223_v21 = vld [vmem:[#allocation15_spill] sm:$0xff]  ;;  %v4225_v48 = vld [vmem:[#allocation57_spill] sm:$0xff]  ;;  %1959 = vmatmul.f32.vlgmr.msrb.gmra.mxu3 %v3444_v63 }
 0x1da   : > { %v861_v35 = vsel %vm858_vm12, %v3580_v25, %v3747_v7  ;;  %v1387_v25 = vmul.f32 %v1375_v19, %v3546_v39  ;;  %v1049_v1 = vsel %vm1041_vm7, %v3475_v34, %v4225_v48  ;;  %v4226_v34 = vld [vmem:[#allocation73_spill] sm:$0xff] }
 0x1db   : > { %1904 = vmatpush.msra.mxu0 %v4217_v5  ;;  %v880_v26 = vmul.f32 %v872_v46, %v861_v35  ;;  %1820 = vmatpush.msrb.mxu1 %v1114_v27  ;;  %v1383_v46 = vmul.f32 %v1375_v19, %v3555_v61  ;;  %v4224_v61 = vperm.slane %v2913_v6, 2  ;;  %v757_v6 = vsel %vm754_vm0, %v3628_v17, %v3776_v3  ;;  %v2199_v27 = vld [vmem:[%s3980_s2 + $0x38] sm:$0xf]  ;;  %v4227_v17 = vld [vmem:[#allocation68_spill] sm:$0xff] }
 0x1dc   : > { %1821 = vmatmul.f32.vlgmr.msrb.gmra.mxu1 %v4221_v18  ;;  %v1004_v19 = vperm.slane %v2199_v27, 3 }
 0x1dd   : > { %1905 = vmatpush.msra.mxu0 %v4219_v4  ;;  %1883 = vmatpush.msra.mxu2 %v880_v26  ;;  %v1360_v42 = vmul.f32 %v4224_v61, %v3563_v37  ;;  %v1048_v37 = vsel %vm1041_vm7, %v3383_v38, %v4226_v34  ;;  %v997_v26 = vsel %vm989_vm9, %v3408_v9, %v4227_v17  ;;  %v4228_v38 = vld [vmem:[#allocation85_spill] sm:$0xff] }
 0x1de   : > { %1930 = vmatpush.msra.mxu1 %v1414_v55  ;;  %v776_v4 = vmul.f32 %v768_v31, %v757_v6  ;;  %v1016_v61 = vmul.f32 %v1004_v19, %v997_v26  ;;  %v4233_v6 = vld [vmem:[#allocation4_spill] sm:$0xff] }
 0x1df   : > { %1906 = vmatpush.msra.mxu0 %v4220_v2  ;;  %1884 = vmatpush.msra.mxu2 %v832_v10  ;;  %v3772_v57 = vpop.permute.xlu1 %748 }
 0x1e0   : > { %1931 = vmatpush.msra.mxu1 %v1410_v32  ;;  %v758_v39 = vsel %vm754_vm0, %v3565_v45, %v3772_v57  ;;  %v1649_v45 = vld [vmem:[%s3979_s1 + $0x8] sm:$0xff]  ;;  %v1159_v32 = vperm.slane %v3275_v8, 2 }
 0x1e1   : > { %1907 = vmatpush.msra.mxu0 %v4222_v56  ;;  %v3778_v24 = vpop.permute.xlu0 %798  ;;  %1657 = vperm.xlu2 %2195, %v1649_v45   ;;  %v780_v5 = vmul.f32 %v768_v31, %v758_v39  ;;  %v4230_v39 = vld [vmem:[#allocation48_spill] sm:$0xff]  ;;  %v4231_v45 = vld [vmem:[#allocation3_spill] sm:$0xff] }
 0x1e2   : > { %1932 = vmatpush.msra.mxu1 %v1387_v25  ;;  %v809_v52 = vsel %vm806_vm14, %v3510_v20, %v3778_v24  ;;  %v2198_v20 = vld [vmem:[%s3980_s2 + $0x3c] sm:$0xf]  ;;  %v2200_v25 = vld [vmem:[%s3980_s2 + $0x34] sm:$0xf]  ;;  %1962 = vmatmul.f32.gmra.mxu3 %v3661_v13 }
 0x1e3   : > { %1908 = vmatpush.msra.mxu0 %v4223_v21  ;;  %v828_v30 = vmul.f32 %v820_v53, %v809_v52  ;;  %v1056_v35 = vperm.slane %v2198_v20, 3  ;;  %v716_v53 = vperm.slane %v3413_v54, 2  ;;  %v952_v56 = vperm.slane %v2200_v25, 3  ;;  %v4238_v25 = vld [vmem:[#allocation80_spill] sm:$0xff] }
 0x1e4   : > { %1933 = vmatpush.msra.mxu1 %v1383_v46  ;;  %v4229_v46 = vld [vmem:[#allocation83_spill] sm:$0xff] }
 0x1e5   : > { %1885 = vmatpush.msra.mxu2 %v828_v30  ;;  %v1068_v55 = vmul.f32 %v1056_v35, %v1049_v1  ;;  %1824 = vmatmul.f32.gmra.mxu1 %v3636_v29  ;;  %v1064_v10 = vmul.f32 %v1056_v35, %v1048_v37  ;;  %v996_v9 = vsel %vm989_vm9, %v3439_v12, %v4229_v46  ;;  %v1107_v12 = vperm.slane %v3381_v58, 2  ;;  %v3845_v1 = vpop.permute.xlu2 %1091  ;;  %v4234_v37 = vld [vmem:[#allocation90_spill] sm:$0xff]  ;;  %v4239_v46 = vld [vmem:[#allocation93_spill] sm:$0xff] }
 0x1e6   : > { %1934 = vmatpush.msra.mxu1 %v1360_v42  ;;  %v728_v52 = vmul.f32 %v716_v53, %v4230_v39  ;;  %v724_v48 = vmul.f32 %v716_v53, %v3538_v23  ;;  %v1012_v30 = vmul.f32 %v1004_v19, %v996_v9  ;;  %v964_v20 = vmul.f32 %v952_v56, %v4231_v45  ;;  %v4240_v9 = vld [vmem:[#allocation36_spill] sm:$0xff] }
 0x1e7   : > { %1886 = vmatpush.msra.mxu2 %v780_v5  ;;  %v3822_v2 = vpop.permute.xlu1 %1141  ;;  %v925_v23 = vperm.slane %v3124_v59, 3  ;;  %v960_v34 = vmul.f32 %v952_v56, %v4233_v6  ;;  %v912_v53 = vsel %vm910_vm11, %v3645_v16, %v4234_v37  ;;  %v4235_v59 = vld [vmem:[#allocation63_spill] sm:$0xff]  ;;  %v4236_v16 = vld [vmem:[#allocation92_spill] sm:$0xff]  ;;  %v769_v6 = vperm.slane %v3357_v62, 3  ;;  %v4252_v37 = vld [vmem:[#allocation78_spill] sm:$0xff] }
 0x1e8   : > { %1935 = vmatpush.msra.mxu1 %v4228_v38  ;;  %v1146_v42 = vsel %vm1145_vm15, %v3681_v43, %v3822_v2  ;;  %v1095_v43 = vsel %vm1093_vm1, %v3708_v44, %v3845_v1  ;;  %v2201_v44 = vld [vmem:[%s3980_s2 + $0x68] sm:$0xf]  ;;  %v911_v17 = vsel %vm910_vm11, %v3690_v33, %v4236_v16  ;;  %v873_v38 = vperm.slane %v3207_v49, 3  ;;  %v4256_v62 = vld [vmem:[#allocation86_spill] sm:$0xff]  ;;  %v4257_v16 = vld [vmem:[#allocation95_spill] sm:$0xff] }
 0x1e9   : > { %1887 = vmatpush.msra.mxu2 %v776_v4  ;;  %v3833_v21 = vpop.permute.xlu0 %1143  ;;  %v1167_v35 = vmul.f32 %v1159_v32, %v1146_v42  ;;  %v1119_v5 = vmul.f32 %v1107_v12, %v1095_v43  ;;  %v1403_v27 = vperm.slane %v2201_v44, 3  ;;  %v4237_v4 = vld [vmem:[#allocation56_spill] sm:$0xff]  ;;  %v860_v33 = vsel %vm858_vm12, %v3714_v0, %v4239_v46 }
 0x1ea   : > { %1966 = vmatpush.msrb.mxu1 %v1068_v55  ;;  %v1147_v63 = vsel %vm1145_vm15, %v3643_v51, %v3833_v21  ;;  %v4232_v51 = vld [vmem:[#allocation47_spill] sm:$0xff]  ;;  %v937_v55 = vmul.f32 %v925_v23, %v912_v53  ;;  %v4241_v39 = vld [vmem:[#allocation64_spill] sm:$0xff]  ;;  %v885_v42 = vmul.f32 %v873_v38, %v860_v33  ;;  %v4253_v53 = vld [vmem:[#allocation26_spill] sm:$0xff]  ;;  %v717_v44 = vperm.slane %v3413_v54, 3 }
 0x1eb   : > { %v1171_v31 = vmul.f32 %v1159_v32, %v1147_v63  ;;  %1888 = vmatpush.msra.mxu2 %v728_v52  ;;  %v1415_v56 = vmul.f32 %v1403_v27, %v4238_v25  ;;  %v1411_v52 = vmul.f32 %v1403_v27, %v4241_v39  ;;  %v4242_v49 = vld [vmem:[#allocation88_spill] sm:$0xff]  ;;  %v4259_v54 = vld [vmem:[#allocation10_spill] sm:$0xff] }
 0x1ec   : > { %1967 = vmatpush.msrb.mxu1 %v1064_v10  ;;  %v1376_v10 = vperm.slane %v4218_v40, 3  ;;  %v859_v13 = vsel %vm858_vm12, %v3747_v7, %v4242_v49  ;;  %v4243_v40 = vld [vmem:[#allocation43_spill] sm:$0xff]  ;;  %v4244_v0 = vld [vmem:[#allocation76_spill] sm:$0xff] }
 0x1ed   : > { %1889 = vmatpush.msra.mxu2 %v724_v48  ;;  %1909 = vmatpush.msra.mxu0 %v1171_v31  ;;  %v4245_v48 = vld [vmem:[#allocation94_spill] sm:$0xff]  ;;  %v881_v7 = vmul.f32 %v873_v38, %v859_v13  ;;  %v4248_v43 = vld [vmem:[#allocation96_spill] sm:$0xff] }
 0x1ee   : > { %1968 = vmatpush.msrb.mxu1 %v1016_v61  ;;  %1890 = vmatmul.f32.vlgmr.msra.gmra.mxu2 %v3518_v41  ;;  %v821_v61 = vperm.slane %v3239_v36, 3  ;;  %v1388_v63 = vmul.f32 %v1376_v10, %v4244_v0  ;;  %v4246_v31 = vld [vmem:[#allocation46_spill] sm:$0xff]  ;;  %v807_v45 = vsel %vm806_vm14, %v3778_v24, %v4248_v43  ;;  %v755_v24 = vsel %vm754_vm0, %v3776_v3, %v4252_v37 }
 0x1ef   : > { %1989 = vmatpush.msrb.mxu2 %v4232_v51  ;;  %1910 = vmatpush.msra.mxu0 %v1167_v35  ;;  %v4251_v51 = vld [vmem:[#allocation31_spill] sm:$0xff]  ;;  %v1153_v3 = vsel %vm1145_vm15, %v3833_v21, %v4257_v16  ;;  %v4260_v21 = vld [vmem:[#allocation16_spill] sm:$0xff] }
 0x1f0   : > { %1969 = vmatpush.msrb.mxu1 %v1012_v30  ;;  %v4247_v30 = vld [vmem:[#allocation79_spill] sm:$0xff] }
 0x1f1   : > { %1990 = vmatpush.msrb.mxu2 %v4235_v59  ;;  %1911 = vmatpush.msra.mxu0 %v1119_v5  ;;  %v3864_v19 = vpop.permute.xlu0 %1089  ;;  %v1384_v36 = vmul.f32 %v1376_v10, %v4247_v30  ;;  %v4254_v5 = vld [vmem:[#allocation74_spill] sm:$0xff]  ;;  %v4255_v59 = vld [vmem:[#allocation7_spill] sm:$0xff]  ;;  %v4261_v10 = vld [vmem:[#allocation60_spill] sm:$0xff] }
 0x1f2   : > { %1970 = vmatpush.msrb.mxu1 %v964_v20  ;;  %v1094_v26 = vsel %vm1093_vm1, %v3740_v50, %v3864_v19  ;;  %v933_v50 = vmul.f32 %v925_v23, %v911_v17  ;;  %v4249_v20 = vld [vmem:[#allocation17_spill] sm:$0xff]  ;;  %v1101_v25 = vsel %vm1093_vm1, %v3845_v1, %v4261_v10 }
 0x1f3   : > { %2159 = vmatmul.msk.f32.vlgmr.msra.gmra.mxu1 %vm1660_vm13, %v3246_v14  ;;  %1991 = vmatpush.msrb.mxu2 %v4237_v4  ;;  %v1115_v32 = vmul.f32 %v1107_v12, %v1094_v26  ;;  %v808_v12 = vsel %vm806_vm14, %v3729_v60, %v4245_v48  ;;  %v4250_v60 = vld [vmem:[#allocation98_spill] sm:$0xff]  ;;  %v4258_v17 = vld [vmem:[#allocation13_spill] sm:$0xff]  ;;  %v1152_v26 = vsel %vm1145_vm15, %v3822_v2, %v4259_v54  ;;  %v1108_v4 = vperm.slane %v3381_v58, 3 }
 0x1f4   : > { %1971 = vmatpush.msrb.mxu1 %v960_v34  ;;  %v833_v35 = vmul.f32 %v821_v61, %v808_v12  ;;  %v756_v23 = vsel %vm754_vm0, %v3772_v57, %v4250_v60  ;;  %v829_v34 = vmul.f32 %v821_v61, %v807_v45  ;;  %v1160_v57 = vperm.slane %v3275_v8, 3 }
 0x1f5   : > { %1992 = vmatpush.msrb.mxu2 %v4240_v9  ;;  %1912 = vmatpush.msra.mxu0 %v1115_v32  ;;  %v781_v27 = vmul.f32 %v769_v6, %v756_v23  ;;  %v729_v8 = vmul.f32 %v717_v44, %v3737_v47  ;;  %v725_v32 = vmul.f32 %v717_v44, %v3753_v11  ;;  %v1753_v9 = vpop.f32.mrf.mxu3 }
 0x1f6   : > { %1972 = vmatpush.msrb.mxu1 %v937_v55  ;;  %1893 = vmatmul.f32.gmra.mxu2 %v3671_v15  ;;  %v777_v55 = vmul.f32 %v769_v6, %v755_v24  ;;  %v1172_v38 = vmul.f32 %v1160_v57, %v1153_v3  ;;  %v1168_v47 = vmul.f32 %v1160_v57, %v1152_v26 }
 0x1f7   : > { %1993 = vmatpush.msrb.mxu2 %v4243_v40  ;;  %2022 = vmatpush.msrb.mxu0 %v1415_v56  ;;  %v4262_v56 = vld [vmem:[#allocation97_spill] sm:$0xff]  ;;  %v1120_v58 = vmul.f32 %v1108_v4, %v1101_v25 }
 0x1f8   : > { %1973 = vmatpush.msrb.mxu1 %v933_v50  ;;  %1913 = vmatmul.f32.vlgmr.msra.gmra.mxu0 %v4221_v18  ;;  %v1100_v2 = vsel %vm1093_vm1, %v3864_v19, %v4262_v56 }
 0x1f9   : > { %1994 = vmatpush.msrb.mxu2 %v4246_v31  ;;  %2023 = vmatpush.msrb.mxu0 %v1411_v52  ;;  %v1116_v11 = vmul.f32 %v1108_v4, %v1100_v2 }
 0x1fa   : > { %1974 = vmatpush.msrb.mxu1 %v885_v42 }
 0x1fb   : > { %1995 = vmatpush.msrb.mxu2 %v4249_v20  ;;  %2024 = vmatpush.msrb.mxu0 %v1388_v63 }
 0x1fc   : > { %1975 = vmatpush.msrb.mxu1 %v881_v7 }
 0x1fd   : > { %1996 = vmatpush.msrb.mxu2 %v4251_v51  ;;  %2025 = vmatpush.msrb.mxu0 %v1384_v36 }
 0x1fe   : > { %1976 = vmatpush.msrb.mxu1 %v833_v35 }
 0x1ff   : > { %1997 = vmatpush.msrb.mxu2 %v4253_v53  ;;  %2026 = vmatpush.msrb.mxu0 %v4254_v5 }
 0x200   : > { %1977 = vmatpush.msrb.mxu1 %v829_v34  ;;  %1916 = vmatmul.f32.gmra.mxu0 %v3636_v29 }
 0x201   : > { %1998 = vmatpush.msrb.mxu2 %v4255_v59  ;;  %2027 = vmatpush.msrb.mxu0 %v4256_v62 }
 0x202   : > { %1978 = vmatpush.msrb.mxu1 %v781_v27 }
 0x203   : > { %1999 = vmatpush.msrb.mxu2 %v4258_v17  ;;  %2160 = vmatmul.msk.f32.gmra.mxu1 %vm1660_vm13, %v3406_v22 }
 0x204   : > { %1979 = vmatpush.msrb.mxu1 %v777_v55  ;;  %v1756_v40 = vpop.f32.mrf.mxu3 }
 0x205   : > { %2000 = vmatpush.msrb.mxu2 %v4260_v21 }
 0x206   : > { %1980 = vmatpush.msrb.mxu1 %v729_v8 }
 0x207   : > { %2001 = vmatpush.msrb.mxu2 %v1172_v38 }
 0x208   : > { %1981 = vmatpush.msrb.mxu1 %v725_v32  ;;  %2161 = vmatmul.msk.f32.vlgmr.msrb.gmra.mxu0 %vm1660_vm13, %v3246_v14 }
 0x209   : > { %2002 = vmatpush.msrb.mxu2 %v1168_v47 }
 0x20b   : > { %2003 = vmatpush.msrb.mxu2 %v1120_v58  ;;  %1982 = vmatmul.f32.vlgmr.msrb.gmra.mxu1 %v3518_v41 }
 0x20d   : > { %2004 = vmatpush.msrb.mxu2 %v1116_v11 }
 0x20e   : > { %2005 = vmatmul.f32.vlgmr.msrb.gmra.mxu2 %v4221_v18  ;;  %v1684_v28 = vpop.f32.mrf.mxu0 }
 0x210   : > { %2162 = vmatmul.msk.f32.gmra.mxu0 %vm1660_vm13, %v3406_v22 }
 0x213   : > { %1985 = vmatmul.f32.gmra.mxu1 %v3671_v15 }
 0x214   : > { %v1776_v0 = vpop.f32.mrf.mxu3 }
 0x216   : > { %2008 = vmatmul.f32.gmra.mxu2 %v3636_v29 }
 0x21f   : > { %v1730_v46 = vpop.f32.mrf.mxu2 }
 0x227   : > { %v1707_v19 = vpop.f32.mrf.mxu1 }
 0x229   : > { %v3955_v1 = vpop.permute.xlu1 %1652 }
 0x22a   : > { %v1685_v14 = vadd.f32 %v1684_v28, %v3955_v1  ;;  %v1777_v48 = vadd.f32 %v1776_v0, %v3955_v1 }
 0x22c   : > { %v1708_v33 = vadd.f32 %v1707_v19, %v1685_v14 }
 0x22e   : > { %v1731_v41 = vadd.f32 %v1730_v46, %v1708_v33 }
 0x230   : > { %v1754_v50 = vadd.f32 %v1753_v9, %v1731_v41 }
 0x232   : > { %v2035_v22 = vmax.f32 %v1754_v50, 0.0 }
 0x234   : > { %2043 = vst [vmem:[%s3962_s19] sm:$0xff] %v2035_v22 }
 0x23b   : > { %v1658_v29 = vpop.permute.xlu2 %1657 }
 0x23c   : > { %v1710_v39 = vpop.f32.mrf.mxu1 }
 0x240   : > { %v1687_v15 = vpop.f32.mrf.mxu0  ;;  %v1733_v52 = vpop.f32.mrf.mxu2 }
 0x241   : > { %v1688_v18 = vadd.f32 %v1687_v15, %v1658_v29 }
 0x243   : > { %v1711_v49 = vadd.f32 %v1710_v39, %v1688_v18 }
 0x244   : > { %v1779_v30 = vpop.f32.mrf.mxu3 }
 0x245   : > { %v1734_v13 = vadd.f32 %v1733_v52, %v1711_v49  ;;  %v1780_v43 = vadd.f32 %v1779_v30, %v1658_v29 }
 0x247   : > { %v1757_v61 = vadd.f32 %v1756_v40, %v1734_v13 }
 0x248   : > { %v1845_v31 = vpop.f32.mrf.mxu2 }
 0x249   : > { %v2039_v42 = vmax.f32 %v1757_v61, 0.0  ;;  %v1799_v63 = vpop.f32.mrf.mxu0 }
 0x24a   : > { %v1800_v12 = vadd.f32 %v1799_v63, %v1777_v48 }
 0x24b   : > { %2047 = vst [vmem:[%s3962_s19 + $0x20] sm:$0xff] %v2039_v42 }
 0x24c   : > { %v1868_v24 = vpop.f32.mrf.mxu3 }
 0x24d   : > { %v1869_v53 = vadd.f32 %v1868_v24, %v3955_v1 }
 0x251   : > { %v1802_v45 = vpop.f32.mrf.mxu0  ;;  %v1848_v6 = vpop.f32.mrf.mxu2 }
 0x252   : > { %v1803_v60 = vadd.f32 %v1802_v45, %v1780_v43 }
 0x254   : > { %v1871_v27 = vpop.f32.mrf.mxu3 }
 0x255   : > { %v1872_v55 = vadd.f32 %v1871_v27, %v1658_v29 }
 0x259   : > { %v1822_v7 = vpop.f32.mrf.mxu1 }
 0x25a   : > { %v1823_v36 = vadd.f32 %v1822_v7, %v1800_v12 }
 0x25c   : > { %v1846_v20 = vadd.f32 %v1845_v31, %v1823_v36  ;;  %v1960_v32 = vpop.f32.mrf.mxu3 }
 0x25d   : > { %v1961_v25 = vadd.f32 %v1960_v32, %v3955_v1 }
 0x25e   : > { %v2036_v35 = vmax.f32 %v1846_v20, 0.0 }
 0x260   : > { %2044 = vst [vmem:[%s3962_s19 + $0x8] sm:$0xff] %v2036_v35 }
 0x262   : > { %v1825_v23 = vpop.f32.mrf.mxu1 }
 0x263   : > { %v1826_v51 = vadd.f32 %v1825_v23, %v1803_v60 }
 0x265   : > { %v1849_v34 = vadd.f32 %v1848_v6, %v1826_v51  ;;  %v1963_v2 = vpop.f32.mrf.mxu3 }
 0x266   : > { %v1964_v28 = vadd.f32 %v1963_v2, %v1658_v29 }
 0x267   : > { %v2040_v37 = vmax.f32 %v1849_v34, 0.0 }
 0x269   : > { %2048 = vst [vmem:[%s3962_s19 + $0x28] sm:$0xff] %v2040_v37 }
 0x270   : > { %v1937_v57 = vpop.f32.mrf.mxu1 }
 0x271   : > { %v1891_v5 = vpop.f32.mrf.mxu2 }
 0x272   : > { %v1892_v44 = vadd.f32 %v1891_v5, %v1869_v53 }
 0x275   : > { %v1914_v59 = vpop.f32.mrf.mxu0 }
 0x276   : > { %v1915_v62 = vadd.f32 %v1914_v59, %v1892_v44 }
 0x278   : > { %v1938_v16 = vadd.f32 %v1937_v57, %v1915_v62 }
 0x279   : > { %v1894_v3 = vpop.f32.mrf.mxu2 }
 0x27a   : > { %v2037_v17 = vmax.f32 %v1938_v16, 0.0  ;;  %v1895_v8 = vadd.f32 %v1894_v3, %v1872_v55 }
 0x27c   : > { %2045 = vst [vmem:[%s3962_s19 + $0x10] sm:$0xff] %v2037_v17 }
 0x27d   : > { %v1917_v54 = vpop.f32.mrf.mxu0 }
 0x27e   : > { %v1918_v26 = vadd.f32 %v1917_v54, %v1895_v8 }
 0x280   : > { %v1940_v4 = vpop.f32.mrf.mxu1 }
 0x281   : > { %v1941_v38 = vadd.f32 %v1940_v4, %v1918_v26 }
 0x283   : > { %v2041_v21 = vmax.f32 %v1941_v38, 0.0 }
 0x285   : > { %2049 = vst [vmem:[%s3962_s19 + $0x30] sm:$0xff] %v2041_v21  ;;  %v2029_v56 = vpop.f32.mrf.mxu0 }
 0x288   : > { %v1983_v10 = vpop.f32.mrf.mxu1 }
 0x289   : > { %v1984_v47 = vadd.f32 %v1983_v10, %v1961_v25 }
 0x28d   : > { %v2032_v41 = vpop.f32.mrf.mxu0 }
 0x290   : > { %v1986_v19 = vpop.f32.mrf.mxu1 }
 0x291   : > { %v2006_v58 = vpop.f32.mrf.mxu2  ;;  %v1987_v33 = vadd.f32 %v1986_v19, %v1964_v28 }
 0x292   : > { %v2007_v11 = vadd.f32 %v2006_v58, %v1984_v47 }
 0x294   : > { %v2030_v14 = vadd.f32 %v2029_v56, %v2007_v11 }
 0x296   : > { %v2038_v46 = vmax.f32 %v2030_v14, 0.0 }
 0x298   : > { %2046 = vst [vmem:[%s3962_s19 + $0x18] sm:$0xff] %v2038_v46 }
 0x299   : > { %v2009_v9 = vpop.f32.mrf.mxu2 }
 0x29a   : > { %v2010_v50 = vadd.f32 %v2009_v9, %v1987_v33 }
 0x29c   : > { %v2033_v22 = vadd.f32 %v2032_v41, %v2010_v50 }
 0x29e   : > { %v2042_v15 = vmax.f32 %v2033_v22, 0.0 }
 0x2a0   : > { %2050 = vst [vmem:[%s3962_s19 + $0x38] sm:$0xff] %v2042_v15 }
 0x2a1 PF: > { %s15_s18 = sadd.s32 1, %s2208_s18  }
 0x2a2   : > { %p12_p4 = scmp.ge.s32.totalorder %s15_s18, 4  }
 0x2a4   :  { %14 = sbr.rel (!%p12_p4) target bundleno = 1 (0x1), region = 99 }

// kernel: rcnn_block_forward.8
= control target key start
LH: loop header
LB: loop body
LE: loop exit
PB: predicated region body
PF: predicated region fallthrough
CT: control target
= control target key end

     0   :  { %s2181_s15 = smov 0   ;;  %s3925_s0 = inlined_call_operand.vmem [shape: f32[16,432], index: 0, kind: input, shape index: {}]   ;;  %s3926_s1 = inlined_call_operand.vmem [shape: f32[16,1], index: 1, kind: input, shape index: {}]   ;;  %s3927_s2 = inlined_call_operand.vmem [shape: f32[27,1,512], index: 2, kind: input, shape index: {}]   ;;  %s3928_s3 = inlined_call_operand.vmem [shape: f32[2,16,512], index: 3, kind: input, shape index: {}]   ;;  %s3929_s4 = inlined_call_operand.vmem [shape: f32[2,16,512], index: 4, kind: output, shape index: {}]  }
   0x1 LB: > { %s2043_s16 = sadd.s32 4294967295, %s2136_s15   ;;  %p2047_p0 = scmp.ge.s32.totalorder %s2136_s15, 1  ;;  %s2136_s15 = sphi %s2181_s15, %s14_s15  }
   0x2   : > { %p162_p1 = scmp.lt.s32.totalorder %s2136_s15, 3 }
   0x4   : > { %p163_p2 = pnand %p2047_p0, %p162_p1 }
   0x6   : > { %166 = sbr.rel (%p163_p2) target bundleno = 669 (0x29d), region = 36 }
   0xb   : > { %p188_p3 = scmp.lt.s32.totalorder %s2043_s16, 1  ;;  %s2138_s21 = smov 73   ;;  %v222_v10 = vlaneseq  ;;  %v2270_v13 = vld [vmem:[%s3927_s2] sm:$0xf]  ;;  %v2280_v15 = vld [vmem:[%s3927_s2 + $0x48] sm:$0xf] }
   0xc   : > { %s2139_s22 = smov 72   ;;  %s2140_s23 = smov 71   ;;  %v237_v14 = vperm.slane %v2270_v13, 2  ;;  %v1122_v18 = vperm.slane %v2280_v15, 1  ;;  %v2296_v23 = vld [vmem:[%s3927_s2 + $0x4c] sm:$0xf] }
   0xd   : > { %s4201_s16 = smov (!%p188_p3, %s2043_s16), 1  ;;  %s2141_s24 = smov 65   ;;  %v2265_v12 = vand.u32 127, %v222_v10  ;;  %v1151_v25 = vperm.slane %v2296_v23, 3  ;;  %v238_v35 = vperm.slane %v2270_v13, 3  ;;  %v1123_v36 = vperm.slane %v2280_v15, 2 }
   0xe   : > { %s2088_s17 = sshll.u32 %s4201_s16, 6  ;;  %s2142_s25 = smov 64   ;;  %v1124_v37 = vperm.slane %v2280_v15, 3  ;;  %v2381_v56 = vld [vmem:[%s3927_s2 + $0x50] sm:$0xf]  ;;  %v1150_v61 = vperm.slane %v2296_v23, 2 }
   0xf   : > { %s2197_s20 = scalar_lea.vmem %s3928_s3, %s2088_s17  ;;  %s2143_s26 = smov 63   ;;  %vm224_vm0 = vcmp.lt.s32.totalorder %v2265_v12, 73  ;;  %vm275_vm1 = vcmp.lt.s32.totalorder %v2265_v12, 72  ;;  %v2386_v57 = vld [vmem:[%s3927_s2 + $0x4] sm:$0xf]  ;;  %vm327_vm2 = vcmp.lt.s32.totalorder %v2265_v12, 71 }
  0x10   : > { %v2200_v0 = vld [vmem:[%s2197_s20 + $0x10] sm:$0xff]  ;;  %v2203_v1 = vld [vmem:[%s2197_s20 + $0x8] sm:$0xff]  ;;  %v2206_v2 = vld [vmem:[%s2197_s20] sm:$0xff]  ;;  %s2144_s7 = smov 57   ;;  %s2145_s8 = smov 121   ;;  %v289_v58 = vperm.slane %v2386_v57, 2 }
  0x11   : > { %214 = vrot.lane.b32.xlu2 %v2200_v0, %s2138_s21  ;;  %210 = vrot.lane.b32.xlu1 %v2203_v1, %s2138_s21  ;;  %v2212_v3 = vld [vmem:[%s2197_s20 + $0x30] sm:$0xff]  ;;  %v2215_v4 = vld [vmem:[%s2197_s20 + $0x28] sm:$0xff]  ;;  %v1178_v59 = vperm.slane %v2381_v56, 3  ;;  %v290_v60 = vperm.slane %v2386_v57, 3  ;;  %s2146_s13 = smov 56   ;;  %s2147_s14 = smov 127  }
  0x12   : > { %206 = vrot.lane.b32.xlu0 %v2206_v2, %s2138_s21  ;;  %v2218_v5 = vld [vmem:[%s2197_s20 + $0x20] sm:$0xff]  ;;  %v2224_v6 = vld [vmem:[%s2197_s20 + $0x38] sm:$0xff]  ;;  %vm431_vm3 = vcmp.lt.s32.totalorder %v2265_v12, 64  ;;  %vm379_vm4 = vcmp.lt.s32.totalorder %v2265_v12, 65  ;;  %s2150_s29 = smov 7   ;;  %vm483_vm5 = vcmp.lt.s32.totalorder %v2265_v12, 63 }
  0x13   : > { %v2227_v7 = vld [vmem:[%s2197_s20 + $0x18] sm:$0xff]  ;;  %s2151_s10 = smov 8   ;;  %s2152_s11 = smov 119   ;;  %vm535_vm6 = vcmp.lt.s32.totalorder %v2265_v12, 57  ;;  %vm978_vm7 = vcmp.lt.s32.totalorder %v2265_v12, 121  ;;  %vm587_vm8 = vcmp.lt.s32.totalorder %v2265_v12, 56 }
  0x14   : > { %s2153_s19 = smov 9   ;;  %s2154_s27 = smov 120   ;;  %vm926_vm9 = vcmp.lt.s32.totalorder %v2265_v12, 127  ;;  %vm639_vm10 = vcmp.lt.s32.totalorder %v2265_v12, 55  ;;  %vm847_vm11 = vcmp.lt.s32.totalorder %v2265_v12, 1  ;;  %vm795_vm12 = vcmp.lt.s32.totalorder %v2265_v12, 7 }
  0x15   : > { %vm1597_vm13 = vcmask 392192   ;;  %vm743_vm14 = vcmp.lt.s32.totalorder %v2265_v12, 8  ;;  %vm1082_vm15 = vcmp.lt.s32.totalorder %v2265_v12, 119 }
  0x19   : > { %216 = vrot.lane.b32.xlu2 %v2212_v3, %s2138_s21  ;;  %212 = vrot.lane.b32.xlu1 %v2215_v4, %s2138_s21 }
  0x1a   : > { %208 = vrot.lane.b32.xlu0 %v2218_v5, %s2138_s21 }
  0x21   : > { %220 = vrot.lane.b32.xlu1 %v2224_v6, %s2138_s21  ;;  %259 = vrot.lane.b32.xlu2 %v2206_v2, %s2139_s22 }
  0x22   : > { %218 = vrot.lane.b32.xlu0 %v2227_v7, %s2138_s21  ;;  %s3909_s21 = scalar_lea.vmem %s3929_s4, %s2088_s17 }
  0x29   : > { %263 = vrot.lane.b32.xlu1 %v2203_v1, %s2139_s22  ;;  %265 = vrot.lane.b32.xlu2 %v2215_v4, %s2139_s22 }
  0x2a   : > { %261 = vrot.lane.b32.xlu0 %v2218_v5, %s2139_s22 }
  0x31   : > { %269 = vrot.lane.b32.xlu1 %v2212_v3, %s2139_s22  ;;  %271 = vrot.lane.b32.xlu2 %v2227_v7, %s2139_s22 }
  0x32   : > { %267 = vrot.lane.b32.xlu0 %v2200_v0, %s2139_s22 }
  0x39   : > { %311 = vrot.lane.b32.xlu1 %v2206_v2, %s2140_s23  ;;  %313 = vrot.lane.b32.xlu2 %v2218_v5, %s2140_s23 }
  0x3a   : > { %273 = vrot.lane.b32.xlu0 %v2224_v6, %s2139_s22 }
  0x41   : > { %317 = vrot.lane.b32.xlu1 %v2215_v4, %s2140_s23  ;;  %319 = vrot.lane.b32.xlu2 %v2200_v0, %s2140_s23 }
  0x42   : > { %315 = vrot.lane.b32.xlu0 %v2203_v1, %s2140_s23 }
  0x49   : > { %323 = vrot.lane.b32.xlu1 %v2227_v7, %s2140_s23  ;;  %325 = vrot.lane.b32.xlu2 %v2224_v6, %s2140_s23 }
  0x4a   : > { %321 = vrot.lane.b32.xlu0 %v2212_v3, %s2140_s23 }
  0x51   : > { %365 = vrot.lane.b32.xlu1 %v2218_v5, %s2141_s24  ;;  %367 = vrot.lane.b32.xlu2 %v2203_v1, %s2141_s24 }
  0x52   : > { %363 = vrot.lane.b32.xlu0 %v2206_v2, %s2141_s24 }
  0x59   : > { %371 = vrot.lane.b32.xlu1 %v2200_v0, %s2141_s24  ;;  %373 = vrot.lane.b32.xlu2 %v2212_v3, %s2141_s24 }
  0x5a   : > { %369 = vrot.lane.b32.xlu0 %v2215_v4, %s2141_s24 }
  0x61   : > { %377 = vrot.lane.b32.xlu1 %v2224_v6, %s2141_s24  ;;  %415 = vrot.lane.b32.xlu2 %v2206_v2, %s2142_s25 }
  0x62   : > { %375 = vrot.lane.b32.xlu0 %v2227_v7, %s2141_s24 }
  0x69   : > { %419 = vrot.lane.b32.xlu1 %v2203_v1, %s2142_s25  ;;  %421 = vrot.lane.b32.xlu2 %v2215_v4, %s2142_s25 }
  0x6a   : > { %417 = vrot.lane.b32.xlu0 %v2218_v5, %s2142_s25 }
  0x6b   : > { %v215_v8 = vpop.permute.xlu2 %214 }
  0x71   : > { %425 = vrot.lane.b32.xlu1 %v2212_v3, %s2142_s25  ;;  %427 = vrot.lane.b32.xlu2 %v2227_v7, %s2142_s25 }
  0x72   : > { %423 = vrot.lane.b32.xlu0 %v2200_v0, %s2142_s25 }
  0x73   : > { %v217_v9 = vpop.permute.xlu2 %216 }
  0x79   : > { %467 = vrot.lane.b32.xlu1 %v2206_v2, %s2143_s26  ;;  %469 = vrot.lane.b32.xlu2 %v2218_v5, %s2143_s26 }
  0x7a   : > { %429 = vrot.lane.b32.xlu0 %v2224_v6, %s2142_s25  ;;  %s2148_s25 = smov 55  }
  0x7b   : > { %v260_v11 = vpop.permute.xlu2 %259 }
  0x81   : > { %473 = vrot.lane.b32.xlu1 %v2215_v4, %s2143_s26  ;;  %475 = vrot.lane.b32.xlu2 %v2200_v0, %s2143_s26 }
  0x82   : > { %471 = vrot.lane.b32.xlu0 %v2203_v1, %s2143_s26 }
  0x83   : > { %v211_v16 = vpop.permute.xlu1 %210  ;;  %v2282_v17 = vpop.permute.xlu2 %265 }
  0x84   : > { %v227_v19 = vsel %vm224_vm0, %v211_v16, %v215_v8  ;;  %v207_v20 = vpop.permute.xlu0 %206 }
  0x85   : > { %v2287_v21 = vmul.f32 %v237_v14, %v227_v19  ;;  %v2291_v22 = vsel %vm224_vm0, %v207_v20, %v211_v16  ;;  %v2298_v24 = vmul.f32 %v1122_v18, %v227_v19 }
  0x86   : > { %3982 = vst [vmem:[#allocation4_spill] sm:$0xff] %v2291_v22 }
  0x87   : > { %3981 = vst [vmem:[#allocation3_spill] sm:$0xff] %v2287_v21 }
  0x88   : > { %3983 = vst [vmem:[#allocation5_spill] sm:$0xff] %v2298_v24 }
  0x89   : > { %479 = vrot.lane.b32.xlu1 %v2227_v7, %s2143_s26  ;;  %481 = vrot.lane.b32.xlu2 %v2224_v6, %s2143_s26 }
  0x8a   : > { %477 = vrot.lane.b32.xlu0 %v2212_v3, %s2143_s26  ;;  %s2149_s26 = smov 1  }
  0x8b   : > { %v213_v26 = vpop.permute.xlu1 %212  ;;  %v272_v27 = vpop.permute.xlu2 %271 }
  0x8c   : > { %v228_v28 = vsel %vm224_vm0, %v213_v26, %v217_v9  ;;  %v2309_v29 = vsel %vm275_vm1, %v272_v27, %v260_v11  ;;  %v209_v30 = vpop.permute.xlu0 %208 }
  0x8d   : > { %v2311_v31 = vmul.f32 %v237_v14, %v228_v28  ;;  %v2316_v32 = vmul.f32 %v1151_v25, %v2309_v29  ;;  %v2320_v33 = vsel %vm224_vm0, %v209_v30, %v213_v26  ;;  %v2322_v34 = vmul.f32 %v1122_v18, %v228_v28 }
  0x8f   : > { %3984 = vst [vmem:[#allocation6_spill] sm:$0xff] %v2311_v31 }
  0x90   : > { %3985 = vst [vmem:[#allocation7_spill] sm:$0xff] %v2316_v32 }
  0x91   : > { %3986 = vst [vmem:[#allocation8_spill] sm:$0xff] %v2322_v34  ;;  %521 = vrot.lane.b32.xlu1 %v2218_v5, %s2144_s7  ;;  %523 = vrot.lane.b32.xlu2 %v2203_v1, %s2144_s7 }
  0x92   : > { %519 = vrot.lane.b32.xlu0 %v2206_v2, %s2144_s7 }
  0x93   : > { %v221_v38 = vpop.permute.xlu1 %220  ;;  %v2333_v39 = vpop.permute.xlu2 %313 }
  0x94   : > { %v226_v40 = vsel %vm224_vm0, %v217_v9, %v221_v38  ;;  %v2339_v41 = vsel %vm224_vm0, %v221_v38, %v209_v30  ;;  %v219_v42 = vpop.permute.xlu0 %218 }
  0x95   : > { %v2341_v43 = vmul.f32 %v238_v35, %v226_v40  ;;  %v2343_v44 = vmul.f32 %v1123_v36, %v226_v40  ;;  %v2346_v45 = vmul.f32 %v1124_v37, %v2339_v41  ;;  %v225_v46 = vsel %vm224_vm0, %v215_v8, %v219_v42 }
  0x96   : > { %v2352_v47 = vsel %vm224_vm0, %v219_v42, %v207_v20  ;;  %v2354_v48 = vmul.f32 %v238_v35, %v225_v46  ;;  %v2356_v49 = vmul.f32 %v1123_v36, %v225_v46  ;;  %v1149_v8 = vperm.slane %v2296_v23, 1 }
  0x97   : > { %3987 = vst [vmem:[#allocation9_spill] sm:$0xff] %v2341_v43  ;;  %v2359_v50 = vmul.f32 %v1124_v37, %v2352_v47  ;;  %vm691_vm0 = vcmp.lt.s32.totalorder %v2265_v12, 9 }
  0x98   : > { %3988 = vst [vmem:[#allocation10_spill] sm:$0xff] %v2343_v44 }
  0x99   : > { %3989 = vst [vmem:[#allocation11_spill] sm:$0xff] %v2346_v45  ;;  %527 = vrot.lane.b32.xlu1 %v2200_v0, %s2144_s7  ;;  %964 = vrot.lane.b32.xlu2 %v2218_v5, %s2145_s8 }
  0x9a   : > { %3990 = vst [vmem:[#allocation12_spill] sm:$0xff] %v2352_v47  ;;  %525 = vrot.lane.b32.xlu0 %v2215_v4, %s2144_s7 }
  0x9b   : > { %3991 = vst [vmem:[#allocation13_spill] sm:$0xff] %v2354_v48  ;;  %v264_v51 = vpop.permute.xlu1 %263  ;;  %v2367_v52 = vpop.permute.xlu2 %319 }
  0x9c   : > { %3992 = vst [vmem:[#allocation14_spill] sm:$0xff] %v2356_v49  ;;  %v2371_v53 = vsel %vm275_vm1, %v260_v11, %v264_v51  ;;  %v262_v54 = vpop.permute.xlu0 %261 }
  0x9d   : > { %3993 = vst [vmem:[#allocation15_spill] sm:$0xff] %v2359_v50  ;;  %v2376_v55 = vsel %vm275_vm1, %v262_v54, %v2282_v17 }
  0xa1   : > { %962 = vrot.lane.b32.xlu1 %v2206_v2, %s2145_s8  ;;  %966 = vrot.lane.b32.xlu2 %v2203_v1, %s2145_s8 }
  0xa2   : > { %968 = vrot.lane.b32.xlu0 %v2215_v4, %s2145_s8 }
  0xa3   : > { %v270_v62 = vpop.permute.xlu1 %269  ;;  %v326_v63 = vpop.permute.xlu2 %325 }
  0xa4   : > { %v279_v9 = vsel %vm275_vm1, %v2282_v17, %v270_v62  ;;  %v2406_v10 = vsel %vm327_vm2, %v326_v63, %v2333_v39  ;;  %v268_v11 = vpop.permute.xlu0 %267 }
  0xa5   : > { %v2408_v14 = vmul.f32 %v289_v58, %v279_v9  ;;  %v2411_v16 = vmul.f32 %v1178_v59, %v2406_v10  ;;  %v276_v18 = vsel %vm275_vm1, %v268_v11, %v272_v27  ;;  %v278_v19 = vsel %vm275_vm1, %v264_v51, %v268_v11  ;;  %v2457_v51 = vld [vmem:[%s3927_s2 + $0x8] sm:$0xf] }
  0xa6   : > { %v2417_v20 = vmul.f32 %v289_v58, %v278_v19  ;;  %v2419_v17 = vmul.f32 %v290_v60, %v276_v18  ;;  %v2421_v26 = vmul.f32 %v1150_v61, %v276_v18  ;;  %v2423_v28 = vmul.f32 %v1149_v8, %v279_v9 }
  0xa7   : > { %3994 = vst [vmem:[#allocation16_spill] sm:$0xff] %v2408_v14  ;;  %v2425_v30 = vmul.f32 %v1149_v8, %v278_v19  ;;  %v1177_v19 = vperm.slane %v2381_v56, 2 }
  0xa8   : > { %3995 = vst [vmem:[#allocation17_spill] sm:$0xff] %v2411_v16 }
  0xa9   : > { %3996 = vst [vmem:[#allocation18_spill] sm:$0xff] %v2417_v20  ;;  %585 = vrot.lane.b32.xlu1 %v2224_v6, %s2146_s13  ;;  %912 = vrot.lane.b32.xlu2 %v2218_v5, %s2147_s14 }
  0xaa   : > { %3997 = vst [vmem:[#allocation19_spill] sm:$0xff] %v2419_v17  ;;  %573 = vrot.lane.b32.xlu0 %v2218_v5, %s2146_s13 }
  0xab   : > { %3998 = vst [vmem:[#allocation20_spill] sm:$0xff] %v2421_v26  ;;  %v312_v27 = vpop.permute.xlu1 %311  ;;  %v2433_v35 = vpop.permute.xlu2 %367 }
  0xac   : > { %3999 = vst [vmem:[#allocation21_spill] sm:$0xff] %v2423_v28  ;;  %v274_v36 = vpop.permute.xlu0 %273 }
  0xad   : > { %4000 = vst [vmem:[#allocation22_spill] sm:$0xff] %v2425_v30  ;;  %v277_v37 = vsel %vm275_vm1, %v270_v62, %v274_v36  ;;  %v2439_v38 = vsel %vm275_vm1, %v274_v36, %v262_v54  ;;  %v341_v54 = vperm.slane %v2457_v51, 2  ;;  %vm1030_vm1 = vcmp.lt.s32.totalorder %v2265_v12, 120 }
  0xae   : > { %v2441_v40 = vmul.f32 %v290_v60, %v277_v37  ;;  %v2443_v42 = vmul.f32 %v1150_v61, %v277_v37  ;;  %v2448_v46 = vmul.f32 %v1151_v25, %v2439_v38  ;;  %v1176_v25 = vperm.slane %v2381_v56, 1 }
  0xb0   : > { %4001 = vst [vmem:[#allocation23_spill] sm:$0xff] %v2441_v40 }
  0xb1   : > { %4002 = vst [vmem:[#allocation24_spill] sm:$0xff] %v2443_v42  ;;  %571 = vrot.lane.b32.xlu1 %v2206_v2, %s2146_s13  ;;  %583 = vrot.lane.b32.xlu2 %v2227_v7, %s2146_s13 }
  0xb2   : > { %4003 = vst [vmem:[#allocation25_spill] sm:$0xff] %v2448_v46  ;;  %916 = vrot.lane.b32.xlu0 %v2215_v4, %s2147_s14 }
  0xb3   : > { %v318_v58 = vpop.permute.xlu1 %317  ;;  %v2462_v60 = vpop.permute.xlu2 %373 }
  0xb4   : > { %v2468_v61 = vsel %vm327_vm2, %v2333_v39, %v318_v58  ;;  %v316_v62 = vpop.permute.xlu0 %315  ;;  %v342_v39 = vperm.slane %v2457_v51, 3 }
  0xb5   : > { %v330_v8 = vsel %vm327_vm2, %v316_v62, %v2367_v52  ;;  %v2475_v9 = vsel %vm327_vm2, %v312_v27, %v316_v62 }
  0xb6   : > { %v2477_v11 = vmul.f32 %v341_v54, %v330_v8  ;;  %v2479_v18 = vmul.f32 %v1176_v25, %v330_v8 }
  0xb8   : > { %4004 = vst [vmem:[#allocation26_spill] sm:$0xff] %v2477_v11 }
  0xb9   : > { %4005 = vst [vmem:[#allocation27_spill] sm:$0xff] %v2479_v18  ;;  %914 = vrot.lane.b32.xlu1 %v2203_v1, %s2147_s14  ;;  %533 = vrot.lane.b32.xlu2 %v2224_v6, %s2144_s7 }
  0xba   : > { %910 = vrot.lane.b32.xlu0 %v2206_v2, %s2147_s14 }
  0xbb   : > { %v324_v36 = vpop.permute.xlu1 %323  ;;  %v2489_v37 = vpop.permute.xlu2 %415 }
  0xbc   : > { %v328_v62 = vsel %vm327_vm2, %v2367_v52, %v324_v36  ;;  %v2496_v8 = vsel %vm327_vm2, %v324_v36, %v312_v27  ;;  %v322_v50 = vpop.permute.xlu0 %321 }
  0xbd   : > { %v2498_v45 = vmul.f32 %v342_v39, %v328_v62  ;;  %v2500_v32 = vmul.f32 %v1177_v19, %v328_v62  ;;  %v2503_v46 = vmul.f32 %v1178_v59, %v2496_v8  ;;  %v329_v16 = vsel %vm327_vm2, %v322_v50, %v326_v63 }
  0xbe   : > { %v331_v49 = vsel %vm327_vm2, %v318_v58, %v322_v50  ;;  %v2509_v44 = vmul.f32 %v342_v39, %v329_v16  ;;  %v2511_v52 = vmul.f32 %v1177_v19, %v329_v16  ;;  %v2537_v16 = vld [vmem:[%s3927_s2 + $0xc] sm:$0xf] }
  0xbf   : > { %4006 = vst [vmem:[#allocation28_spill] sm:$0xff] %v2498_v45  ;;  %v2513_v27 = vmul.f32 %v341_v54, %v331_v49  ;;  %v2515_v36 = vmul.f32 %v1176_v25, %v331_v49  ;;  %v2532_v49 = vld [vmem:[%s3927_s2 + $0x58] sm:$0xf]  ;;  %v393_v54 = vperm.slane %v2537_v16, 2  ;;  %v2551_v25 = vld [vmem:[%s3927_s2 + $0x54] sm:$0xf] }
  0xc0   : > { %4007 = vst [vmem:[#allocation29_spill] sm:$0xff] %v2500_v32  ;;  %v1203_v62 = vperm.slane %v2551_v25, 1  ;;  %v4014_v32 = vperm.slane %v2532_v49, 3  ;;  %v1205_v45 = vperm.slane %v2551_v25, 3 }
  0xc1   : > { %4008 = vst [vmem:[#allocation30_spill] sm:$0xff] %v2503_v46  ;;  %531 = vrot.lane.b32.xlu1 %v2227_v7, %s2144_s7  ;;  %575 = vrot.lane.b32.xlu2 %v2203_v1, %s2146_s13 }
  0xc2   : > { %4009 = vst [vmem:[#allocation31_spill] sm:$0xff] %v2509_v44  ;;  %577 = vrot.lane.b32.xlu0 %v2215_v4, %s2146_s13 }
  0xc3   : > { %4010 = vst [vmem:[#allocation32_spill] sm:$0xff] %v2511_v52  ;;  %v2523_v59 = vpop.permute.xlu1 %365  ;;  %v2525_v50 = vpop.permute.xlu2 %421 }
  0xc4   : > { %4011 = vst [vmem:[#allocation33_spill] sm:$0xff] %v2513_v27  ;;  %v2527_v63 = vpop.permute.xlu0 %363 }
  0xc5   : > { %4012 = vst [vmem:[#allocation34_spill] sm:$0xff] %v2515_v36 }
  0xc9   : > { %629 = vrot.lane.b32.xlu1 %v2215_v4, %s2148_s25  ;;  %833 = vrot.lane.b32.xlu2 %v2218_v5, %s2149_s26 }
  0xca   : > { %625 = vrot.lane.b32.xlu0 %v2218_v5, %s2148_s25 }
  0xcb   : > { %v372_v39 = vpop.permute.xlu1 %371  ;;  %v428_v19 = vpop.permute.xlu2 %427 }
  0xcc   : > { %v382_v46 = vsel %vm379_vm4, %v2433_v35, %v372_v39  ;;  %v2561_v58 = vsel %vm431_vm3, %v428_v19, %v2489_v37  ;;  %v2563_v26 = vpop.permute.xlu0 %369 }
  0xcd   : > { %v2565_v42 = vmul.f32 %v393_v54, %v382_v46  ;;  %v2570_v52 = vmul.f32 %v4014_v32, %v2561_v58  ;;  %v383_v48 = vsel %vm379_vm4, %v2563_v26, %v2462_v60  ;;  %v2580_v40 = vmul.f32 %v1203_v62, %v382_v46 }
  0xce   : > { %v2576_v43 = vmul.f32 %v393_v54, %v383_v48  ;;  %v2578_v17 = vmul.f32 %v1203_v62, %v383_v48  ;;  %v394_v32 = vperm.slane %v2537_v16, 3 }
  0xcf   : > { %4013 = vst [vmem:[#allocation35_spill] sm:$0xff] %v2565_v42 }
  0xd0   : > { %4015 = vst [vmem:[#allocation36_spill] sm:$0xff] %v2570_v52  ;;  %v1204_v52 = vperm.slane %v2551_v25, 2 }
  0xd1   : > { %4016 = vst [vmem:[#allocation37_spill] sm:$0xff] %v2576_v43  ;;  %623 = vrot.lane.b32.xlu1 %v2206_v2, %s2148_s25  ;;  %627 = vrot.lane.b32.xlu2 %v2203_v1, %s2148_s25 }
  0xd2   : > { %4017 = vst [vmem:[#allocation38_spill] sm:$0xff] %v2578_v17  ;;  %845 = vrot.lane.b32.xlu0 %v2224_v6, %s2149_s26 }
  0xd3   : > { %4018 = vst [vmem:[#allocation39_spill] sm:$0xff] %v2580_v40  ;;  %v378_v54 = vpop.permute.xlu1 %377  ;;  %v2591_v48 = vpop.permute.xlu2 %469 }
  0xd4   : > { %v381_v46 = vsel %vm379_vm4, %v2462_v60, %v378_v54  ;;  %v2599_v62 = vsel %vm379_vm4, %v378_v54, %v2523_v59  ;;  %v376_v44 = vpop.permute.xlu0 %375 }
  0xd5   : > { %v2601_v24 = vmul.f32 %v394_v32, %v381_v46  ;;  %v2603_v34 = vmul.f32 %v1204_v52, %v381_v46  ;;  %v2606_v30 = vmul.f32 %v1205_v45, %v2599_v62  ;;  %v380_v21 = vsel %vm379_vm4, %v372_v39, %v376_v44 }
  0xd6   : > { %v2613_v60 = vsel %vm379_vm4, %v376_v44, %v2527_v63  ;;  %v2615_v28 = vmul.f32 %v394_v32, %v380_v21  ;;  %v2617_v54 = vmul.f32 %v1204_v52, %v380_v21  ;;  %v2633_v21 = vld [vmem:[%s3927_s2 + $0x5c] sm:$0xf] }
  0xd7   : > { %4019 = vst [vmem:[#allocation40_spill] sm:$0xff] %v2601_v24  ;;  %v2620_v31 = vmul.f32 %v1205_v45, %v2613_v60  ;;  %v2638_v45 = vld [vmem:[%s3927_s2 + $0x10] sm:$0xf]  ;;  %v4026_v36 = vperm.slane %v2633_v21, 3 }
  0xd8   : > { %4020 = vst [vmem:[#allocation41_spill] sm:$0xff] %v2603_v34  ;;  %v445_v52 = vperm.slane %v2638_v45, 2 }
  0xd9   : > { %4021 = vst [vmem:[#allocation42_spill] sm:$0xff] %v2606_v30  ;;  %843 = vrot.lane.b32.xlu1 %v2227_v7, %s2149_s26  ;;  %781 = vrot.lane.b32.xlu2 %v2218_v5, %s2150_s29  ;;  %v1231_v30 = vperm.slane %v2532_v49, 2 }
  0xda   : > { %4022 = vst [vmem:[#allocation43_spill] sm:$0xff] %v2615_v28  ;;  %831 = vrot.lane.b32.xlu0 %v2206_v2, %s2149_s26  ;;  %v1230_v28 = vperm.slane %v2532_v49, 1 }
  0xdb   : > { %4023 = vst [vmem:[#allocation44_spill] sm:$0xff] %v2617_v54  ;;  %v420_v39 = vpop.permute.xlu1 %419  ;;  %v2628_v44 = vpop.permute.xlu2 %475 }
  0xdc   : > { %4024 = vst [vmem:[#allocation45_spill] sm:$0xff] %v2620_v31  ;;  %v418_v32 = vpop.permute.xlu0 %417  ;;  %v446_v31 = vperm.slane %v2638_v45, 3 }
  0xe1   : > { %779 = vrot.lane.b32.xlu1 %v2206_v2, %s2150_s29  ;;  %791 = vrot.lane.b32.xlu2 %v2227_v7, %s2150_s29 }
  0xe2   : > { %793 = vrot.lane.b32.xlu0 %v2224_v6, %s2150_s29 }
  0xe3   : > { %v426_v54 = vpop.permute.xlu1 %425  ;;  %v2651_v34 = vpop.permute.xlu2 %481 }
  0xe4   : > { %v435_v24 = vsel %vm431_vm3, %v2525_v50, %v426_v54  ;;  %v2661_v46 = vsel %vm483_vm5, %v2651_v34, %v2591_v48  ;;  %v424_v18 = vpop.permute.xlu0 %423 }
  0xe5   : > { %v2663_v20 = vmul.f32 %v445_v52, %v435_v24  ;;  %v2668_v14 = vmul.f32 %v4026_v36, %v2661_v46  ;;  %v432_v40 = vsel %vm431_vm3, %v424_v18, %v428_v19  ;;  %v434_v11 = vsel %vm431_vm3, %v420_v39, %v424_v18 }
  0xe6   : > { %v2674_v17 = vmul.f32 %v445_v52, %v434_v11  ;;  %v2676_v27 = vmul.f32 %v446_v31, %v432_v40  ;;  %v2678_v42 = vmul.f32 %v1231_v30, %v432_v40  ;;  %v2680_v43 = vmul.f32 %v1230_v28, %v435_v24 }
  0xe7   : > { %4025 = vst [vmem:[#allocation46_spill] sm:$0xff] %v2663_v20  ;;  %v2682_v20 = vmul.f32 %v1230_v28, %v434_v11  ;;  %v4035_v52 = vperm.slane %v2532_v49, 3 }
  0xe8   : > { %4027 = vst [vmem:[#allocation47_spill] sm:$0xff] %v2668_v14 }
  0xe9   : > { %4028 = vst [vmem:[#allocation48_spill] sm:$0xff] %v2674_v17  ;;  %741 = vrot.lane.b32.xlu1 %v2224_v6, %s2151_s10  ;;  %972 = vrot.lane.b32.xlu2 %v2212_v3, %s2145_s8  ;;  %v2742_v17 = vsel %vm431_vm3, %v418_v32, %v2525_v50  ;;  %v1258_v50 = vperm.slane %v2633_v21, 2 }
  0xea   : > { %4029 = vst [vmem:[#allocation49_spill] sm:$0xff] %v2676_v27  ;;  %729 = vrot.lane.b32.xlu0 %v2218_v5, %s2151_s10 }
  0xeb   : > { %4030 = vst [vmem:[#allocation50_spill] sm:$0xff] %v2678_v42  ;;  %v468_v18 = vpop.permute.xlu1 %467  ;;  %v2690_v36 = vpop.permute.xlu2 %523 }
  0xec   : > { %4031 = vst [vmem:[#allocation51_spill] sm:$0xff] %v2680_v43  ;;  %v430_v19 = vpop.permute.xlu0 %429  ;;  %v1229_v43 = vperm.slane %v2532_v49, 0 }
  0xed   : > { %4032 = vst [vmem:[#allocation52_spill] sm:$0xff] %v2682_v20  ;;  %v433_v24 = vsel %vm431_vm3, %v426_v54, %v430_v19  ;;  %v2696_v28 = vsel %vm431_vm3, %v430_v19, %v418_v32  ;;  %v2714_v54 = vld [vmem:[%s3927_s2 + $0x14] sm:$0xf] }
  0xee   : > { %v2698_v40 = vmul.f32 %v446_v31, %v433_v24  ;;  %v2700_v11 = vmul.f32 %v1231_v30, %v433_v24  ;;  %v2705_v14 = vmul.f32 %v4035_v52, %v2696_v28  ;;  %v1256_v31 = vperm.slane %v2633_v21, 0 }
  0xef   : > { %v497_v30 = vperm.slane %v2714_v54, 2  ;;  %v1257_v52 = vperm.slane %v2633_v21, 1  ;;  %v498_v49 = vperm.slane %v2714_v54, 3  ;;  %v1241_v32 = vmul.f32 %v1229_v43, %v2742_v17 }
  0xf0   : > { %4033 = vst [vmem:[#allocation53_spill] sm:$0xff] %v2698_v40 }
  0xf1   : > { %4034 = vst [vmem:[#allocation54_spill] sm:$0xff] %v2700_v11  ;;  %1072 = vrot.lane.b32.xlu1 %v2215_v4, %s2152_s11  ;;  %727 = vrot.lane.b32.xlu2 %v2206_v2, %s2151_s10 }
  0xf2   : > { %4036 = vst [vmem:[#allocation55_spill] sm:$0xff] %v2705_v14  ;;  %1068 = vrot.lane.b32.xlu0 %v2218_v5, %s2152_s11 }
  0xf3   : > { %v474_v19 = vpop.permute.xlu1 %473  ;;  %v2720_v24 = vpop.permute.xlu2 %964 }
  0xf4   : > { %4037 = vst [vmem:[#allocation56_spill] sm:$0xff] %v2720_v24  ;;  %v472_v14 = vpop.permute.xlu0 %471  ;;  %v2726_v42 = vsel %vm483_vm5, %v2591_v48, %v474_v19 }
  0xf5   : > { %v486_v11 = vsel %vm483_vm5, %v472_v14, %v2628_v44  ;;  %v2733_v27 = vsel %vm483_vm5, %v468_v18, %v472_v14  ;;  %v1268_v40 = vmul.f32 %v1256_v31, %v2726_v42  ;;  %v2750_v14 = vsel %vm431_vm3, %v2489_v37, %v420_v39 }
  0xf6   : > { %v2736_v20 = vmul.f32 %v497_v30, %v486_v11  ;;  %v2744_v48 = vmul.f32 %v1257_v52, %v486_v11  ;;  %v1264_v47 = vmul.f32 %v1256_v31, %v2733_v27  ;;  %v2765_v37 = vsel %vm379_vm4, %v2523_v59, %v2563_v26 }
  0xf7   : > { %1650 = vmatpush.msra.mxu2 %v1268_v40  ;;  %v1202_v11 = vperm.slane %v2551_v25, 0  ;;  %v1175_v31 = vperm.slane %v2381_v56, 0  ;;  %v1237_v25 = vmul.f32 %v1229_v43, %v2750_v14 }
  0xf8   : > { %4038 = vst [vmem:[#allocation57_spill] sm:$0xff] %v2736_v20 }
  0xf9   : > { %4039 = vst [vmem:[#allocation58_spill] sm:$0xff] %v2744_v48  ;;  %970 = vrot.lane.b32.xlu1 %v2200_v0, %s2145_s8  ;;  %1066 = vrot.lane.b32.xlu2 %v2206_v2, %s2152_s11  ;;  %v1214_v43 = vmul.f32 %v1202_v11, %v2765_v37 }
  0xfa   : > { %739 = vrot.lane.b32.xlu0 %v2227_v7, %s2151_s10  ;;  %1651 = vmatpush.msra.mxu2 %v1264_v47  ;;  %v2775_v47 = vsel %vm379_vm4, %v2527_v63, %v2433_v35  ;;  %v4042_v35 = vperm.slane %v2633_v21, 3 }
  0xfb   : > { %v480_v39 = vpop.permute.xlu1 %479  ;;  %v2767_v40 = vpop.permute.xlu2 %966  ;;  %v1210_v21 = vmul.f32 %v1202_v11, %v2775_v47 }
  0xfc   : > { %v484_v48 = vsel %vm483_vm5, %v2628_v44, %v480_v39  ;;  %v2782_v26 = vsel %vm483_vm5, %v480_v39, %v468_v18  ;;  %1652 = vmatpush.msra.mxu2 %v1241_v32  ;;  %v478_v59 = vpop.permute.xlu0 %477 }
  0xfd   : > { %v2785_v20 = vmul.f32 %v498_v49, %v484_v48  ;;  %v2787_v56 = vmul.f32 %v1258_v50, %v484_v48  ;;  %v2792_v63 = vmul.f32 %v4042_v35, %v2782_v26  ;;  %v485_v44 = vsel %vm483_vm5, %v478_v59, %v2651_v34 }
  0xfe   : > { %v487_v18 = vsel %vm483_vm5, %v474_v19, %v478_v59  ;;  %v2799_v32 = vmul.f32 %v498_v49, %v485_v44  ;;  %v2801_v39 = vmul.f32 %v1258_v50, %v485_v44  ;;  %1653 = vmatpush.msra.mxu2 %v1237_v25  ;;  %v1187_v34 = vmul.f32 %v1175_v31, %v2468_v61  ;;  %v2836_v25 = vld [vmem:[%s3927_s2 + $0x18] sm:$0xf] }
  0xff   : > { %4040 = vst [vmem:[#allocation59_spill] sm:$0xff] %v2785_v20  ;;  %v2804_v48 = vmul.f32 %v497_v30, %v487_v18  ;;  %v1148_v30 = vperm.slane %v2296_v23, 0  ;;  %v1183_v50 = vmul.f32 %v1175_v31, %v2475_v9  ;;  %v1121_v35 = vperm.slane %v2280_v15, 0  ;;  %v2842_v31 = vld [vmem:[%s3927_s2 + $0x60] sm:$0xf] }
 0x100   : > { %4041 = vst [vmem:[#allocation60_spill] sm:$0xff] %v2787_v56  ;;  %v2806_v56 = vmul.f32 %v1257_v52, %v487_v18  ;;  %1654 = vmatpush.msra.mxu2 %v1214_v43  ;;  %v3932_v44 = vperm.slane %v2836_v25, 2  ;;  %v3931_v18 = vperm.slane %v2842_v31, 1 }
 0x101   : > { %4043 = vst [vmem:[#allocation61_spill] sm:$0xff] %v2792_v63  ;;  %581 = vrot.lane.b32.xlu1 %v2212_v3, %s2146_s13  ;;  %677 = vrot.lane.b32.xlu2 %v2218_v5, %s2153_s19  ;;  %v1160_v59 = vmul.f32 %v1148_v30, %v2376_v55  ;;  %v1156_v23 = vmul.f32 %v1148_v30, %v2371_v53  ;;  %v2875_v63 = vld [vmem:[%s3927_s2 + $0x3c] sm:$0xf] }
 0x102   : > { %4044 = vst [vmem:[#allocation62_spill] sm:$0xff] %v2799_v32  ;;  %1070 = vrot.lane.b32.xlu0 %v2203_v1, %s2152_s11  ;;  %1655 = vmatpush.msra.mxu2 %v1210_v21  ;;  %v1133_v15 = vmul.f32 %v1121_v35, %v2320_v33 }
 0x103   : > { %4045 = vst [vmem:[#allocation63_spill] sm:$0xff] %v2801_v39  ;;  %v2818_v19 = vpop.permute.xlu1 %521  ;;  %v2820_v52 = vpop.permute.xlu2 %912 }
 0x104   : > { %4046 = vst [vmem:[#allocation64_spill] sm:$0xff] %v2804_v48  ;;  %1656 = vmatpush.msra.mxu2 %v1187_v34  ;;  %v2822_v49 = vpop.permute.xlu0 %519 }
 0x105   : > { %4047 = vst [vmem:[#allocation65_spill] sm:$0xff] %v2806_v56  ;;  %v2829_v11 = vsel %vm535_vm6, %v2822_v49, %v2690_v36  ;;  %v547_v56 = vperm.slane %v2836_v25, 0 }
 0x106   : > { %4048 = vst [vmem:[#allocation66_spill] sm:$0xff] %v2820_v52  ;;  %1657 = vmatpush.msra.mxu2 %v1183_v50  ;;  %v1129_v50 = vmul.f32 %v1121_v35, %v2291_v22  ;;  %v990_v35 = vperm.slane %v2875_v63, 0  ;;  %v2968_v22 = vld [vmem:[%s3927_s2 + $0x34] sm:$0xf] }
 0x107   : > { %4060 = vst [vmem:[#allocation78_spill] sm:$0xff] %v2968_v22 }
 0x108   : > { %1658 = vmatpush.msra.mxu2 %v1160_v59 }
 0x109   : > { %920 = vrot.lane.b32.xlu1 %v2212_v3, %s2147_s14  ;;  %1016 = vrot.lane.b32.xlu2 %v2218_v5, %s2154_s27 }
 0x10a   : > { %689 = vrot.lane.b32.xlu0 %v2224_v6, %s2153_s19  ;;  %1659 = vmatpush.msra.mxu2 %v1156_v23 }
 0x10b   : > { %v2853_v43 = vpop.permute.xlu1 %527  ;;  %v2855_v21 = vpop.permute.xlu2 %583 }
 0x10c   : > { %4049 = vst [vmem:[#allocation67_spill] sm:$0xff] %v2855_v21  ;;  %v538_v34 = vsel %vm535_vm6, %v2690_v36, %v2853_v43  ;;  %1660 = vmatpush.msra.mxu2 %v1133_v15  ;;  %v2861_v30 = vpop.permute.xlu0 %525  ;;  %v3934_v36 = vperm.slane %v2842_v31, 3 }
 0x10d   : > { %v2866_v59 = vmul.f32 %v3932_v44, %v538_v34  ;;  %v2870_v23 = vmul.f32 %v3931_v18, %v538_v34 }
 0x10e   : > { %1661 = vmatpush.msra.mxu2 %v1129_v50 }
 0x10f   : > { %4050 = vst [vmem:[#allocation68_spill] sm:$0xff] %v2866_v59 }
 0x110   : > { %4051 = vst [vmem:[#allocation69_spill] sm:$0xff] %v2870_v23 }
 0x111   : > { %579 = vrot.lane.b32.xlu1 %v2200_v0, %s2146_s13  ;;  %675 = vrot.lane.b32.xlu2 %v2206_v2, %s2153_s19 }
 0x112   : > { %1020 = vrot.lane.b32.xlu0 %v2215_v4, %s2154_s27 }
 0x113   : > { %v2886_v15 = vpop.permute.xlu1 %962  ;;  %v2888_v34 = vpop.permute.xlu2 %533 }
 0x114   : > { %4052 = vst [vmem:[#allocation70_spill] sm:$0xff] %v2886_v15  ;;  %v983_v50 = vsel %vm978_vm7, %v2886_v15, %v2767_v40  ;;  %v543_v18 = vsel %vm535_vm6, %v2888_v34, %v2818_v19  ;;  %v2898_v44 = vpop.permute.xlu0 %968  ;;  %v2911_v15 = vld [vmem:[%s3927_s2 + $0x1c] sm:$0xf] }
 0x115   : > { %4053 = vst [vmem:[#allocation71_spill] sm:$0xff] %v2888_v34  ;;  %v2902_v39 = vmul.f32 %v3934_v36, %v543_v18  ;;  %v984_v20 = vsel %vm978_vm7, %v2720_v24, %v2898_v44  ;;  %v998_v23 = vmul.f32 %v990_v35, %v983_v50 }
 0x116   : > { %v1002_v32 = vmul.f32 %v990_v35, %v984_v20  ;;  %v599_v20 = vperm.slane %v2911_v15, 0 }
 0x117   : > { %4054 = vst [vmem:[#allocation72_spill] sm:$0xff] %v2902_v39 }
 0x118   : > { %1627 = vmatpush.msra.mxu1 %v1002_v32 }
 0x119   : > { %918 = vrot.lane.b32.xlu1 %v2200_v0, %s2147_s14  ;;  %1014 = vrot.lane.b32.xlu2 %v2206_v2, %s2154_s27 }
 0x11a   : > { %687 = vrot.lane.b32.xlu0 %v2227_v7, %s2153_s19  ;;  %1628 = vmatpush.msra.mxu1 %v998_v23  ;;  %v2937_v23 = vld [vmem:[%s3927_s2 + $0x38] sm:$0xf] }
 0x11b   : > { %v2921_v35 = vpop.permute.xlu1 %585  ;;  %v2923_v50 = vpop.permute.xlu2 %575  ;;  %4057 = vst [vmem:[#allocation75_spill] sm:$0xff] %v2937_v23  ;;  %v938_v24 = vperm.slane %v2937_v23, 0 }
 0x11c   : > { %4055 = vst [vmem:[#allocation73_spill] sm:$0xff] %v2921_v35  ;;  %v2925_v36 = vpop.permute.xlu0 %573 }
 0x11d   : > { %v2931_v32 = vsel %vm587_vm8, %v2921_v35, %v2925_v36 }
 0x11e   : > { %4056 = vst [vmem:[#allocation74_spill] sm:$0xff] %v2931_v32  ;;  %v611_v39 = vmul.f32 %v599_v20, %v2931_v32 }
 0x120   : > { %1604 = vmatpush.msra.mxu0 %v611_v39 }
 0x121   : > { %529 = vrot.lane.b32.xlu1 %v2212_v3, %s2144_s7  ;;  %637 = vrot.lane.b32.xlu2 %v2224_v6, %s2148_s25 }
 0x122   : > { %1018 = vrot.lane.b32.xlu0 %v2203_v1, %s2154_s27 }
 0x123   : > { %v2947_v32 = vpop.permute.xlu1 %571  ;;  %v2949_v34 = vpop.permute.xlu2 %833 }
 0x124   : > { %v2955_v39 = vsel %vm587_vm8, %v2855_v21, %v2947_v32  ;;  %v2957_v35 = vpop.permute.xlu0 %916  ;;  %v559_v21 = vmul.f32 %v547_v56, %v543_v18 }
 0x125   : > { %4058 = vst [vmem:[#allocation76_spill] sm:$0xff] %v2955_v39  ;;  %v932_v48 = vsel %vm926_vm9, %v2820_v52, %v2957_v35  ;;  %v607_v59 = vmul.f32 %v599_v20, %v2955_v39 }
 0x126   : > { %4059 = vst [vmem:[#allocation77_spill] sm:$0xff] %v2957_v35  ;;  %v950_v23 = vmul.f32 %v938_v24, %v932_v48  ;;  %v886_v48 = vperm.slane %v2968_v22, 0  ;;  %v3950_v22 = vperm.slane %v2842_v31, 2 }
 0x127   : > { %1605 = vmatpush.msra.mxu0 %v607_v59 }
 0x128   : > { %1629 = vmatpush.msra.mxu1 %v950_v23  ;;  %v898_v52 = vmul.f32 %v886_v48, %v2218_v5  ;;  %v894_v35 = vmul.f32 %v886_v48, %v2206_v2  ;;  %v495_v48 = vperm.slane %v2714_v54, 0 }
 0x129   : > { %635 = vrot.lane.b32.xlu1 %v2227_v7, %s2148_s25  ;;  %974 = vrot.lane.b32.xlu2 %v2227_v7, %s2145_s8 }
 0x12a   : > { %976 = vrot.lane.b32.xlu0 %v2224_v6, %s2145_s8  ;;  %1606 = vmatpush.msra.mxu0 %v559_v21  ;;  %v3951_v21 = vperm.slane %v2836_v25, 3 }
 0x12b   : > { %v2977_v59 = vpop.permute.xlu1 %914  ;;  %v2979_v20 = vpop.permute.xlu2 %627 }
 0x12c   : > { %4061 = vst [vmem:[#allocation79_spill] sm:$0xff] %v2977_v59  ;;  %v2981_v39 = vpop.permute.xlu0 %910 }
 0x12d   : > { %4062 = vst [vmem:[#allocation80_spill] sm:$0xff] %v2981_v39  ;;  %v931_v18 = vsel %vm926_vm9, %v2981_v39, %v2977_v59  ;;  %v4064_v39 = vperm.slane %v2842_v31, 3 }
 0x12e   : > { %v946_v23 = vmul.f32 %v938_v24, %v931_v18 }
 0x130   : > { %1630 = vmatpush.msra.mxu1 %v946_v23 }
 0x131   : > { %837 = vrot.lane.b32.xlu1 %v2215_v4, %s2149_s26  ;;  %924 = vrot.lane.b32.xlu2 %v2224_v6, %s2147_s14 }
 0x132   : > { %633 = vrot.lane.b32.xlu0 %v2212_v3, %s2148_s25  ;;  %1631 = vmatpush.msra.mxu1 %v898_v52 }
 0x133   : > { %v532_v24 = vpop.permute.xlu1 %531  ;;  %v2997_v18 = vpop.permute.xlu2 %781 }
 0x134   : > { %v536_v2 = vsel %vm535_vm6, %v2853_v43, %v532_v24  ;;  %v542_v5 = vsel %vm535_vm6, %v532_v24, %v2822_v49  ;;  %v3005_v6 = vpop.permute.xlu0 %577  ;;  %1632 = vmatpush.msra.mxu1 %v894_v35  ;;  %v3023_v49 = vld [vmem:[%s3927_s2 + $0x68] sm:$0xf]  ;;  %v507_v35 = vmul.f32 %v495_v48, %v2661_v46 }
 0x135   : > { %v3010_v23 = vmul.f32 %v3951_v21, %v536_v2  ;;  %v3014_v52 = vmul.f32 %v3950_v22, %v536_v2  ;;  %v3018_v43 = vmul.f32 %v4064_v39, %v542_v5  ;;  %v555_v59 = vmul.f32 %v547_v56, %v542_v5 }
 0x136   : > { %v503_v56 = vmul.f32 %v495_v48, %v2782_v26  ;;  %v443_v39 = vperm.slane %v2638_v45, 0  ;;  %v287_v21 = vperm.slane %v2386_v57, 0 }
 0x137   : > { %4063 = vst [vmem:[#allocation81_spill] sm:$0xff] %v3014_v52  ;;  %1607 = vmatpush.msra.mxu0 %v555_v59  ;;  %v1337_v59 = vperm.slane %v3023_v49, 0 }
 0x138   : > { %4065 = vst [vmem:[#allocation82_spill] sm:$0xff] %v3018_v43  ;;  %v451_v5 = vmul.f32 %v443_v39, %v2561_v58 }
 0x139   : > { %835 = vrot.lane.b32.xlu1 %v2203_v1, %s2149_s26  ;;  %922 = vrot.lane.b32.xlu2 %v2227_v7, %s2147_s14  ;;  %v455_v7 = vmul.f32 %v443_v39, %v2696_v28 }
 0x13a   : > { %631 = vrot.lane.b32.xlu0 %v2200_v0, %s2148_s25  ;;  %1608 = vmatpush.msra.mxu0 %v507_v35  ;;  %v391_v0 = vperm.slane %v2537_v16, 0  ;;  %v3055_v35 = vld [vmem:[%s3927_s2 + $0x30] sm:$0xf] }
 0x13b   : > { %v3036_v24 = vpop.permute.xlu1 %629  ;;  %v3038_v46 = vpop.permute.xlu2 %791  ;;  %v859_v39 = vperm.slane %v3055_v35, 0 }
 0x13c   : > { %4066 = vst [vmem:[#allocation83_spill] sm:$0xff] %v3038_v46  ;;  %1609 = vmatpush.msra.mxu0 %v503_v56  ;;  %v3040_v2 = vpop.permute.xlu0 %625  ;;  %v403_v28 = vmul.f32 %v391_v0, %v2599_v62  ;;  %v339_v56 = vperm.slane %v2457_v51, 0  ;;  %v399_v58 = vmul.f32 %v391_v0, %v2613_v60 }
 0x13d   : > { %v3048_v26 = vsel %vm639_vm10, %v3040_v2, %v3036_v24 }
 0x13e   : > { %1610 = vmatpush.msra.mxu0 %v455_v7  ;;  %v1349_v48 = vmul.f32 %v1337_v59, %v3048_v26 }
 0x140   : > { %1611 = vmatpush.msra.mxu0 %v451_v5  ;;  %1683 = vmatpush.msra.mxu3 %v1349_v48 }
 0x141   : > { %783 = vrot.lane.b32.xlu1 %v2203_v1, %s2150_s29  ;;  %733 = vrot.lane.b32.xlu2 %v2215_v4, %s2151_s10 }
 0x142   : > { %785 = vrot.lane.b32.xlu0 %v2215_v4, %s2150_s29  ;;  %1612 = vmatpush.msra.mxu0 %v403_v28  ;;  %v351_v4 = vmul.f32 %v339_v56, %v2406_v10  ;;  %v3089_v28 = vld [vmem:[%s3927_s2 + $0x64] sm:$0xf]  ;;  %v347_v10 = vmul.f32 %v339_v56, %v2496_v8  ;;  %v541_v56 = vsel %vm535_vm6, %v2818_v19, %v2861_v30 }
 0x143   : > { %v3068_v7 = vpop.permute.xlu1 %623  ;;  %v3070_v62 = vpop.permute.xlu2 %972  ;;  %v1310_v43 = vperm.slane %v3089_v28, 0 }
 0x144   : > { %v3076_v5 = vsel %vm639_vm10, %v3068_v7, %v2979_v20  ;;  %1613 = vmatpush.msra.mxu0 %v399_v58  ;;  %v3078_v48 = vpop.permute.xlu0 %845  ;;  %v593_v58 = vsel %vm587_vm8, %v2925_v36, %v3005_v6  ;;  %v235_v36 = vperm.slane %v2270_v13, 0  ;;  %v982_v19 = vsel %vm978_vm7, %v2898_v44, %v3070_v62 }
 0x145   : > { %4067 = vst [vmem:[#allocation84_spill] sm:$0xff] %v3078_v48  ;;  %v855_v60 = vsel %vm847_vm11, %v3078_v48, %v2949_v34  ;;  %v1345_v0 = vmul.f32 %v1337_v59, %v3076_v5  ;;  %v592_v59 = vsel %vm587_vm8, %v2947_v32, %v2923_v50  ;;  %v299_v48 = vmul.f32 %v287_v21, %v2439_v38 }
 0x146   : > { %1614 = vmatpush.msra.mxu0 %v351_v4  ;;  %v871_v22 = vmul.f32 %v859_v39, %v855_v60  ;;  %v1322_v8 = vmul.f32 %v1310_v43, %v593_v58  ;;  %v1318_v32 = vmul.f32 %v1310_v43, %v592_v59  ;;  %v991_v4 = vperm.slane %v2875_v63, 1 }
 0x147   : > { %1684 = vmatpush.msra.mxu3 %v1345_v0 }
 0x148   : > { %1615 = vmatpush.msra.mxu0 %v347_v10  ;;  %1633 = vmatpush.msra.mxu1 %v871_v22  ;;  %v295_v22 = vmul.f32 %v287_v21, %v2309_v29  ;;  %v247_v29 = vmul.f32 %v235_v36, %v2339_v41  ;;  %v600_v10 = vperm.slane %v2911_v15, 1  ;;  %v1003_v41 = vmul.f32 %v991_v4, %v982_v19  ;;  %v3151_v19 = vld [vmem:[%s2197_s20 + $0x28] sm:$0xff] }
 0x149   : > { %1076 = vrot.lane.b32.xlu1 %v2212_v3, %s2152_s11  ;;  %731 = vrot.lane.b32.xlu2 %v2203_v1, %s2151_s10  ;;  %v1283_v1 = vperm.slane %v2842_v31, 0 }
 0x14a   : > { %841 = vrot.lane.b32.xlu0 %v2212_v3, %s2149_s26  ;;  %1616 = vmatpush.msra.mxu0 %v299_v48  ;;  %v4069_v48 = vld [vmem:[#allocation12_spill] sm:$0xff] }
 0x14b   : > { %1685 = vmatpush.msra.mxu3 %v1322_v8  ;;  %v3115_v13 = vpop.permute.xlu1 %843  ;;  %v3117_v38 = vpop.permute.xlu2 %727  ;;  %v1295_v43 = vmul.f32 %v1283_v1, %v541_v56  ;;  %v243_v60 = vmul.f32 %v235_v36, %v4069_v48  ;;  %v1291_v44 = vmul.f32 %v1283_v1, %v2829_v11  ;;  %v3140_v8 = vld [vmem:[%s3927_s2 + $0x2c] sm:$0xf]  ;;  %v608_v36 = vmul.f32 %v600_v10, %v592_v59 }
 0x14c   : > { %4068 = vst [vmem:[#allocation85_spill] sm:$0xff] %v3115_v13  ;;  %1617 = vmatpush.msra.mxu0 %v295_v22  ;;  %v3125_v3 = vpop.permute.xlu0 %831  ;;  %v612_v22 = vmul.f32 %v600_v10, %v593_v58  ;;  %v807_v1 = vperm.slane %v3140_v8, 0 }
 0x14d   : > { %1686 = vmatpush.msra.mxu3 %v1318_v32  ;;  %v854_v21 = vsel %vm847_vm11, %v3115_v13, %v3125_v3  ;;  %v548_v32 = vperm.slane %v2836_v25, 1 }
 0x14e   : > { %1618 = vmatpush.msra.mxu0 %v247_v29  ;;  %v867_v0 = vmul.f32 %v859_v39, %v854_v21  ;;  %v3143_v39 = vld [vmem:[%s2197_s20 + $0x10] sm:$0xff] }
 0x14f   : > { %1687 = vmatpush.msra.mxu3 %v1295_v43  ;;  %v560_v21 = vmul.f32 %v548_v32, %v541_v56  ;;  %v496_v43 = vperm.slane %v2714_v54, 1  ;;  %v3176_v54 = vld [vmem:[%s3927_s2 + $0x28] sm:$0xf] }
 0x150   : > { %1619 = vmatpush.msra.mxu0 %v243_v60  ;;  %1634 = vmatpush.msra.mxu1 %v867_v0  ;;  %v556_v0 = vmul.f32 %v548_v32, %v2829_v11  ;;  %v3188_v11 = vld [vmem:[%s2197_s20 + $0x30] sm:$0xff] }
 0x151   : > { %1688 = vmatpush.msra.mxu3 %v1291_v44  ;;  %1074 = vrot.lane.b32.xlu1 %v3143_v39, %s2152_s11  ;;  %v508_v56 = vmul.f32 %v496_v43, %v2726_v42  ;;  %v504_v42 = vmul.f32 %v496_v43, %v2733_v27 }
 0x152   : > { %1719 = vmatpush.msrb.mxu0 %v1003_v41  ;;  %681 = vrot.lane.b32.xlu2 %v3151_v19, %s2153_s19  ;;  %v444_v41 = vperm.slane %v2638_v45, 1  ;;  %v755_v45 = vperm.slane %v3176_v54, 0 }
 0x153   : > { %1696 = vmatpush.msrb.mxu3 %v612_v22  ;;  %839 = vrot.lane.b32.xlu0 %v3143_v39, %s2149_s26  ;;  %v3157_v58 = vpop.permute.xlu1 %779  ;;  %v3159_v29 = vpop.permute.xlu2 %1066  ;;  %v3183_v22 = vld [vmem:[%s3925_s0 + $0x18] sm:$0xff] }
 0x154   : > { %4070 = vst [vmem:[#allocation12_spill] sm:$0xff] %v3159_v29  ;;  %v3161_v59 = vpop.permute.xlu0 %793  ;;  %v802_v48 = vsel %vm795_vm12, %v3038_v46, %v3157_v58  ;;  %2078 = vmatmul.msk.f32.vlgmr.msra.gmra.mxu3 %vm1597_vm13, %v3183_v22  ;;  %v456_v27 = vmul.f32 %v444_v41, %v2742_v17 }
 0x155   : > { %1697 = vmatpush.msrb.mxu3 %v608_v36  ;;  %4071 = vst [vmem:[#allocation86_spill] sm:$0xff] %v3161_v59  ;;  %v803_v60 = vsel %vm795_vm12, %v3161_v59, %v2997_v18  ;;  %v815_v44 = vmul.f32 %v807_v1, %v802_v48  ;;  %v3196_v36 = vld [vmem:[%s2197_s20 + $0x8] sm:$0xff]  ;;  %v452_v48 = vmul.f32 %v444_v41, %v2750_v14  ;;  %v3355_v59 = vld [vmem:[%s3925_s0 + $0x38] sm:$0xff] }
 0x156   : > { %v819_v10 = vmul.f32 %v807_v1, %v803_v60  ;;  %4072 = vst [vmem:[#allocation87_spill] sm:$0xff] %v3183_v22 }
 0x157   : > { %1698 = vmatpush.msrb.mxu3 %v560_v21 }
 0x158   : > { %1635 = vmatpush.msra.mxu1 %v819_v10  ;;  %v3218_v10 = vld [vmem:[%s3927_s2 + $0x44] sm:$0xf] }
 0x159   : > { %1699 = vmatpush.msrb.mxu3 %v556_v0  ;;  %1024 = vrot.lane.b32.xlu1 %v3188_v11, %s2154_s27  ;;  %v392_v0 = vperm.slane %v2537_v16, 1  ;;  %v1094_v16 = vperm.slane %v3218_v10, 0 }
 0x15a   : > { %679 = vrot.lane.b32.xlu2 %v3196_v36, %s2153_s19  ;;  %1636 = vmatpush.msra.mxu1 %v815_v44 }
 0x15b   : > { %1700 = vmatpush.msrb.mxu3 %v508_v56  ;;  %789 = vrot.lane.b32.xlu0 %v3188_v11, %s2150_s29  ;;  %v3202_v32 = vpop.permute.xlu1 %741  ;;  %v3204_v1 = vpop.permute.xlu2 %677  ;;  %v404_v17 = vmul.f32 %v392_v0, %v2765_v37  ;;  %v340_v56 = vperm.slane %v2457_v51, 1  ;;  %v400_v14 = vmul.f32 %v392_v0, %v2775_v47  ;;  %v288_v47 = vperm.slane %v2386_v57, 1  ;;  %v2123_v57 = vld [vmem:[%s3927_s2] sm:$0xf] }
 0x15c   : > { %4073 = vst [vmem:[#allocation88_spill] sm:$0xff] %v3202_v32  ;;  %v3206_v21 = vpop.permute.xlu0 %729  ;;  %2079 = vmatmul.msk.f32.gmra.mxu3 %vm1597_vm13, %v3355_v59 }
 0x15d   : > { %1701 = vmatpush.msrb.mxu3 %v504_v42  ;;  %v751_v43 = vsel %vm743_vm14, %v3202_v32, %v3206_v21  ;;  %v352_v41 = vmul.f32 %v340_v56, %v2468_v61  ;;  %v296_v61 = vmul.f32 %v288_v47, %v2371_v53  ;;  %v4086_v32 = vld [vmem:[#allocation78_spill] sm:$0xff] }
 0x15e   : > { %v767_v60 = vmul.f32 %v755_v45, %v751_v43  ;;  %v887_v46 = vperm.slane %v4086_v32, 1  ;;  %4087 = vst [vmem:[#allocation78_spill] sm:$0xff] %v3355_v59 }
 0x15f   : > { %1702 = vmatpush.msrb.mxu3 %v456_v27  ;;  %v348_v27 = vmul.f32 %v340_v56, %v2475_v9 }
 0x160   : > { %1637 = vmatpush.msra.mxu1 %v767_v60  ;;  %v236_v60 = vperm.slane %v2123_v57, 1  ;;  %v899_v59 = vmul.f32 %v3151_v19, %v887_v46  ;;  %v4092_v19 = vperm.slane %v2836_v25, 2 }
 0x161   : > { %1703 = vmatpush.msrb.mxu3 %v452_v48  ;;  %1022 = vrot.lane.b32.xlu1 %v3143_v39, %s2154_s27  ;;  %v300_v48 = vmul.f32 %v288_v47, %v2376_v55 }
 0x162   : > { %737 = vrot.lane.b32.xlu2 %v3188_v11, %s2151_s10 }
 0x163   : > { %1704 = vmatpush.msrb.mxu3 %v404_v17  ;;  %787 = vrot.lane.b32.xlu0 %v3143_v39, %s2150_s29  ;;  %v3231_v44 = vpop.permute.xlu1 %1072  ;;  %v3233_v37 = vpop.permute.xlu2 %1016  ;;  %v248_v17 = vmul.f32 %v236_v60, %v2320_v33  ;;  %v3280_v33 = vld [vmem:[%s2197_s20 + $0x38] sm:$0xff] }
 0x164   : > { %4074 = vst [vmem:[#allocation89_spill] sm:$0xff] %v3233_v37  ;;  %v3235_v51 = vpop.permute.xlu0 %1068 }
 0x165   : > { %1705 = vmatpush.msrb.mxu3 %v400_v14  ;;  %4075 = vst [vmem:[#allocation90_spill] sm:$0xff] %v3235_v51  ;;  %v1088_v42 = vsel %vm1082_vm15, %v3235_v51, %v3231_v44 }
 0x166   : > { %v1106_v43 = vmul.f32 %v1094_v16, %v1088_v42  ;;  %4079 = vst [vmem:[#allocation92_spill] sm:$0xff] %v3280_v33 }
 0x167   : > { %1706 = vmatpush.msrb.mxu3 %v352_v41  ;;  %v4077_v41 = vld [vmem:[#allocation4_spill] sm:$0xff] }
 0x168   : > { %1662 = vmatpush.msra.mxu2 %v1106_v43  ;;  %v244_v47 = vmul.f32 %v236_v60, %v4077_v41 }
 0x169   : > { %1707 = vmatpush.msrb.mxu3 %v348_v27  ;;  %685 = vrot.lane.b32.xlu1 %v3188_v11, %s2153_s19  ;;  %v3275_v27 = vld [vmem:[%s2197_s20 + $0x18] sm:$0xff] }
 0x16a   : > { %683 = vrot.lane.b32.xlu2 %v3143_v39, %s2153_s19  ;;  %4078 = vst [vmem:[#allocation4_spill] sm:$0xff] %v3275_v27 }
 0x16b   : > { %1708 = vmatpush.msrb.mxu3 %v300_v48  ;;  %735 = vrot.lane.b32.xlu0 %v3143_v39, %s2151_s10  ;;  %v3255_v9 = vpop.permute.xlu1 %970  ;;  %v3257_v55 = vpop.permute.xlu2 %675 }
 0x16c   : > { %v981_v53 = vsel %vm978_vm7, %v2767_v40, %v3255_v9  ;;  %v3263_v0 = vpop.permute.xlu0 %739  ;;  %v601_v40 = vperm.slane %v2911_v15, 2 }
 0x16d   : > { %1709 = vmatpush.msrb.mxu3 %v296_v61  ;;  %4076 = vst [vmem:[#allocation91_spill] sm:$0xff] %v3263_v0  ;;  %v750_v56 = vsel %vm743_vm14, %v3263_v0, %v3117_v38  ;;  %v999_v14 = vmul.f32 %v991_v4, %v981_v53  ;;  %v3306_v53 = vld [vmem:[%s3927_s2 + $0x24] sm:$0xf] }
 0x16e   : > { %v763_v42 = vmul.f32 %v755_v45, %v750_v56  ;;  %v703_v56 = vperm.slane %v3306_v53, 0 }
 0x16f   : > { %1710 = vmatpush.msrb.mxu3 %v248_v17  ;;  %1720 = vmatpush.msrb.mxu0 %v999_v14  ;;  %v4081_v17 = vld [vmem:[#allocation75_spill] sm:$0xff] }
 0x170   : > { %1638 = vmatpush.msra.mxu1 %v763_v42 }
 0x171   : > { %1711 = vmatpush.msrb.mxu3 %v244_v47  ;;  %1078 = vrot.lane.b32.xlu1 %v3275_v27, %s2152_s11 }
 0x172   : > { %1028 = vrot.lane.b32.xlu2 %v3280_v33, %s2154_s27 }
 0x173   : > { %1080 = vrot.lane.b32.xlu0 %v3280_v33, %s2152_s11  ;;  %v3286_v4 = vpop.permute.xlu1 %581  ;;  %v3288_v45 = vpop.permute.xlu2 %1014 }
 0x174   : > { %4080 = vst [vmem:[#allocation93_spill] sm:$0xff] %v3288_v45  ;;  %v3294_v43 = vsel %vm587_vm8, %v3005_v6, %v3286_v4  ;;  %v3296_v48 = vpop.permute.xlu0 %1070  ;;  %v939_v6 = vperm.slane %v4081_v17, 1 }
 0x175   : > { %v613_v61 = vmul.f32 %v601_v40, %v3294_v43  ;;  %v1087_v57 = vsel %vm1082_vm15, %v3159_v29, %v3296_v48  ;;  %v3330_v29 = vld [vmem:[%s3927_s2 + $0x40] sm:$0xf] }
 0x176   : > { %v1102_v60 = vmul.f32 %v1094_v16, %v1087_v57  ;;  %v4082_v16 = vld [vmem:[#allocation77_spill] sm:$0xff] }
 0x177   : > { %1788 = vmatpush.msra.mxu3 %v613_v61  ;;  %4084 = vst [vmem:[#allocation77_spill] sm:$0xff] %v3330_v29 }
 0x178   : > { %1663 = vmatpush.msra.mxu2 %v1102_v60 }
 0x17b   : > { %1026 = vrot.lane.b32.xlu0 %v3275_v27, %s2154_s27  ;;  %v3313_v14 = vpop.permute.xlu1 %920  ;;  %v3315_v41 = vpop.permute.xlu2 %637 }
 0x17c   : > { %v930_v47 = vsel %vm926_vm9, %v4082_v16, %v3313_v14  ;;  %v3321_v42 = vpop.permute.xlu0 %689  ;;  %v1042_v16 = vperm.slane %v3330_v29, 0  ;;  %v3379_v27 = vsel %vm639_vm10, %v3315_v41, %v3040_v2 }
 0x17d   : > { %4083 = vst [vmem:[#allocation75_spill] sm:$0xff] %v3321_v42  ;;  %v699_v61 = vsel %vm691_vm0, %v3321_v42, %v3204_v1  ;;  %v951_v57 = vmul.f32 %v939_v6, %v930_v47 }
 0x17e   : > { %v715_v60 = vmul.f32 %v703_v56, %v699_v61  ;;  %4090 = vst [vmem:[#allocation95_spill] sm:$0xff] %v3379_v27 }
 0x17f   : > { %1721 = vmatpush.msrb.mxu0 %v951_v57 }
 0x180   : > { %1639 = vmatpush.msra.mxu1 %v715_v60 }
 0x183   : > { %v3332_v51 = vpop.permute.xlu1 %579  ;;  %v3334_v0 = vpop.permute.xlu2 %974 }
 0x184   : > { %v3342_v47 = vsel %vm587_vm8, %v2923_v50, %v3332_v51  ;;  %v3344_v61 = vpop.permute.xlu0 %1020 }
 0x185   : > { %4085 = vst [vmem:[#allocation94_spill] sm:$0xff] %v3344_v61  ;;  %v609_v57 = vmul.f32 %v601_v40, %v3342_v47  ;;  %v1036_v60 = vsel %vm1030_vm1, %v3233_v37, %v3344_v61 }
 0x186   : > { %v1054_v42 = vmul.f32 %v1042_v16, %v1036_v60  ;;  %v3366_v60 = vld [vmem:[%s3927_s2 + $0x20] sm:$0xf] }
 0x187   : > { %1789 = vmatpush.msra.mxu3 %v609_v57  ;;  %v651_v13 = vperm.slane %v3366_v60, 0 }
 0x188   : > { %1664 = vmatpush.msra.mxu2 %v1054_v42  ;;  %v4088_v42 = vld [vmem:[#allocation79_spill] sm:$0xff] }
 0x189   : > { %v663_v29 = vmul.f32 %v651_v13, %v3379_v27  ;;  %v4103_v27 = vld [vmem:[#allocation37_spill] sm:$0xff] }
 0x18b   : > { %v3359_v50 = vpop.permute.xlu1 %918  ;;  %v3361_v40 = vpop.permute.xlu2 %924 }
 0x18c   : > { %v929_v57 = vsel %vm926_vm9, %v4088_v42, %v3359_v50  ;;  %v3372_v37 = vpop.permute.xlu0 %687  ;;  %v895_v42 = vmul.f32 %v3196_v36, %v887_v46 }
 0x18d   : > { %4089 = vst [vmem:[#allocation79_spill] sm:$0xff] %v3372_v37  ;;  %v698_v33 = vsel %vm691_vm0, %v3372_v37, %v3257_v55  ;;  %v947_v52 = vmul.f32 %v939_v6, %v929_v57  ;;  %v3395_v6 = vld [vmem:[%s3925_s0] sm:$0xff] }
 0x18e   : > { %v711_v61 = vmul.f32 %v703_v56, %v698_v33  ;;  %1712 = vmatmul.f32.vlgmr.msrb.gmra.mxu3 %v3395_v6  ;;  %1620 = vmatmul.f32.vlgmr.msra.gmra.mxu0 %v3395_v6  ;;  %v3418_v33 = vld [vmem:[%s3925_s0 + $0x10] sm:$0xff] }
 0x18f   : > { %1722 = vmatpush.msrb.mxu0 %v947_v52 }
 0x190   : > { %1640 = vmatpush.msra.mxu1 %v711_v61  ;;  %v4096_v61 = vld [vmem:[#allocation64_spill] sm:$0xff] }
 0x191   : > { %1723 = vmatpush.msrb.mxu0 %v899_v59 }
 0x192   : > { %1641 = vmatpush.msra.mxu1 %v663_v29 }
 0x193   : > { %v3388_v22 = vpop.permute.xlu1 %529  ;;  %v3390_v2 = vpop.permute.xlu2 %922  ;;  %1724 = vmatpush.msrb.mxu0 %v895_v42 }
 0x194   : > { %v3401_v52 = vsel %vm535_vm6, %v2861_v30, %v3388_v22  ;;  %v3403_v46 = vpop.permute.xlu0 %1018  ;;  %v4093_v30 = vld [vmem:[#allocation68_spill] sm:$0xff] }
 0x195   : > { %4091 = vst [vmem:[#allocation96_spill] sm:$0xff] %v3403_v46  ;;  %v561_v29 = vmul.f32 %v4092_v19, %v3401_v52  ;;  %v1035_v59 = vsel %vm1030_vm1, %v3288_v45, %v3403_v46  ;;  %v4098_v19 = vld [vmem:[#allocation57_spill] sm:$0xff]  ;;  %v4102_v45 = vld [vmem:[#allocation58_spill] sm:$0xff] }
 0x196   : > { %v1050_v36 = vmul.f32 %v1042_v16, %v1035_v59  ;;  %4094 = vst [vmem:[#allocation68_spill] sm:$0xff] %v3418_v33  ;;  %v4099_v59 = vld [vmem:[#allocation46_spill] sm:$0xff] }
 0x197   : > { %1790 = vmatpush.msra.mxu3 %v561_v29 }
 0x198   : > { %1665 = vmatpush.msra.mxu2 %v1050_v36  ;;  %v4100_v36 = vld [vmem:[#allocation65_spill] sm:$0xff] }
 0x199   : > { %1791 = vmatpush.msra.mxu3 %v4093_v30  ;;  %1666 = vmatmul.f32.vlgmr.msra.gmra.mxu2 %v3418_v33  ;;  %v4101_v30 = vld [vmem:[#allocation48_spill] sm:$0xff]  ;;  %v4110_v33 = vld [vmem:[#allocation26_spill] sm:$0xff] }
 0x19b   : > { %v3421_v56 = vpop.permute.xlu1 %635  ;;  %1792 = vmatpush.msra.mxu3 %v4096_v61  ;;  %v3432_v42 = vpop.permute.xlu2 %733  ;;  %v860_v61 = vperm.slane %v3055_v35, 1 }
 0x19c   : > { %4095 = vst [vmem:[#allocation97_spill] sm:$0xff] %v3421_v56  ;;  %v3428_v16 = vsel %vm639_vm10, %v3421_v56, %v3068_v7  ;;  %v3430_v57 = vpop.permute.xlu0 %976  ;;  %v1338_v7 = vperm.slane %v3023_v49, 1  ;;  %v4117_v56 = vld [vmem:[#allocation27_spill] sm:$0xff] }
 0x19d   : > { %4097 = vst [vmem:[#allocation64_spill] sm:$0xff] %v3428_v16  ;;  %1793 = vmatpush.msra.mxu3 %v4098_v19  ;;  %v659_v29 = vmul.f32 %v651_v13, %v3428_v16 }
 0x19f   : > { %1642 = vmatpush.msra.mxu1 %v659_v29  ;;  %1794 = vmatpush.msra.mxu3 %v4099_v59  ;;  %v4104_v29 = vld [vmem:[#allocation51_spill] sm:$0xff] }
 0x1a0   : > { %v4106_v59 = vld [vmem:[#allocation35_spill] sm:$0xff] }
 0x1a1   : > { %1742 = vmatpush.msrb.mxu1 %v4100_v36  ;;  %1795 = vmatpush.msra.mxu3 %v4101_v30  ;;  %v4107_v30 = vld [vmem:[#allocation52_spill] sm:$0xff] }
 0x1a3   : > { %1743 = vmatpush.msrb.mxu1 %v4102_v45  ;;  %v3442_v37 = vpop.permute.xlu1 %837  ;;  %1796 = vmatpush.msra.mxu3 %v4103_v27  ;;  %v3461_v16 = vpop.permute.xlu2 %731 }
 0x1a4   : > { %v853_v13 = vsel %vm847_vm11, %v2949_v34, %v3442_v37  ;;  %v3449_v19 = vpop.permute.xlu0 %633  ;;  %v4108_v34 = vld [vmem:[#allocation33_spill] sm:$0xff] }
 0x1a5   : > { %1744 = vmatpush.msrb.mxu1 %v4104_v29  ;;  %v3456_v45 = vsel %vm639_vm10, %v3036_v24, %v3449_v19  ;;  %1797 = vmatpush.msra.mxu3 %v4106_v59  ;;  %v872_v36 = vmul.f32 %v860_v61, %v853_v13  ;;  %v4109_v29 = vld [vmem:[#allocation38_spill] sm:$0xff]  ;;  %v3468_v24 = vld [vmem:[%s3925_s0 + $0x8] sm:$0xff]  ;;  %v4111_v13 = vld [vmem:[#allocation39_spill] sm:$0xff] }
 0x1a6   : > { %4105 = vst [vmem:[#allocation57_spill] sm:$0xff] %v3456_v45  ;;  %v1350_v27 = vmul.f32 %v1338_v7, %v3456_v45  ;;  %1643 = vmatmul.f32.vlgmr.msra.gmra.mxu1 %v3468_v24 }
 0x1a7   : > { %1745 = vmatpush.msrb.mxu1 %v4107_v30  ;;  %1725 = vmatpush.msrb.mxu0 %v872_v36  ;;  %v4112_v30 = vld [vmem:[#allocation16_spill] sm:$0xff]  ;;  %v602_v36 = vperm.slane %v2911_v15, 3 }
 0x1a8   : > { %1798 = vmatpush.msra.mxu3 %v4108_v34  ;;  %1775 = vmatpush.msrb.mxu2 %v1350_v27 }
 0x1a9   : > { %1746 = vmatpush.msrb.mxu1 %v4109_v29  ;;  %v4114_v29 = vld [vmem:[#allocation34_spill] sm:$0xff] }
 0x1aa   : > { %1799 = vmatpush.msra.mxu3 %v4110_v33  ;;  %v4115_v33 = vld [vmem:[#allocation73_spill] sm:$0xff] }
 0x1ab   : > { %1747 = vmatpush.msrb.mxu1 %v4111_v13  ;;  %v3473_v59 = vpop.permute.xlu1 %835  ;;  %v3488_v13 = vsel %vm587_vm8, %v3286_v4, %v4115_v33  ;;  %v4119_v33 = vld [vmem:[#allocation6_spill] sm:$0xff] }
 0x1ac   : > { %1800 = vmatpush.msra.mxu3 %v4112_v30  ;;  %v852_v27 = vsel %vm847_vm11, %v3125_v3, %v3473_v59  ;;  %v3481_v34 = vpop.permute.xlu0 %631  ;;  %v4116_v30 = vld [vmem:[#allocation18_spill] sm:$0xff]  ;;  %v1311_v3 = vperm.slane %v3089_v28, 1 }
 0x1ad   : > { %4113 = vst [vmem:[#allocation46_spill] sm:$0xff] %v3481_v34  ;;  %1748 = vmatpush.msrb.mxu1 %v4114_v29  ;;  %v3494_v15 = vsel %vm639_vm10, %v2979_v20, %v3481_v34  ;;  %v868_v45 = vmul.f32 %v860_v61, %v852_v27  ;;  %v4118_v29 = vld [vmem:[#allocation67_spill] sm:$0xff]  ;;  %v614_v20 = vmul.f32 %v602_v36, %v3488_v13  ;;  %v4120_v34 = vld [vmem:[#allocation21_spill] sm:$0xff]  ;;  %v3515_v27 = vpop.permute.xlu2 %681 }
 0x1ae   : > { %1801 = vmatpush.msra.mxu3 %v4116_v30  ;;  %v3503_v46 = vsel %vm587_vm8, %v3332_v51, %v4118_v29  ;;  %v1346_v4 = vmul.f32 %v1338_v7, %v3494_v15  ;;  %v4121_v61 = vld [vmem:[#allocation71_spill] sm:$0xff]  ;;  %v1323_v51 = vmul.f32 %v1311_v3, %v3294_v43  ;;  %v4123_v30 = vld [vmem:[#allocation22_spill] sm:$0xff]  ;;  %v4124_v43 = vperm.slane %v2836_v25, 3 }
 0x1af   : > { %1749 = vmatpush.msrb.mxu1 %v4117_v56  ;;  %1726 = vmatpush.msrb.mxu0 %v868_v45  ;;  %v3513_v56 = vsel %vm535_vm6, %v3388_v22, %v4121_v61  ;;  %v4122_v45 = vld [vmem:[#allocation3_spill] sm:$0xff]  ;;  %v610_v7 = vmul.f32 %v602_v36, %v3503_v46 }
 0x1b0   : > { %1802 = vmatpush.msra.mxu3 %v4119_v33  ;;  %1776 = vmatpush.msrb.mxu2 %v1346_v4  ;;  %v1585_v29 = vld [vmem:[%s3926_s1] sm:$0xff]  ;;  %v1319_v4 = vmul.f32 %v1311_v3, %v3342_v47  ;;  %v2155_v33 = vmov 0   ;;  %v562_v36 = vmul.f32 %v4124_v43, %v3513_v56  ;;  %v980_v47 = vsel %vm978_vm7, %v3070_v62, %v3430_v57 }
 0x1b1   : > { %1750 = vmatpush.msrb.mxu1 %v4120_v34  ;;  %v808_v34 = vperm.slane %v3140_v8, 1  ;;  %2116 = vset.pattern.permute.xlu1 %v2155_v33  ;;  %v756_v62 = vperm.slane %v3176_v54, 1  ;;  %v928_v43 = vsel %vm926_vm9, %v3313_v14, %v3361_v40  ;;  %v3576_v14 = vld [vmem:[%s3925_s0 + $0x30] sm:$0xff] }
 0x1b2   : > { %1803 = vmatpush.msra.mxu3 %v4122_v45  ;;  %1777 = vmatpush.msrb.mxu2 %v1323_v51  ;;  %v4126_v45 = vperm.slane %v2842_v31, 1  ;;  %v992_v51 = vperm.slane %v2875_v63, 2  ;;  %v940_v63 = vperm.slane %v4081_v17, 2  ;;  %v748_v17 = vsel %vm743_vm14, %v3117_v38, %v3461_v16 }
 0x1b3   : > { %1751 = vmatpush.msrb.mxu1 %v4123_v30  ;;  %v3525_v22 = vpop.permute.xlu1 %783  ;;  %1589 = vperm.xlu1 %2116, %v1585_v29  }
 0x1b4   : > { %1880 = vmatpush.msrb.mxu3 %v614_v20  ;;  %v3531_v61 = vpop.permute.xlu0 %785  ;;  %v4125_v20 = vld [vmem:[#allocation8_spill] sm:$0xff]  ;;  %v1296_v30 = vmul.f32 %v4126_v45, %v3401_v52  ;;  %v800_v25 = vsel %vm795_vm12, %v3157_v58, %v3525_v22  ;;  %1778 = vmatpush.msrb.mxu2 %v1319_v4  ;;  %v4127_v52 = vld [vmem:[#allocation5_spill] sm:$0xff]  ;;  %v979_v58 = vsel %vm978_vm7, %v3255_v9, %v3334_v0  ;;  %v4129_v45 = vld [vmem:[#allocation62_spill] sm:$0xff] }
 0x1b5   : > { %1752 = vmatpush.msrb.mxu1 %v4125_v20  ;;  %v801_v3 = vsel %vm795_vm12, %v2997_v18, %v3531_v61  ;;  %v749_v4 = vsel %vm743_vm14, %v3206_v21, %v3432_v42  ;;  %2117 = vset.pattern.permute.xlu2 %v2155_v33  ;;  %v1004_v18 = vmul.f32 %v992_v51, %v980_v47  ;;  %v4128_v9 = vld [vmem:[#allocation69_spill] sm:$0xff]  ;;  %v3582_v20 = vpop.permute.xlu2 %679 }
 0x1b6   : > { %1881 = vmatpush.msrb.mxu3 %v610_v7  ;;  %v820_v7 = vmul.f32 %v808_v34, %v801_v3  ;;  %1779 = vmatpush.msrb.mxu2 %v1296_v30  ;;  %v816_v29 = vmul.f32 %v808_v34, %v800_v25  ;;  %v1000_v21 = vmul.f32 %v992_v51, %v979_v58  ;;  %v888_v34 = vperm.slane %v4086_v32, 2  ;;  %v4130_v3 = vld [vmem:[#allocation59_spill] sm:$0xff] }
 0x1b7   : > { %1753 = vmatpush.msrb.mxu1 %v4127_v52  ;;  %2118 = vset.pattern.permute.xlu0 %v2155_v33  ;;  %v927_v33 = vsel %vm926_vm9, %v3359_v50, %v3390_v2  ;;  %v704_v30 = vperm.slane %v3306_v53, 1  ;;  %v952_v32 = vmul.f32 %v940_v63, %v928_v43  ;;  %v697_v47 = vsel %vm691_vm0, %v3204_v1, %v3515_v27 }
 0x1b8   : > { %1882 = vmatpush.msrb.mxu3 %v562_v36  ;;  %1727 = vmatpush.msrb.mxu0 %v820_v7  ;;  %v1095_v36 = vperm.slane %v3218_v10, 1  ;;  %v764_v51 = vmul.f32 %v756_v62, %v748_v17  ;;  %v948_v7 = vmul.f32 %v940_v63, %v927_v33  ;;  %v696_v58 = vsel %vm691_vm0, %v3257_v55, %v3582_v20  ;;  %v4134_v33 = vld [vmem:[#allocation43_spill] sm:$0xff] }
 0x1b9   : > { %1780 = vmatpush.msrb.mxu2 %v4128_v9  ;;  %v900_v1 = vmul.f32 %v3188_v11, %v888_v34  ;;  %v861_v63 = vperm.slane %v3055_v35, 2  ;;  %v896_v55 = vmul.f32 %v3143_v39, %v888_v34  ;;  %v712_v43 = vmul.f32 %v704_v30, %v696_v58  ;;  %v3622_v9 = vld [vmem:[%s3925_s0 + $0x28] sm:$0xff] }
 0x1ba   : > { %1883 = vmatpush.msrb.mxu3 %v3010_v23  ;;  %1728 = vmatpush.msrb.mxu0 %v816_v29  ;;  %v768_v23 = vmul.f32 %v756_v62, %v749_v4  ;;  %v4131_v4 = vld [vmem:[#allocation53_spill] sm:$0xff]  ;;  %v3610_v62 = vld [vmem:[%s3925_s0 + $0x20] sm:$0xff] }
 0x1bb   : > { %1811 = vmatpush.msra.mxu2 %v1004_v18  ;;  %v3585_v38 = vpop.permute.xlu1 %1076  ;;  %v652_v18 = vperm.slane %v3366_v60, 1  ;;  %v4132_v29 = vld [vmem:[#allocation49_spill] sm:$0xff]  ;;  %1623 = vmatmul.f32.gmra.mxu0 %v3610_v62 }
 0x1bc   : > { %1884 = vmatpush.msrb.mxu3 %v4129_v45  ;;  %1669 = vmatmul.f32.gmra.mxu2 %v3576_v14  ;;  %v1086_v50 = vsel %vm1082_vm15, %v3231_v44, %v3585_v38  ;;  %v3597_v25 = vpop.permute.xlu0 %841  ;;  %v716_v44 = vmul.f32 %v704_v30, %v697_v47  ;;  %v4136_v47 = vld [vmem:[#allocation31_spill] sm:$0xff] }
 0x1bd   : > { %1812 = vmatpush.msra.mxu2 %v1000_v21  ;;  %1729 = vmatpush.msrb.mxu0 %v768_v23  ;;  %v1107_v52 = vmul.f32 %v1095_v36, %v1086_v50  ;;  %v851_v11 = vsel %vm847_vm11, %v3442_v37, %v3597_v25  ;;  %v4133_v21 = vld [vmem:[#allocation40_spill] sm:$0xff]  ;;  %v664_v39 = vmul.f32 %v652_v18, %v3048_v26 }
 0x1be   : > { %1885 = vmatpush.msrb.mxu3 %v4130_v3  ;;  %v873_v17 = vmul.f32 %v861_v63, %v851_v11  ;;  %1646 = vmatmul.f32.gmra.mxu1 %v3622_v9  ;;  %v660_v45 = vmul.f32 %v652_v18, %v3076_v5  ;;  %v4137_v50 = vld [vmem:[#allocation60_spill] sm:$0xff]  ;;  %v809_v3 = vperm.slane %v3140_v8, 2  ;;  %v4145_v11 = vld [vmem:[#allocation19_spill] sm:$0xff] }
 0x1bf   : > { %1813 = vmatpush.msra.mxu2 %v952_v32  ;;  %1730 = vmatpush.msrb.mxu0 %v764_v51  ;;  %v4135_v32 = vld [vmem:[#allocation63_spill] sm:$0xff]  ;;  %v4138_v5 = vld [vmem:[#allocation28_spill] sm:$0xff] }
 0x1c0   : > { %1886 = vmatpush.msrb.mxu3 %v4131_v4  ;;  %1754 = vmatpush.msrb.mxu1 %v1107_v52  ;;  %v4139_v51 = vld [vmem:[#allocation87_spill] sm:$0xff] }
 0x1c1   : > { %1814 = vmatpush.msra.mxu2 %v948_v7  ;;  %1731 = vmatpush.msrb.mxu0 %v716_v44  ;;  %v4141_v7 = vld [vmem:[#allocation77_spill] sm:$0xff] }
 0x1c2   : > { %1887 = vmatpush.msrb.mxu3 %v4132_v29  ;;  %v1043_v58 = vperm.slane %v4141_v7, 1  ;;  %v4146_v29 = vld [vmem:[#allocation41_spill] sm:$0xff] }
 0x1c3   : > { %1815 = vmatpush.msra.mxu2 %v900_v1  ;;  %1732 = vmatpush.msrb.mxu0 %v712_v43  ;;  %v3627_v37 = vpop.permute.xlu1 %1074  ;;  %v4143_v1 = vld [vmem:[#allocation94_spill] sm:$0xff] }
 0x1c4   : > { %1888 = vmatpush.msrb.mxu3 %v4133_v21  ;;  %v1085_v23 = vsel %vm1082_vm15, %v3296_v48, %v3627_v37  ;;  %2080 = vmatmul.msk.f32.vlgmr.msrb.gmra.mxu2 %vm1597_vm13, %v4139_v51  ;;  %v4147_v21 = vld [vmem:[#allocation9_spill] sm:$0xff] }
 0x1c5   : > { %1816 = vmatpush.msra.mxu2 %v896_v55  ;;  %1733 = vmatpush.msrb.mxu0 %v664_v39  ;;  %v3634_v34 = vpop.permute.xlu0 %839  ;;  %v1103_v48 = vmul.f32 %v1095_v36, %v1085_v23  ;;  %v4142_v36 = vld [vmem:[#allocation23_spill] sm:$0xff]  ;;  %v4148_v39 = vld [vmem:[#allocation44_spill] sm:$0xff]  ;;  %v3672_v23 = vpop.permute.xlu2 %737 }
 0x1c6   : > { %1889 = vmatpush.msrb.mxu3 %v4134_v33  ;;  %v850_v26 = vsel %vm847_vm11, %v3473_v59, %v3634_v34  ;;  %v4140_v59 = vld [vmem:[#allocation54_spill] sm:$0xff]  ;;  %v4149_v33 = vld [vmem:[#allocation13_spill] sm:$0xff] }
 0x1c7   : > { %1817 = vmatpush.msra.mxu2 %v873_v17  ;;  %v869_v30 = vmul.f32 %v861_v63, %v850_v26  ;;  %1734 = vmatpush.msrb.mxu0 %v660_v45  ;;  %v4144_v63 = vld [vmem:[#allocation50_spill] sm:$0xff]  ;;  %v1339_v17 = vperm.slane %v3023_v49, 2  ;;  %v3681_v45 = vsel %vm639_vm10, %v3449_v19, %v3315_v41  ;;  %v4151_v26 = vld [vmem:[#allocation32_spill] sm:$0xff]  ;;  %v757_v49 = vperm.slane %v3176_v54, 2 }
 0x1c8   : > { %1890 = vmatpush.msrb.mxu3 %v4136_v47  ;;  %1755 = vmatpush.msrb.mxu1 %v1103_v48  ;;  %v4154_v41 = vld [vmem:[#allocation46_spill] sm:$0xff] }
 0x1c9   : > { %1834 = vmatpush.msra.mxu0 %v4135_v32  ;;  %1818 = vmatpush.msra.mxu2 %v869_v30  ;;  %v4152_v32 = vld [vmem:[#allocation96_spill] sm:$0xff] }
 0x1ca   : > { %1715 = vmatmul.f32.gmra.mxu3 %v3610_v62  ;;  %1735 = vmatmul.f32.vlgmr.msrb.gmra.mxu0 %v3468_v24 }
 0x1cb   : > { %1835 = vmatpush.msra.mxu0 %v4137_v50  ;;  %1891 = vmatpush.msrb.mxu3 %v4138_v5  ;;  %v3651_v52 = vpop.permute.xlu1 %1024  ;;  %v4153_v50 = vld [vmem:[#allocation97_spill] sm:$0xff]  ;;  %v747_v5 = vsel %vm743_vm14, %v3432_v42, %v3672_v23  ;;  %v4157_v42 = vld [vmem:[#allocation20_spill] sm:$0xff] }
 0x1cc   : > { %v1034_v4 = vsel %vm1030_vm1, %v4143_v1, %v3651_v52  ;;  %v3699_v19 = vsel %vm639_vm10, %v4154_v41, %v4153_v50  ;;  %v705_v41 = vperm.slane %v3306_v53, 2 }
 0x1cd   : > { %1836 = vmatpush.msra.mxu0 %v4140_v59  ;;  %1892 = vmatpush.msrb.mxu3 %v4142_v36  ;;  %v3659_v44 = vpop.permute.xlu0 %789  ;;  %v1055_v43 = vmul.f32 %v1043_v58, %v1034_v4  ;;  %v4155_v36 = vld [vmem:[#allocation29_spill] sm:$0xff]  ;;  %v1312_v4 = vperm.slane %v3089_v28, 2 }
 0x1ce   : > { %v799_v18 = vsel %vm795_vm12, %v3531_v61, %v3659_v44  ;;  %v4150_v61 = vld [vmem:[#allocation78_spill] sm:$0xff] }
 0x1cf   : > { %1837 = vmatpush.msra.mxu0 %v4144_v63  ;;  %v821_v55 = vmul.f32 %v809_v3, %v799_v18  ;;  %1893 = vmatpush.msrb.mxu3 %v4145_v11  ;;  %v1351_v18 = vmul.f32 %v1339_v17, %v3681_v45  ;;  %v1347_v11 = vmul.f32 %v1339_v17, %v3699_v19 }
 0x1d0   : > { %1756 = vmatpush.msrb.mxu1 %v1055_v43  ;;  %2081 = vmatmul.msk.f32.gmra.mxu2 %vm1597_vm13, %v4150_v61  ;;  %v4158_v43 = vld [vmem:[#allocation68_spill] sm:$0xff] }
 0x1d1   : > { %1838 = vmatpush.msra.mxu0 %v4146_v29  ;;  %1894 = vmatpush.msrb.mxu3 %v4147_v21  ;;  %v769_v29 = vmul.f32 %v757_v49, %v747_v5 }
 0x1d2   : > { %1819 = vmatpush.msra.mxu2 %v821_v55  ;;  %1804 = vmatmul.f32.vlgmr.msra.gmra.mxu3 %v3395_v6  ;;  %v4156_v55 = vld [vmem:[#allocation24_spill] sm:$0xff] }
 0x1d3   : > { %1839 = vmatpush.msra.mxu0 %v4148_v39  ;;  %1895 = vmatpush.msrb.mxu3 %v4149_v33  ;;  %v3684_v30 = vpop.permute.xlu1 %1022  ;;  %v3722_v39 = vpop.permute.xlu2 %683 }
 0x1d4   : > { %v1033_v47 = vsel %vm1030_vm1, %v4152_v32, %v3684_v30  ;;  %1738 = vmatmul.f32.gmra.mxu0 %v3622_v9 }
 0x1d5   : > { %1840 = vmatpush.msra.mxu0 %v4151_v26  ;;  %v3692_v48 = vpop.permute.xlu0 %787  ;;  %v1051_v1 = vmul.f32 %v1043_v58, %v1033_v47  ;;  %v4159_v58 = vld [vmem:[#allocation10_spill] sm:$0xff]  ;;  %v4162_v47 = vld [vmem:[#allocation56_spill] sm:$0xff] }
 0x1d6   : > { %v798_v59 = vsel %vm795_vm12, %v3525_v22, %v3692_v48  ;;  %v1324_v22 = vmul.f32 %v1312_v4, %v3488_v13  ;;  %v4160_v26 = vld [vmem:[#allocation14_spill] sm:$0xff]  ;;  %v986_v50 = vsel %vm978_vm7, %v3430_v57, %v4162_v47 }
 0x1d7   : > { %1841 = vmatpush.msra.mxu0 %v4155_v36  ;;  %v817_v63 = vmul.f32 %v809_v3, %v798_v59  ;;  %1757 = vmatpush.msrb.mxu1 %v1051_v1  ;;  %v1320_v3 = vmul.f32 %v1312_v4, %v3503_v46  ;;  %v4161_v46 = vperm.slane %v2842_v31, 2  ;;  %v694_v31 = vsel %vm691_vm0, %v3582_v20, %v3722_v39  ;;  %v4163_v57 = vld [vmem:[#allocation70_spill] sm:$0xff] }
 0x1d8   : > { %1758 = vmatmul.f32.vlgmr.msrb.gmra.mxu1 %v4158_v43  ;;  %v2127_v1 = vld [vmem:[%s3927_s2 + $0x38] sm:$0xf] }
 0x1d9   : > { %1842 = vmatpush.msra.mxu0 %v4156_v55  ;;  %1820 = vmatpush.msra.mxu2 %v817_v63  ;;  %v1297_v32 = vmul.f32 %v4161_v46, %v3513_v56  ;;  %v985_v56 = vsel %vm978_vm7, %v3334_v0, %v4163_v57  ;;  %v941_v4 = vperm.slane %v2127_v1, 3  ;;  %v4164_v20 = vld [vmem:[#allocation66_spill] sm:$0xff]  ;;  %v713_v55 = vmul.f32 %v705_v41, %v694_v31  ;;  %v4165_v0 = vld [vmem:[#allocation81_spill] sm:$0xff]  ;;  %v4170_v31 = vld [vmem:[#allocation4_spill] sm:$0xff] }
 0x1da   : > { %1867 = vmatpush.msra.mxu1 %v1351_v18  ;;  %1807 = vmatmul.f32.gmra.mxu3 %v3610_v62  ;;  %v934_v63 = vsel %vm926_vm9, %v3361_v40, %v4164_v20 }
 0x1db   : > { %1843 = vmatpush.msra.mxu0 %v4157_v42  ;;  %1821 = vmatpush.msra.mxu2 %v769_v29  ;;  %v3718_v21 = vpop.permute.xlu1 %685  ;;  %v953_v46 = vmul.f32 %v941_v4, %v934_v63 }
 0x1dc   : > { %1868 = vmatpush.msra.mxu1 %v1347_v11  ;;  %v695_v13 = vsel %vm691_vm0, %v3515_v27, %v3718_v21  ;;  %v1586_v27 = vld [vmem:[%s3926_s1 + $0x8] sm:$0xff]  ;;  %v1096_v11 = vperm.slane %v3218_v10, 2 }
 0x1dd   : > { %1844 = vmatpush.msra.mxu0 %v4159_v58  ;;  %v3724_v17 = vpop.permute.xlu0 %735  ;;  %1594 = vperm.xlu2 %2117, %v1586_v27   ;;  %v717_v36 = vmul.f32 %v705_v41, %v695_v13  ;;  %v4167_v13 = vld [vmem:[#allocation57_spill] sm:$0xff]  ;;  %v4168_v27 = vld [vmem:[#allocation92_spill] sm:$0xff] }
 0x1de   : > { %1869 = vmatpush.msra.mxu1 %v1324_v22  ;;  %v746_v33 = vsel %vm743_vm14, %v3461_v16, %v3724_v17  ;;  %v2126_v16 = vld [vmem:[%s3927_s2 + $0x3c] sm:$0xf]  ;;  %v2128_v22 = vld [vmem:[%s3927_s2 + $0x34] sm:$0xf] }
 0x1df   : > { %1845 = vmatpush.msra.mxu0 %v4160_v26  ;;  %v765_v5 = vmul.f32 %v757_v49, %v746_v33  ;;  %v993_v59 = vperm.slane %v2126_v16, 3  ;;  %v653_v49 = vperm.slane %v3366_v60, 2  ;;  %v889_v58 = vperm.slane %v2128_v22, 3  ;;  %v4175_v22 = vld [vmem:[#allocation95_spill] sm:$0xff] }
 0x1e0   : > { %1870 = vmatpush.msra.mxu1 %v1320_v3  ;;  %v4166_v3 = vld [vmem:[#allocation80_spill] sm:$0xff] }
 0x1e1   : > { %1822 = vmatpush.msra.mxu2 %v765_v5  ;;  %v1005_v18 = vmul.f32 %v993_v59, %v986_v50  ;;  %1761 = vmatmul.f32.gmra.mxu1 %v3576_v14  ;;  %v1001_v29 = vmul.f32 %v993_v59, %v985_v56  ;;  %v933_v40 = vsel %vm926_vm9, %v3390_v2, %v4166_v3  ;;  %v1044_v2 = vperm.slane %v4141_v7, 2  ;;  %v3791_v50 = vpop.permute.xlu2 %1028  ;;  %v4171_v56 = vld [vmem:[#allocation84_spill] sm:$0xff]  ;;  %v4176_v3 = vld [vmem:[#allocation86_spill] sm:$0xff] }
 0x1e2   : > { %1871 = vmatpush.msra.mxu1 %v1297_v32  ;;  %1896 = vmatmul.f32.vlgmr.msrb.gmra.mxu3 %v3395_v6  ;;  %v665_v33 = vmul.f32 %v653_v49, %v4167_v13  ;;  %v661_v47 = vmul.f32 %v653_v49, %v3494_v15  ;;  %v949_v5 = vmul.f32 %v941_v4, %v933_v40  ;;  %v862_v15 = vperm.slane %v3055_v35, 3  ;;  %v4172_v35 = vld [vmem:[#allocation61_spill] sm:$0xff]  ;;  %v4177_v40 = vld [vmem:[#allocation36_spill] sm:$0xff] }
 0x1e3   : > { %1823 = vmatpush.msra.mxu2 %v717_v36  ;;  %v3768_v42 = vpop.permute.xlu1 %1078  ;;  %v901_v16 = vmul.f32 %v4168_v27, %v889_v58  ;;  %v897_v57 = vmul.f32 %v4170_v31, %v889_v58  ;;  %v849_v49 = vsel %vm847_vm11, %v3597_v25, %v4171_v56  ;;  %v4173_v25 = vld [vmem:[#allocation85_spill] sm:$0xff]  ;;  %v4178_v13 = vld [vmem:[#allocation64_spill] sm:$0xff]  ;;  %v706_v31 = vperm.slane %v3306_v53, 3  ;;  %v4189_v56 = vld [vmem:[#allocation79_spill] sm:$0xff] }
 0x1e4   : > { %1872 = vmatpush.msra.mxu1 %v4165_v0  ;;  %v1083_v32 = vsel %vm1082_vm15, %v3627_v37, %v3768_v42  ;;  %v1032_v37 = vsel %vm1030_vm1, %v3651_v52, %v3791_v50  ;;  %v2129_v52 = vld [vmem:[%s3927_s2 + $0x68] sm:$0xf]  ;;  %v848_v20 = vsel %vm847_vm11, %v3634_v34, %v4173_v25  ;;  %v810_v0 = vperm.slane %v3140_v8, 3  ;;  %v4179_v8 = vld [vmem:[#allocation83_spill] sm:$0xff]  ;;  %v4193_v53 = vld [vmem:[#allocation82_spill] sm:$0xff] }
 0x1e5   : > { %1824 = vmatpush.msra.mxu2 %v713_v55  ;;  %v3779_v26 = vpop.permute.xlu0 %1080  ;;  %v1104_v59 = vmul.f32 %v1096_v11, %v1083_v32  ;;  %v1056_v36 = vmul.f32 %v1044_v2, %v1032_v37  ;;  %v1340_v1 = vperm.slane %v2129_v52, 3  ;;  %v4174_v55 = vld [vmem:[#allocation55_spill] sm:$0xff]  ;;  %v797_v34 = vsel %vm795_vm12, %v3659_v44, %v4176_v3  ;;  %v4181_v44 = vld [vmem:[#allocation74_spill] sm:$0xff] }
 0x1e6   : > { %1903 = vmatpush.msrb.mxu1 %v1005_v18  ;;  %v1084_v6 = vsel %vm1082_vm15, %v3585_v38, %v3779_v26  ;;  %v4169_v38 = vld [vmem:[#allocation47_spill] sm:$0xff]  ;;  %v874_v18 = vmul.f32 %v862_v15, %v849_v49  ;;  %v822_v32 = vmul.f32 %v810_v0, %v797_v34  ;;  %v4190_v49 = vld [vmem:[#allocation25_spill] sm:$0xff]  ;;  %v654_v52 = vperm.slane %v3366_v60, 3  ;;  %v4194_v25 = vld [vmem:[#allocation90_spill] sm:$0xff] }
 0x1e7   : > { %v1108_v41 = vmul.f32 %v1096_v11, %v1084_v6  ;;  %1825 = vmatpush.msra.mxu2 %v665_v33  ;;  %v1352_v58 = vmul.f32 %v1340_v1, %v4175_v22  ;;  %v1348_v33 = vmul.f32 %v1340_v1, %v4178_v13  ;;  %v4185_v37 = vld [vmem:[#allocation91_spill] sm:$0xff]  ;;  %v4196_v60 = vld [vmem:[#allocation12_spill] sm:$0xff] }
 0x1e8   : > { %1904 = vmatpush.msrb.mxu1 %v1001_v29  ;;  %v1313_v29 = vperm.slane %v3089_v28, 3  ;;  %v4180_v28 = vld [vmem:[#allocation42_spill] sm:$0xff]  ;;  %v744_v27 = vsel %vm743_vm14, %v3724_v17, %v4185_v37  ;;  %v692_v17 = vsel %vm691_vm0, %v3722_v39, %v4189_v56  ;;  %v1090_v39 = vsel %vm1082_vm15, %v3779_v26, %v4194_v25  ;;  %v4197_v26 = vld [vmem:[#allocation15_spill] sm:$0xff] }
 0x1e9   : > { %1826 = vmatpush.msra.mxu2 %v661_v47  ;;  %1846 = vmatpush.msra.mxu0 %v1108_v41  ;;  %v4182_v47 = vld [vmem:[#allocation88_spill] sm:$0xff]  ;;  %v4183_v41 = vld [vmem:[#allocation45_spill] sm:$0xff] }
 0x1ea   : > { %1905 = vmatpush.msrb.mxu1 %v953_v46  ;;  %1827 = vmatmul.f32.vlgmr.msra.gmra.mxu2 %v3468_v24  ;;  %v758_v46 = vperm.slane %v3176_v54, 3  ;;  %v1325_v6 = vmul.f32 %v1313_v29, %v4181_v44 }
 0x1eb   : > { %1926 = vmatpush.msrb.mxu2 %v4169_v38  ;;  %1847 = vmatpush.msra.mxu0 %v1104_v59  ;;  %v4188_v38 = vld [vmem:[#allocation30_spill] sm:$0xff] }
 0x1ec   : > { %1906 = vmatpush.msrb.mxu1 %v949_v5  ;;  %1899 = vmatmul.f32.gmra.mxu3 %v3610_v62  ;;  %v796_v62 = vsel %vm795_vm12, %v3692_v48, %v4179_v8  ;;  %v4184_v5 = vld [vmem:[#allocation76_spill] sm:$0xff] }
 0x1ed   : > { %1927 = vmatpush.msrb.mxu2 %v4172_v35  ;;  %1848 = vmatpush.msra.mxu0 %v1056_v36  ;;  %v3810_v4 = vpop.permute.xlu0 %1026  ;;  %v818_v48 = vmul.f32 %v810_v0, %v796_v62  ;;  %v1321_v54 = vmul.f32 %v1313_v29, %v4184_v5  ;;  %v4191_v36 = vld [vmem:[#allocation72_spill] sm:$0xff]  ;;  %v4192_v35 = vld [vmem:[#allocation7_spill] sm:$0xff]  ;;  %v4198_v29 = vld [vmem:[#allocation89_spill] sm:$0xff] }
 0x1ee   : > { %1907 = vmatpush.msrb.mxu1 %v901_v16  ;;  %v1031_v63 = vsel %vm1030_vm1, %v3684_v30, %v3810_v4  ;;  %v870_v30 = vmul.f32 %v862_v15, %v848_v20  ;;  %v4186_v16 = vld [vmem:[#allocation17_spill] sm:$0xff]  ;;  %v4195_v20 = vld [vmem:[#allocation11_spill] sm:$0xff]  ;;  %v1038_v22 = vsel %vm1030_vm1, %v3791_v50, %v4198_v29 }
 0x1ef   : > { %2082 = vmatmul.msk.f32.vlgmr.msra.gmra.mxu1 %vm1597_vm13, %v4139_v51  ;;  %1928 = vmatpush.msrb.mxu2 %v4174_v55  ;;  %v1052_v11 = vmul.f32 %v1044_v2, %v1031_v63  ;;  %v745_v2 = vsel %vm743_vm14, %v3672_v23, %v4182_v47  ;;  %v4187_v23 = vld [vmem:[#allocation75_spill] sm:$0xff]  ;;  %v1089_v63 = vsel %vm1082_vm15, %v3768_v42, %v4196_v60  ;;  %v1045_v55 = vperm.slane %v4141_v7, 3 }
 0x1f0   : > { %1908 = vmatpush.msrb.mxu1 %v897_v57  ;;  %v770_v59 = vmul.f32 %v758_v46, %v745_v2  ;;  %v693_v15 = vsel %vm691_vm0, %v3718_v21, %v4187_v23  ;;  %v766_v57 = vmul.f32 %v758_v46, %v744_v27  ;;  %v1097_v21 = vperm.slane %v3218_v10, 3 }
 0x1f1   : > { %1929 = vmatpush.msrb.mxu2 %v4177_v40  ;;  %1849 = vmatpush.msra.mxu0 %v1052_v11  ;;  %v718_v1 = vmul.f32 %v706_v31, %v693_v15  ;;  %v666_v10 = vmul.f32 %v654_v52, %v3681_v45  ;;  %v662_v11 = vmul.f32 %v654_v52, %v3699_v19  ;;  %v1690_v40 = vpop.f32.mrf.mxu3 }
 0x1f2   : > { %1909 = vmatpush.msrb.mxu1 %v874_v18  ;;  %1830 = vmatmul.f32.gmra.mxu2 %v3622_v9  ;;  %v714_v18 = vmul.f32 %v706_v31, %v692_v17  ;;  %v1109_v0 = vmul.f32 %v1097_v21, %v1090_v39  ;;  %v1105_v45 = vmul.f32 %v1097_v21, %v1089_v63 }
 0x1f3   : > { %1930 = vmatpush.msrb.mxu2 %v4180_v28  ;;  %1959 = vmatpush.msrb.mxu0 %v1352_v58  ;;  %v4199_v58 = vld [vmem:[#allocation93_spill] sm:$0xff]  ;;  %v1057_v7 = vmul.f32 %v1045_v55, %v1038_v22 }
 0x1f4   : > { %1910 = vmatpush.msrb.mxu1 %v870_v30  ;;  %1850 = vmatmul.f32.vlgmr.msra.gmra.mxu0 %v4158_v43  ;;  %v1037_v42 = vsel %vm1030_vm1, %v3810_v4, %v4199_v58 }
 0x1f5   : > { %1931 = vmatpush.msrb.mxu2 %v4183_v41  ;;  %1960 = vmatpush.msrb.mxu0 %v1348_v33  ;;  %v1053_v19 = vmul.f32 %v1045_v55, %v1037_v42 }
 0x1f6   : > { %1911 = vmatpush.msrb.mxu1 %v822_v32 }
 0x1f7   : > { %1932 = vmatpush.msrb.mxu2 %v4186_v16  ;;  %1961 = vmatpush.msrb.mxu0 %v1325_v6 }
 0x1f8   : > { %1912 = vmatpush.msrb.mxu1 %v818_v48 }
 0x1f9   : > { %1933 = vmatpush.msrb.mxu2 %v4188_v38  ;;  %1962 = vmatpush.msrb.mxu0 %v1321_v54  ;;  %v1693_v62 = vpop.f32.mrf.mxu3 }
 0x1fa   : > { %1913 = vmatpush.msrb.mxu1 %v770_v59 }
 0x1fb   : > { %1934 = vmatpush.msrb.mxu2 %v4190_v49  ;;  %1963 = vmatpush.msrb.mxu0 %v4191_v36 }
 0x1fc   : > { %1914 = vmatpush.msrb.mxu1 %v766_v57  ;;  %1853 = vmatmul.f32.gmra.mxu0 %v3576_v14 }
 0x1fd   : > { %1935 = vmatpush.msrb.mxu2 %v4192_v35  ;;  %1964 = vmatpush.msrb.mxu0 %v4193_v53 }
 0x1fe   : > { %1915 = vmatpush.msrb.mxu1 %v718_v1 }
 0x1ff   : > { %1936 = vmatpush.msrb.mxu2 %v4195_v20  ;;  %2083 = vmatmul.msk.f32.gmra.mxu1 %vm1597_vm13, %v4150_v61 }
 0x200   : > { %1916 = vmatpush.msrb.mxu1 %v714_v18 }
 0x201   : > { %1937 = vmatpush.msrb.mxu2 %v4197_v26 }
 0x202   : > { %1917 = vmatpush.msrb.mxu1 %v666_v10 }
 0x203   : > { %1938 = vmatpush.msrb.mxu2 %v1109_v0 }
 0x204   : > { %1918 = vmatpush.msrb.mxu1 %v662_v11  ;;  %2084 = vmatmul.msk.f32.vlgmr.msrb.gmra.mxu0 %vm1597_vm13, %v4139_v51 }
 0x205   : > { %1939 = vmatpush.msrb.mxu2 %v1105_v45 }
 0x207   : > { %1940 = vmatpush.msrb.mxu2 %v1057_v7  ;;  %1919 = vmatmul.f32.vlgmr.msrb.gmra.mxu1 %v3468_v24 }
 0x209   : > { %1941 = vmatpush.msrb.mxu2 %v1053_v19 }
 0x20a   : > { %1942 = vmatmul.f32.vlgmr.msrb.gmra.mxu2 %v4158_v43 }
 0x20b   : > { %v1621_v12 = vpop.f32.mrf.mxu0 }
 0x20c   : > { %2085 = vmatmul.msk.f32.gmra.mxu0 %vm1597_vm13, %v4150_v61 }
 0x20f   : > { %1922 = vmatmul.f32.gmra.mxu1 %v3622_v9 }
 0x211   : > { %v1713_v44 = vpop.f32.mrf.mxu3 }
 0x212   : > { %1945 = vmatmul.f32.gmra.mxu2 %v3576_v14 }
 0x21c   : > { %v1667_v3 = vpop.f32.mrf.mxu2 }
 0x223   : > { %v1644_v4 = vpop.f32.mrf.mxu1 }
 0x225   : > { %v3901_v50 = vpop.permute.xlu1 %1589 }
 0x226   : > { %v1622_v51 = vadd.f32 %v1621_v12, %v3901_v50  ;;  %v1714_v47 = vadd.f32 %v1713_v44, %v3901_v50 }
 0x228   : > { %v1645_v34 = vadd.f32 %v1644_v4, %v1622_v51 }
 0x22a   : > { %v1668_v24 = vadd.f32 %v1667_v3, %v1645_v34 }
 0x22c   : > { %v1691_v30 = vadd.f32 %v1690_v40, %v1668_v24 }
 0x22e   : > { %v1972_v14 = vmax.f32 %v1691_v30, 0.0 }
 0x230   : > { %1980 = vst [vmem:[%s3909_s21] sm:$0xff] %v1972_v14 }
 0x237   : > { %v1595_v9 = vpop.permute.xlu2 %1594 }
 0x238   : > { %v1624_v61 = vpop.f32.mrf.mxu0 }
 0x239   : > { %v1625_v43 = vadd.f32 %v1624_v61, %v1595_v9 }
 0x23b   : > { %v1647_v13 = vpop.f32.mrf.mxu1 }
 0x23c   : > { %v1648_v8 = vadd.f32 %v1647_v13, %v1625_v43 }
 0x23f   : > { %v1670_v33 = vpop.f32.mrf.mxu2 }
 0x240   : > { %v1671_v28 = vadd.f32 %v1670_v33, %v1648_v8 }
 0x242   : > { %v1694_v46 = vadd.f32 %v1693_v62, %v1671_v28 }
 0x244   : > { %v1976_v32 = vmax.f32 %v1694_v46, 0.0 }
 0x246   : > { %1984 = vst [vmem:[%s3909_s21 + $0x20] sm:$0xff] %v1976_v32 }
 0x247   : > { %v1736_v6 = vpop.f32.mrf.mxu0  ;;  %v1782_v48 = vpop.f32.mrf.mxu2 }
 0x248   : > { %v1737_v2 = vadd.f32 %v1736_v6, %v1714_v47 }
 0x24d   : > { %v1716_v41 = vpop.f32.mrf.mxu3 }
 0x24e   : > { %v1717_v37 = vadd.f32 %v1716_v41, %v1595_v9 }
 0x251   : > { %v1739_v27 = vpop.f32.mrf.mxu0 }
 0x252   : > { %v1740_v23 = vadd.f32 %v1739_v27, %v1717_v37 }
 0x253   : > { %v1785_v31 = vpop.f32.mrf.mxu2 }
 0x255   : > { %v1759_v5 = vpop.f32.mrf.mxu1  ;;  %v1805_v17 = vpop.f32.mrf.mxu3 }
 0x256   : > { %v1760_v54 = vadd.f32 %v1759_v5, %v1737_v2  ;;  %v1806_v49 = vadd.f32 %v1805_v17, %v3901_v50 }
 0x258   : > { %v1783_v16 = vadd.f32 %v1782_v48, %v1760_v54 }
 0x25a   : > { %v1973_v59 = vmax.f32 %v1783_v16, 0.0 }
 0x25c   : > { %1981 = vst [vmem:[%s3909_s21 + $0x8] sm:$0xff] %v1973_v59 }
 0x25d   : > { %v1808_v1 = vpop.f32.mrf.mxu3 }
 0x25e   : > { %v1762_v15 = vpop.f32.mrf.mxu1  ;;  %v1809_v18 = vadd.f32 %v1808_v1, %v1595_v9 }
 0x25f   : > { %v1763_v38 = vadd.f32 %v1762_v15, %v1740_v23 }
 0x261   : > { %v1786_v57 = vadd.f32 %v1785_v31, %v1763_v38 }
 0x263   : > { %v1977_v56 = vmax.f32 %v1786_v57, 0.0 }
 0x265   : > { %1985 = vst [vmem:[%s3909_s21 + $0x28] sm:$0xff] %v1977_v56  ;;  %v1897_v11 = vpop.f32.mrf.mxu3 }
 0x266   : > { %v1898_v22 = vadd.f32 %v1897_v11, %v3901_v50 }
 0x26c   : > { %v1874_v21 = vpop.f32.mrf.mxu1 }
 0x26d   : > { %v1828_v36 = vpop.f32.mrf.mxu2 }
 0x26e   : > { %v1829_v52 = vadd.f32 %v1828_v36, %v1806_v49 }
 0x26f   : > { %v1900_v42 = vpop.f32.mrf.mxu3 }
 0x270   : > { %v1901_v12 = vadd.f32 %v1900_v42, %v1595_v9 }
 0x271   : > { %v1851_v35 = vpop.f32.mrf.mxu0 }
 0x272   : > { %v1852_v53 = vadd.f32 %v1851_v35, %v1829_v52 }
 0x274   : > { %v1875_v25 = vadd.f32 %v1874_v21, %v1852_v53 }
 0x275   : > { %v1831_v39 = vpop.f32.mrf.mxu2 }
 0x276   : > { %v1974_v20 = vmax.f32 %v1875_v25, 0.0  ;;  %v1832_v10 = vadd.f32 %v1831_v39, %v1809_v18 }
 0x278   : > { %1982 = vst [vmem:[%s3909_s21 + $0x10] sm:$0xff] %v1974_v20 }
 0x279   : > { %v1854_v60 = vpop.f32.mrf.mxu0 }
 0x27a   : > { %v1855_v63 = vadd.f32 %v1854_v60, %v1832_v10 }
 0x27c   : > { %v1877_v55 = vpop.f32.mrf.mxu1 }
 0x27d   : > { %v1878_v0 = vadd.f32 %v1877_v55, %v1855_v63 }
 0x27f   : > { %v1978_v26 = vmax.f32 %v1878_v0, 0.0 }
 0x281   : > { %1986 = vst [vmem:[%s3909_s21 + $0x30] sm:$0xff] %v1978_v26  ;;  %v1966_v58 = vpop.f32.mrf.mxu0 }
 0x284   : > { %v1920_v29 = vpop.f32.mrf.mxu1 }
 0x285   : > { %v1921_v45 = vadd.f32 %v1920_v29, %v1898_v22 }
 0x289   : > { %v1969_v24 = vpop.f32.mrf.mxu0 }
 0x28c   : > { %v1923_v4 = vpop.f32.mrf.mxu1 }
 0x28d   : > { %v1943_v7 = vpop.f32.mrf.mxu2  ;;  %v1924_v34 = vadd.f32 %v1923_v4, %v1901_v12 }
 0x28e   : > { %v1944_v19 = vadd.f32 %v1943_v7, %v1921_v45 }
 0x290   : > { %v1967_v51 = vadd.f32 %v1966_v58, %v1944_v19 }
 0x292   : > { %v1975_v3 = vmax.f32 %v1967_v51, 0.0 }
 0x294   : > { %1983 = vst [vmem:[%s3909_s21 + $0x18] sm:$0xff] %v1975_v3 }
 0x295   : > { %v1946_v40 = vpop.f32.mrf.mxu2 }
 0x296   : > { %v1947_v30 = vadd.f32 %v1946_v40, %v1924_v34 }
 0x298   : > { %v1970_v14 = vadd.f32 %v1969_v24, %v1947_v30 }
 0x29a   : > { %v1979_v61 = vmax.f32 %v1970_v14, 0.0 }
 0x29c   : > { %1987 = vst [vmem:[%s3909_s21 + $0x38] sm:$0xff] %v1979_v61 }
 0x29d PF: > { %s14_s15 = sadd.s32 1, %s2136_s15  }
 0x29e   : > { %p11_p4 = scmp.ge.s32.totalorder %s14_s15, 4  }
 0x2a0   :  { %13 = sbr.rel (!%p11_p4) target bundleno = 1 (0x1), region = 92 }

</bundles_post_ra>
